<compile_context>
chip_gen: v6e
topology: v6e:2x2x1
jax: 0.10.0
libtpu: 0.0.40
codegen_flags: <defaults>
</compile_context>

<pallas_src>
import functools
import math

import jax
import jax.numpy as jnp
from jax.experimental import pallas as pl
from jax.experimental.pallas import tpu as pltpu

# --- tiny synthetic RoBERTa config (shapes consistent with module semantics) ---
HIDDEN = 32
N_HEADS = 4
HEAD_DIM = HIDDEN // N_HEADS
N_LAYERS = 2
INTERMEDIATE = 64
VOCAB = 100
MAX_POS = 40
SEQ = 8
BATCH = 2
NUM_LABELS = 2
LANE_PAD = 128           # lane-dense kernel output width (logits padded to 128 lanes)
EPS = 1e-5
PAD_ID = 1               # RoBERTa padding_idx


# ----------------------------- in-kernel helpers -----------------------------

def _layer_norm(x, g, b):
    mean = jnp.mean(x, axis=-1, keepdims=True)
    xc = x - mean
    var = jnp.mean(xc * xc, axis=-1, keepdims=True)
    return xc * jax.lax.rsqrt(var + EPS) * g + b


def _gelu(x):
    # TODO(synk): HF RoBERTa uses exact erf-GELU; tanh-approx used here (erf lowering through
    # Mosaic is not guaranteed) -> small numeric drift only.
    return jax.nn.gelu(x, approximate=True)


# ----------------------------- fused encoder + head kernel -----------------------------
# One grid step == one transformer layer. Hidden state lives in VMEM scratch across steps.
# The classification head runs inside the last grid step.

def _encoder_head_kernel(h0_ref, mask_ref, emb_g_ref, emb_b_ref,
                         wqkv_ref, bqkv_ref, wo_ref, bo_ref, ln1_g_ref, ln1_b_ref,
                         wi_ref, bi_ref, wout_ref, bout_ref, ln2_g_ref, ln2_b_ref,
                         pool_w_ref, pool_b_ref,
                         map_wt_ref, map_wc_ref, map_b_ref,
                         cls_w_ref, cls_b_ref,
                         logits_ref,
                         h_vmem, ctx_vmem, *, batch, seq):
    layer = pl.program_id(0)
    b2 = 2 * batch
    scale = 1.0 / math.sqrt(HEAD_DIM)
    bf16 = jnp.bfloat16

    # Step 0: embedding LayerNorm; hidden state becomes resident in VMEM for all layers.
    @pl.when(layer == 0)
    def _():
        h_vmem[...] = _layer_norm(h0_ref[...], emb_g_ref[...], emb_b_ref[...])

    h = h_vmem[...]                                              # [2B*S, H] f32 residual stream

    # Fused QKV projection: bf16 operands on the MXU, f32 accumulation.
    qkv = jnp.dot(h.astype(bf16), wqkv_ref[0],
                  preferred_element_type=jnp.float32) + bqkv_ref[0]        # [2B*S, 3H] f32
    qkv3 = qkv.reshape(b2, seq, 3 * HIDDEN).astype(bf16)                   # [2B, S, 3H] bf16

    # Additive attention mask, broadcast ONCE per layer (hoisted out of the head loop).
    m_full = jnp.broadcast_to(mask_ref[...][:, None, :], (b2, seq, seq))   # [2B, Sq, Sk] f32

    # Batched multi-head attention: one batched dot_general per head over all sequences,
    # no k transpose (contraction on head_dim), context written into a VMEM scratch (no concats).
    for hh in range(N_HEADS):
        c0 = hh * HEAD_DIM
        q = qkv3[:, :, c0:c0 + HEAD_DIM]
        k = qkv3[:, :, HIDDEN + c0:HIDDEN + c0 + HEAD_DIM]
        v = qkv3[:, :, 2 * HIDDEN + c0:2 * HIDDEN + c0 + HEAD_DIM]
        s = jnp.einsum('bqd,bkd->bqk', q, k,
                       preferred_element_type=jnp.float32) * scale + m_full
        s_max = jnp.max(s, axis=-1, keepdims=True)
        p = jnp.exp(s - s_max)
        p = p * pl.reciprocal(jnp.sum(p, axis=-1, keepdims=True), approx=True)
        ctx_vmem[:, :, c0:c0 + HEAD_DIM] = jnp.einsum(
            'bqk,bkd->bqd', p.astype(bf16), v, preferred_element_type=jnp.float32)

    ctx = ctx_vmem[...].reshape(b2 * seq, HIDDEN).astype(bf16)             # [2B*S, H]

    # Output projection + residual + LayerNorm (fused epilogue, f32 math).
    attn_out = jnp.dot(ctx, wo_ref[0], preferred_element_type=jnp.float32) + bo_ref[0]
    h = _layer_norm(attn_out + h, ln1_g_ref[0], ln1_b_ref[0])

    # FFN with GELU + residual + LayerNorm.
    inter = _gelu(jnp.dot(h.astype(bf16), wi_ref[0],
                          preferred_element_type=jnp.float32) + bi_ref[0])
    ffn_out = jnp.dot(inter.astype(bf16), wout_ref[0],
                      preferred_element_type=jnp.float32) + bout_ref[0]
    h = _layer_norm(ffn_out + h, ln2_g_ref[0], ln2_b_ref[0])
    h_vmem[...] = h

    # Last layer: pooler + mapper + classifier fused here; only one lane-dense HBM store.
    @pl.when(layer == pl.num_programs(0) - 1)
    def _():
        # Strided CLS extraction (rows 0, S, 2S, ...) straight from the resident hidden state.
        cls = h_vmem[pl.ds(0, b2, stride=seq), :]                          # [2B, H] f32
        pooled = jnp.tanh(
            jnp.dot(cls.astype(bf16), pool_w_ref[...],
                    preferred_element_type=jnp.float32) + pool_b_ref[...])  # [2B, H] f32
        # concat(text, community) @ Wm  ==  text @ Wm[:H] + community @ Wm[H:]
        pt = pooled[:batch, :].astype(bf16)
        pc = pooled[batch:, :].astype(bf16)
        mapped = (jnp.dot(pt, map_wt_ref[...], preferred_element_type=jnp.float32)
                  + jnp.dot(pc, map_wc_ref[...], preferred_element_type=jnp.float32)
                  + map_b_ref[...])                                        # [B, 2H] f32
        # nn.Dropout(0.1) is identity at inference.
        logits = jnp.dot(mapped.astype(bf16), cls_w_ref[...],
                         preferred_element_type=jnp.float32) + cls_b_ref[...]   # [B, 128]
        logits_ref[...] = logits.astype(logits_ref.dtype)


# ----------------------------- model forward -----------------------------

def roberta_classifier(params, input_ids, attention_mask,
                       community_input_ids, community_attention_mask, labels=None):
    # Run both towers as one batched pass through the single fused kernel (shared weights).
    ids = jnp.concatenate([input_ids, community_input_ids], axis=0)          # [2B, S]
    mask = jnp.concatenate([attention_mask, community_attention_mask], axis=0)
    b2, seq = ids.shape
    batch = b2 // 2

    # Embedding gathers + position ids are glue (plain JAX).
    # HF create_position_ids_from_input_ids: pads keep padding_idx, others count non-pad tokens.
    not_pad = (ids != PAD_ID).astype(jnp.int32)
    positions = jnp.cumsum(not_pad, axis=1) * not_pad + PAD_ID
    h0 = (params["word_emb"][ids]
          + params["pos_emb"][positions]
          + params["type_emb"][jnp.zeros_like(ids)])
    h0 = h0.reshape(b2 * seq, HIDDEN).astype(jnp.float32)

    # Additive mask, kept in f32 (never cast down).
    add_mask = (1.0 - mask.astype(jnp.float32)) * -1e9                       # [2B, S]

    L = params["layers"]
    map_w = params["mapper"]["w"]                                            # [2H, 2H] bf16
    map_wt, map_wc = map_w[:HIDDEN, :], map_w[HIDDEN:, :]
    # Classifier weights padded to a lane-dense 128-wide output; extra columns are zero.
    cls_w_pad = jnp.zeros((2 * HIDDEN, LANE_PAD), jnp.bfloat16).at[:, :NUM_LABELS].set(
        params["classifier"]["w"])
    cls_b_pad = jnp.zeros((1, LANE_PAD), jnp.float32).at[0, :NUM_LABELS].set(
        params["classifier"]["b"])

    def full(shape):
        return pl.BlockSpec(shape, lambda l: (0, 0))

    def stk(arr):
        return pl.BlockSpec((1,) + tuple(arr.shape[1:]), lambda l: (l, 0, 0))

    kernel = functools.partial(_encoder_head_kernel, batch=batch, seq=seq)
    logits_pad = pl.pallas_call(
        kernel,
        grid=(N_LAYERS,),
        out_shape=jax.ShapeDtypeStruct((batch, LANE_PAD), jnp.float32),
        in_specs=[
            full((b2 * seq, HIDDEN)),                  # h0 (pre-LN embeddings)
            full((b2, seq)),                           # additive attention mask
            full((1, HIDDEN)), full((1, HIDDEN)),      # embedding LN gamma/beta
            stk(L["wqkv"]), stk(L["bqkv"]),
            stk(L["wo"]), stk(L["bo"]),
            stk(L["ln1_g"]), stk(L["ln1_b"]),
            stk(L["wi"]), stk(L["bi"]),
            stk(L["wout"]), stk(L["bout"]),
            stk(L["ln2_g"]), stk(L["ln2_b"]),
            full((HIDDEN, HIDDEN)), full((1, HIDDEN)),            # pooler
            full((HIDDEN, 2 * HIDDEN)), full((HIDDEN, 2 * HIDDEN)),  # mapper top/bottom halves
            full((1, 2 * HIDDEN)),                                 # mapper bias
            full((2 * HIDDEN, LANE_PAD)), full((1, LANE_PAD)),     # classifier (lane-padded)
        ],
        out_specs=pl.BlockSpec((batch, LANE_PAD), lambda l: (0, 0)),
        scratch_shapes=[pltpu.VMEM((b2 * seq, HIDDEN), jnp.float32),   # resident hidden state
                        pltpu.VMEM((b2, seq, HIDDEN), jnp.float32)],   # attention context
        compiler_params=pltpu.CompilerParams(
            dimension_semantics=("arbitrary",)),   # layer axis is sequential (carried state)
        # TODO(synk): for real RoBERTa-base sizes on v7x (64 MiB VMEM), use bf16 weights (done) plus
        # an inner tiling axis over INTERMEDIATE and an explicit vmem_limit_bytes.
    )(h0, add_mask,
      params["emb_ln_g"].reshape(1, HIDDEN), params["emb_ln_b"].reshape(1, HIDDEN),
      L["wqkv"], L["bqkv"], L["wo"], L["bo"], L["ln1_g"], L["ln1_b"],
      L["wi"], L["bi"], L["wout"], L["bout"], L["ln2_g"], L["ln2_b"],
      params["pooler"]["w"], params["pooler"]["b"].reshape(1, HIDDEN),
      map_wt, map_wc, params["mapper"]["b"].reshape(1, 2 * HIDDEN),
      cls_w_pad, cls_b_pad)

    logits = logits_pad[:, :NUM_LABELS]
    if labels is not None:
        logp = jax.nn.log_softmax(logits, axis=-1)
        loss = -jnp.mean(jnp.take_along_axis(logp, labels[:, None], axis=1))
        return loss, logits
    return logits


# ----------------------------- parameter init -----------------------------

def init_params(key):
    keys = iter(jax.random.split(key, 64))

    def w(shape, dtype=jnp.bfloat16):
        # matmul weights stored bf16 (MXU-native); biases / LN params / embeddings stay f32.
        return (jax.random.normal(next(keys), shape, jnp.float32) * 0.02).astype(dtype)

    return {
        "word_emb": w((VOCAB, HIDDEN), jnp.float32),
        "pos_emb": w((MAX_POS, HIDDEN), jnp.float32),
        "type_emb": w((1, HIDDEN), jnp.float32),
        "emb_ln_g": jnp.ones((HIDDEN,), jnp.float32),
        "emb_ln_b": jnp.zeros((HIDDEN,), jnp.float32),
        # Per-layer weights stacked on a leading layer axis; Q/K/V fused into one [H, 3H] matrix.
        "layers": {
            "wqkv": w((N_LAYERS, HIDDEN, 3 * HIDDEN)),
            "bqkv": jnp.zeros((N_LAYERS, 1, 3 * HIDDEN), jnp.float32),
            "wo": w((N_LAYERS, HIDDEN, HIDDEN)),
            "bo": jnp.zeros((N_LAYERS, 1, HIDDEN), jnp.float32),
            "ln1_g": jnp.ones((N_LAYERS, 1, HIDDEN), jnp.float32),
            "ln1_b": jnp.zeros((N_LAYERS, 1, HIDDEN), jnp.float32),
            "wi": w((N_LAYERS, HIDDEN, INTERMEDIATE)),
            "bi": jnp.zeros((N_LAYERS, 1, INTERMEDIATE), jnp.float32),
            "wout": w((N_LAYERS, INTERMEDIATE, HIDDEN)),
            "bout": jnp.zeros((N_LAYERS, 1, HIDDEN), jnp.float32),
            "ln2_g": jnp.ones((N_LAYERS, 1, HIDDEN), jnp.float32),
            "ln2_b": jnp.zeros((N_LAYERS, 1, HIDDEN), jnp.float32),
        },
        "pooler": {"w": w((HIDDEN, HIDDEN)), "b": jnp.zeros((HIDDEN,), jnp.float32)},
        "mapper": {"w": w((2 * HIDDEN, 2 * HIDDEN)),
                   "b": jnp.zeros((2 * HIDDEN,), jnp.float32)},
        "classifier": {"w": w((2 * HIDDEN, NUM_LABELS)),
                       "b": jnp.zeros((NUM_LABELS,), jnp.float32)},
    }


# ----------------------------- main -----------------------------

if __name__ == "__main__":
    key = jax.random.PRNGKey(0)
    pkey, ik1, ik2 = jax.random.split(key, 3)
    params = init_params(pkey)

    input_ids = jax.random.randint(ik1, (BATCH, SEQ), 3, VOCAB, dtype=jnp.int32)
    community_input_ids = jax.random.randint(ik2, (BATCH, SEQ), 3, VOCAB, dtype=jnp.int32)
    attention_mask = jnp.ones((BATCH, SEQ), jnp.int32)
    community_attention_mask = jnp.ones((BATCH, SEQ), jnp.int32)

    logits = roberta_classifier(params, input_ids, attention_mask,
                                community_input_ids, community_attention_mask)
    jax.block_until_ready(logits)
    assert logits.shape == (BATCH, NUM_LABELS)
    print("KERNEL_OK")
</pallas_src>

<mosaic_0001>
module attributes {stable_mosaic.version = 11 : i64} {
  func.func @_encoder_head_kernel(%arg0: i32, %arg1: memref<32x32xf32, #tpu.memory_space<vmem>>, %arg2: memref<4x8xf32, #tpu.memory_space<vmem>>, %arg3: memref<1x32xf32, #tpu.memory_space<vmem>>, %arg4: memref<1x32xf32, #tpu.memory_space<vmem>>, %arg5: memref<1x32x96xbf16, #tpu.memory_space<vmem>>, %arg6: memref<1x1x96xf32, #tpu.memory_space<vmem>>, %arg7: memref<1x32x32xbf16, #tpu.memory_space<vmem>>, %arg8: memref<1x1x32xf32, #tpu.memory_space<vmem>>, %arg9: memref<1x1x32xf32, #tpu.memory_space<vmem>>, %arg10: memref<1x1x32xf32, #tpu.memory_space<vmem>>, %arg11: memref<1x32x64xbf16, #tpu.memory_space<vmem>>, %arg12: memref<1x1x64xf32, #tpu.memory_space<vmem>>, %arg13: memref<1x64x32xbf16, #tpu.memory_space<vmem>>, %arg14: memref<1x1x32xf32, #tpu.memory_space<vmem>>, %arg15: memref<1x1x32xf32, #tpu.memory_space<vmem>>, %arg16: memref<1x1x32xf32, #tpu.memory_space<vmem>>, %arg17: memref<32x32xbf16, #tpu.memory_space<vmem>>, %arg18: memref<1x32xf32, #tpu.memory_space<vmem>>, %arg19: memref<32x64xbf16, #tpu.memory_space<vmem>>, %arg20: memref<32x64xbf16, #tpu.memory_space<vmem>>, %arg21: memref<1x64xf32, #tpu.memory_space<vmem>>, %arg22: memref<64x128xbf16, #tpu.memory_space<vmem>>, %arg23: memref<1x128xf32, #tpu.memory_space<vmem>>, %arg24: memref<2x128xf32, #tpu.memory_space<vmem>>, %arg25: memref<32x32xf32, #tpu.memory_space<vmem>>, %arg26: memref<4x8x32xf32, #tpu.memory_space<vmem>>) attributes {dimension_semantics = [#tpu.dimension_semantics<arbitrary>], iteration_bounds = array<i64: 2>, scalar_prefetch = 0 : i64, scratch_operands = 2 : i64, tpu.core_type = #tpu.core_type<tc>, window_params = [{pipeline_mode = #tpu.pipeline_mode<synchronous>, transform_indices = @transform_0, window_bounds = array<i64: 32, 32>}, {pipeline_mode = #tpu.pipeline_mode<synchronous>, transform_indices = @transform_1, window_bounds = array<i64: 4, 8>}, {pipeline_mode = #tpu.pipeline_mode<synchronous>, transform_indices = @transform_2, window_bounds = array<i64: 1, 32>}, {pipeline_mode = #tpu.pipeline_mode<synchronous>, transform_indices = @transform_3, window_bounds = array<i64: 1, 32>}, {transform_indices = @transform_4, window_bounds = array<i64: 1, 32, 96>}, {transform_indices = @transform_5, window_bounds = array<i64: 1, 1, 96>}, {transform_indices = @transform_6, window_bounds = array<i64: 1, 32, 32>}, {transform_indices = @transform_7, window_bounds = array<i64: 1, 1, 32>}, {transform_indices = @transform_8, window_bounds = array<i64: 1, 1, 32>}, {transform_indices = @transform_9, window_bounds = array<i64: 1, 1, 32>}, {transform_indices = @transform_10, window_bounds = array<i64: 1, 32, 64>}, {transform_indices = @transform_11, window_bounds = array<i64: 1, 1, 64>}, {transform_indices = @transform_12, window_bounds = array<i64: 1, 64, 32>}, {transform_indices = @transform_13, window_bounds = array<i64: 1, 1, 32>}, {transform_indices = @transform_14, window_bounds = array<i64: 1, 1, 32>}, {transform_indices = @transform_15, window_bounds = array<i64: 1, 1, 32>}, {pipeline_mode = #tpu.pipeline_mode<synchronous>, transform_indices = @transform_16, window_bounds = array<i64: 32, 32>}, {pipeline_mode = #tpu.pipeline_mode<synchronous>, transform_indices = @transform_17, window_bounds = array<i64: 1, 32>}, {pipeline_mode = #tpu.pipeline_mode<synchronous>, transform_indices = @transform_18, window_bounds = array<i64: 32, 64>}, {pipeline_mode = #tpu.pipeline_mode<synchronous>, transform_indices = @transform_19, window_bounds = array<i64: 32, 64>}, {pipeline_mode = #tpu.pipeline_mode<synchronous>, transform_indices = @transform_20, window_bounds = array<i64: 1, 64>}, {pipeline_mode = #tpu.pipeline_mode<synchronous>, transform_indices = @transform_21, window_bounds = array<i64: 64, 128>}, {pipeline_mode = #tpu.pipeline_mode<synchronous>, transform_indices = @transform_22, window_bounds = array<i64: 1, 128>}, {pipeline_mode = #tpu.pipeline_mode<synchronous>, transform_indices = @transform_23, window_bounds = array<i64: 2, 128>}]} {
    %c0_i32 = arith.constant 0 : i32
    %0 = arith.cmpi eq, %arg0, %c0_i32 : i32
    %1 = arith.extui %0 : i1 to i32
    %c0_i32_0 = arith.constant 0 : i32
    %2 = arith.cmpi ne, %1, %c0_i32_0 : i32
    scf.if %2 {
      %c0_92 = arith.constant 0 : index
      %c0_93 = arith.constant 0 : index
      %191 = vector.load %arg1[%c0_92, %c0_93] : memref<32x32xf32, #tpu.memory_space<vmem>>, vector<32x32xf32>
      %c0_94 = arith.constant 0 : index
      %c0_95 = arith.constant 0 : index
      %192 = vector.load %arg3[%c0_94, %c0_95] : memref<1x32xf32, #tpu.memory_space<vmem>>, vector<1x32xf32>
      %c0_96 = arith.constant 0 : index
      %c0_97 = arith.constant 0 : index
      %193 = vector.load %arg4[%c0_96, %c0_97] : memref<1x32xf32, #tpu.memory_space<vmem>>, vector<1x32xf32>
      %cst_98 = arith.constant dense<0.000000e+00> : vector<32xf32>
      %194 = vector.multi_reduction <add>, %191, %cst_98 [1] : vector<32x32xf32> to vector<32xf32>
      %195 = vector.shape_cast %194 : vector<32xf32> to vector<32x1xf32>
      %cst_99 = arith.constant 3.200000e+01 : f32
      %196 = vector.broadcast %cst_99 : f32 to vector<32x1xf32>
      %197 = arith.divf %195, %196 : vector<32x1xf32>
      %198 = vector.broadcast %197 : vector<32x1xf32> to vector<32x32xf32>
      %199 = arith.subf %191, %198 : vector<32x32xf32>
      %200 = arith.mulf %199, %199 : vector<32x32xf32>
      %cst_100 = arith.constant dense<0.000000e+00> : vector<32xf32>
      %201 = vector.multi_reduction <add>, %200, %cst_100 [1] : vector<32x32xf32> to vector<32xf32>
      %202 = vector.shape_cast %201 : vector<32xf32> to vector<32x1xf32>
      %cst_101 = arith.constant 3.200000e+01 : f32
      %203 = vector.broadcast %cst_101 : f32 to vector<32x1xf32>
      %204 = arith.divf %202, %203 : vector<32x1xf32>
      %cst_102 = arith.constant 9.99999974E-6 : f32
      %205 = vector.broadcast %cst_102 : f32 to vector<32x1xf32>
      %206 = arith.addf %204, %205 : vector<32x1xf32>
      %207 = math.rsqrt %206 : vector<32x1xf32>
      %208 = vector.broadcast %207 : vector<32x1xf32> to vector<32x32xf32>
      %209 = arith.mulf %199, %208 : vector<32x32xf32>
      %210 = vector.broadcast %192 : vector<1x32xf32> to vector<32x32xf32>
      %211 = arith.mulf %209, %210 : vector<32x32xf32>
      %212 = vector.broadcast %193 : vector<1x32xf32> to vector<32x32xf32>
      %213 = arith.addf %211, %212 : vector<32x32xf32>
      %c0_103 = arith.constant 0 : index
      %c0_104 = arith.constant 0 : index
      %214 = vector.load %arg25[%c0_103, %c0_104] : memref<32x32xf32, #tpu.memory_space<vmem>>, vector<32x32xf32>
      tpu.vector_store %arg25[%c0_103, %c0_104], %213 {strides = array<i32>} : memref<32x32xf32, #tpu.memory_space<vmem>>, vector<32x32xf32>,
    } else {
    }
    %c0 = arith.constant 0 : index
    %c0_1 = arith.constant 0 : index
    %3 = vector.load %arg25[%c0, %c0_1] : memref<32x32xf32, #tpu.memory_space<vmem>>, vector<32x32xf32>
    %4 = arith.truncf %3 : vector<32x32xf32> to vector<32x32xbf16>
    %c0_2 = arith.constant 0 : index
    %c0_3 = arith.constant 0 : index
    %c0_4 = arith.constant 0 : index
    %5 = vector.load %arg5[%c0_2, %c0_3, %c0_4] : memref<1x32x96xbf16, #tpu.memory_space<vmem>>, vector<1x32x96xbf16>
    %6 = vector.shape_cast %5 : vector<1x32x96xbf16> to vector<32x96xbf16>
    %cst = arith.constant dense<0.000000e+00> : vector<32x96xf32>
    %7 = tpu.matmul %4, %6, %cst {dimension_numbers = #tpu.dot_dimension_numbers<[1], [0], [0], [1], [0, 0, 1, 1], [], []>} : vector<32x32xbf16>, vector<32x96xbf16>, vector<32x96xf32> -> vector<32x96xf32>
    %c0_5 = arith.constant 0 : index
    %c0_6 = arith.constant 0 : index
    %c0_7 = arith.constant 0 : index
    %8 = vector.load %arg6[%c0_5, %c0_6, %c0_7] : memref<1x1x96xf32, #tpu.memory_space<vmem>>, vector<1x1x96xf32>
    %9 = vector.shape_cast %8 : vector<1x1x96xf32> to vector<1x96xf32>
    %10 = vector.broadcast %9 : vector<1x96xf32> to vector<32x96xf32>
    %11 = arith.addf %7, %10 : vector<32x96xf32>
    %12 = vector.shape_cast %11 : vector<32x96xf32> to vector<4x8x96xf32>
    %13 = arith.truncf %12 : vector<4x8x96xf32> to vector<4x8x96xbf16>
    %c0_8 = arith.constant 0 : index
    %c0_9 = arith.constant 0 : index
    %14 = vector.load %arg2[%c0_8, %c0_9] : memref<4x8xf32, #tpu.memory_space<vmem>>, vector<4x8xf32>
    %15 = vector.shape_cast %14 : vector<4x8xf32> to vector<4x1x8xf32>
    %16 = vector.shape_cast %15 : vector<4x1x8xf32> to vector<4x1x8xf32>
    %17 = vector.broadcast %16 : vector<4x1x8xf32> to vector<4x8x8xf32>
    %18 = vector.extract_strided_slice %13 {offsets = [0, 0, 0], sizes = [4, 8, 8], strides = [1, 1, 1]} : vector<4x8x96xbf16> to vector<4x8x8xbf16>
    %19 = vector.extract_strided_slice %13 {offsets = [0, 0, 32], sizes = [4, 8, 8], strides = [1, 1, 1]} : vector<4x8x96xbf16> to vector<4x8x8xbf16>
    %20 = vector.extract_strided_slice %13 {offsets = [0, 0, 64], sizes = [4, 8, 8], strides = [1, 1, 1]} : vector<4x8x96xbf16> to vector<4x8x8xbf16>
    "tpu.trace_start"() <{level = 10 : i32, message = "bqd,bkd->bqk"}> : () -> ()
    %cst_10 = arith.constant dense<0.000000e+00> : vector<4x8x8xf32>
    %21 = tpu.matmul %18, %19, %cst_10 {dimension_numbers = #tpu.dot_dimension_numbers<[2], [2], [1], [1], [0, 0, 0, 1, 1, 1], [0], [0]>} : vector<4x8x8xbf16>, vector<4x8x8xbf16>, vector<4x8x8xf32> -> vector<4x8x8xf32>
    "tpu.trace_stop"() : () -> ()
    %cst_11 = arith.constant 0.353553385 : f32
    %22 = vector.broadcast %cst_11 : f32 to vector<4x8x8xf32>
    %23 = arith.mulf %21, %22 : vector<4x8x8xf32>
    %24 = arith.addf %23, %17 : vector<4x8x8xf32>
    %cst_12 = arith.constant dense<0xFF800000> : vector<4x8xf32>
    %25 = vector.multi_reduction <maximumf>, %24, %cst_12 [2] : vector<4x8x8xf32> to vector<4x8xf32>
    %26 = vector.shape_cast %25 : vector<4x8xf32> to vector<4x8x1xf32>
    %27 = vector.broadcast %26 : vector<4x8x1xf32> to vector<4x8x8xf32>
    %28 = arith.subf %24, %27 : vector<4x8x8xf32>
    %29 = math.exp %28 : vector<4x8x8xf32>
    %cst_13 = arith.constant dense<0.000000e+00> : vector<4x8xf32>
    %30 = vector.multi_reduction <add>, %29, %cst_13 [2] : vector<4x8x8xf32> to vector<4x8xf32>
    %31 = vector.shape_cast %30 : vector<4x8xf32> to vector<4x8x1xf32>
    %32 = tpu.reciprocal %31 {approx = true} : vector<4x8x1xf32> -> vector<4x8x1xf32>
    %33 = vector.broadcast %32 : vector<4x8x1xf32> to vector<4x8x8xf32>
    %34 = arith.mulf %29, %33 : vector<4x8x8xf32>
    %35 = arith.truncf %34 : vector<4x8x8xf32> to vector<4x8x8xbf16>
    "tpu.trace_start"() <{level = 10 : i32, message = "bqk,bkd->bqd"}> : () -> ()
    %cst_14 = arith.constant dense<0.000000e+00> : vector<4x8x8xf32>
    %36 = tpu.matmul %35, %20, %cst_14 {dimension_numbers = #tpu.dot_dimension_numbers<[2], [1], [1], [2], [0, 0, 0, 1, 1, 2], [0], [0]>} : vector<4x8x8xbf16>, vector<4x8x8xbf16>, vector<4x8x8xf32> -> vector<4x8x8xf32>
    "tpu.trace_stop"() : () -> ()
    %c0_15 = arith.constant 0 : index
    %c0_16 = arith.constant 0 : index
    %c0_17 = arith.constant 0 : index
    %37 = vector.load %arg26[%c0_15, %c0_16, %c0_17] : memref<4x8x32xf32, #tpu.memory_space<vmem>>, vector<4x8x8xf32>
    tpu.vector_store %arg26[%c0_15, %c0_16, %c0_17], %36 {strides = array<i32>} : memref<4x8x32xf32, #tpu.memory_space<vmem>>, vector<4x8x8xf32>,
    %38 = vector.extract_strided_slice %13 {offsets = [0, 0, 8], sizes = [4, 8, 8], strides = [1, 1, 1]} : vector<4x8x96xbf16> to vector<4x8x8xbf16>
    %39 = vector.extract_strided_slice %13 {offsets = [0, 0, 40], sizes = [4, 8, 8], strides = [1, 1, 1]} : vector<4x8x96xbf16> to vector<4x8x8xbf16>
    %40 = vector.extract_strided_slice %13 {offsets = [0, 0, 72], sizes = [4, 8, 8], strides = [1, 1, 1]} : vector<4x8x96xbf16> to vector<4x8x8xbf16>
    "tpu.trace_start"() <{level = 10 : i32, message = "bqd,bkd->bqk"}> : () -> ()
    %cst_18 = arith.constant dense<0.000000e+00> : vector<4x8x8xf32>
    %41 = tpu.matmul %38, %39, %cst_18 {dimension_numbers = #tpu.dot_dimension_numbers<[2], [2], [1], [1], [0, 0, 0, 1, 1, 1], [0], [0]>} : vector<4x8x8xbf16>, vector<4x8x8xbf16>, vector<4x8x8xf32> -> vector<4x8x8xf32>
    "tpu.trace_stop"() : () -> ()
    %cst_19 = arith.constant 0.353553385 : f32
    %42 = vector.broadcast %cst_19 : f32 to vector<4x8x8xf32>
    %43 = arith.mulf %41, %42 : vector<4x8x8xf32>
    %44 = arith.addf %43, %17 : vector<4x8x8xf32>
    %cst_20 = arith.constant dense<0xFF800000> : vector<4x8xf32>
    %45 = vector.multi_reduction <maximumf>, %44, %cst_20 [2] : vector<4x8x8xf32> to vector<4x8xf32>
    %46 = vector.shape_cast %45 : vector<4x8xf32> to vector<4x8x1xf32>
    %47 = vector.broadcast %46 : vector<4x8x1xf32> to vector<4x8x8xf32>
    %48 = arith.subf %44, %47 : vector<4x8x8xf32>
    %49 = math.exp %48 : vector<4x8x8xf32>
    %cst_21 = arith.constant dense<0.000000e+00> : vector<4x8xf32>
    %50 = vector.multi_reduction <add>, %49, %cst_21 [2] : vector<4x8x8xf32> to vector<4x8xf32>
    %51 = vector.shape_cast %50 : vector<4x8xf32> to vector<4x8x1xf32>
    %52 = tpu.reciprocal %51 {approx = true} : vector<4x8x1xf32> -> vector<4x8x1xf32>
    %53 = vector.broadcast %52 : vector<4x8x1xf32> to vector<4x8x8xf32>
    %54 = arith.mulf %49, %53 : vector<4x8x8xf32>
    %55 = arith.truncf %54 : vector<4x8x8xf32> to vector<4x8x8xbf16>
    "tpu.trace_start"() <{level = 10 : i32, message = "bqk,bkd->bqd"}> : () -> ()
    %cst_22 = arith.constant dense<0.000000e+00> : vector<4x8x8xf32>
    %56 = tpu.matmul %55, %40, %cst_22 {dimension_numbers = #tpu.dot_dimension_numbers<[2], [1], [1], [2], [0, 0, 0, 1, 1, 2], [0], [0]>} : vector<4x8x8xbf16>, vector<4x8x8xbf16>, vector<4x8x8xf32> -> vector<4x8x8xf32>
    "tpu.trace_stop"() : () -> ()
    %c0_23 = arith.constant 0 : index
    %c0_24 = arith.constant 0 : index
    %c8 = arith.constant 8 : index
    %57 = vector.load %arg26[%c0_23, %c0_24, %c8] : memref<4x8x32xf32, #tpu.memory_space<vmem>>, vector<4x8x8xf32>
    tpu.vector_store %arg26[%c0_23, %c0_24, %c8], %56 {strides = array<i32>} : memref<4x8x32xf32, #tpu.memory_space<vmem>>, vector<4x8x8xf32>,
    %58 = vector.extract_strided_slice %13 {offsets = [0, 0, 16], sizes = [4, 8, 8], strides = [1, 1, 1]} : vector<4x8x96xbf16> to vector<4x8x8xbf16>
    %59 = vector.extract_strided_slice %13 {offsets = [0, 0, 48], sizes = [4, 8, 8], strides = [1, 1, 1]} : vector<4x8x96xbf16> to vector<4x8x8xbf16>
    %60 = vector.extract_strided_slice %13 {offsets = [0, 0, 80], sizes = [4, 8, 8], strides = [1, 1, 1]} : vector<4x8x96xbf16> to vector<4x8x8xbf16>
    "tpu.trace_start"() <{level = 10 : i32, message = "bqd,bkd->bqk"}> : () -> ()
    %cst_25 = arith.constant dense<0.000000e+00> : vector<4x8x8xf32>
    %61 = tpu.matmul %58, %59, %cst_25 {dimension_numbers = #tpu.dot_dimension_numbers<[2], [2], [1], [1], [0, 0, 0, 1, 1, 1], [0], [0]>} : vector<4x8x8xbf16>, vector<4x8x8xbf16>, vector<4x8x8xf32> -> vector<4x8x8xf32>
    "tpu.trace_stop"() : () -> ()
    %cst_26 = arith.constant 0.353553385 : f32
    %62 = vector.broadcast %cst_26 : f32 to vector<4x8x8xf32>
    %63 = arith.mulf %61, %62 : vector<4x8x8xf32>
    %64 = arith.addf %63, %17 : vector<4x8x8xf32>
    %cst_27 = arith.constant dense<0xFF800000> : vector<4x8xf32>
    %65 = vector.multi_reduction <maximumf>, %64, %cst_27 [2] : vector<4x8x8xf32> to vector<4x8xf32>
    %66 = vector.shape_cast %65 : vector<4x8xf32> to vector<4x8x1xf32>
    %67 = vector.broadcast %66 : vector<4x8x1xf32> to vector<4x8x8xf32>
    %68 = arith.subf %64, %67 : vector<4x8x8xf32>
    %69 = math.exp %68 : vector<4x8x8xf32>
    %cst_28 = arith.constant dense<0.000000e+00> : vector<4x8xf32>
    %70 = vector.multi_reduction <add>, %69, %cst_28 [2] : vector<4x8x8xf32> to vector<4x8xf32>
    %71 = vector.shape_cast %70 : vector<4x8xf32> to vector<4x8x1xf32>
    %72 = tpu.reciprocal %71 {approx = true} : vector<4x8x1xf32> -> vector<4x8x1xf32>
    %73 = vector.broadcast %72 : vector<4x8x1xf32> to vector<4x8x8xf32>
    %74 = arith.mulf %69, %73 : vector<4x8x8xf32>
    %75 = arith.truncf %74 : vector<4x8x8xf32> to vector<4x8x8xbf16>
    "tpu.trace_start"() <{level = 10 : i32, message = "bqk,bkd->bqd"}> : () -> ()
    %cst_29 = arith.constant dense<0.000000e+00> : vector<4x8x8xf32>
    %76 = tpu.matmul %75, %60, %cst_29 {dimension_numbers = #tpu.dot_dimension_numbers<[2], [1], [1], [2], [0, 0, 0, 1, 1, 2], [0], [0]>} : vector<4x8x8xbf16>, vector<4x8x8xbf16>, vector<4x8x8xf32> -> vector<4x8x8xf32>
    "tpu.trace_stop"() : () -> ()
    %c0_30 = arith.constant 0 : index
    %c0_31 = arith.constant 0 : index
    %c16 = arith.constant 16 : index
    %77 = vector.load %arg26[%c0_30, %c0_31, %c16] : memref<4x8x32xf32, #tpu.memory_space<vmem>>, vector<4x8x8xf32>
    tpu.vector_store %arg26[%c0_30, %c0_31, %c16], %76 {strides = array<i32>} : memref<4x8x32xf32, #tpu.memory_space<vmem>>, vector<4x8x8xf32>,
    %78 = vector.extract_strided_slice %13 {offsets = [0, 0, 24], sizes = [4, 8, 8], strides = [1, 1, 1]} : vector<4x8x96xbf16> to vector<4x8x8xbf16>
    %79 = vector.extract_strided_slice %13 {offsets = [0, 0, 56], sizes = [4, 8, 8], strides = [1, 1, 1]} : vector<4x8x96xbf16> to vector<4x8x8xbf16>
    %80 = vector.extract_strided_slice %13 {offsets = [0, 0, 88], sizes = [4, 8, 8], strides = [1, 1, 1]} : vector<4x8x96xbf16> to vector<4x8x8xbf16>
    "tpu.trace_start"() <{level = 10 : i32, message = "bqd,bkd->bqk"}> : () -> ()
    %cst_32 = arith.constant dense<0.000000e+00> : vector<4x8x8xf32>
    %81 = tpu.matmul %78, %79, %cst_32 {dimension_numbers = #tpu.dot_dimension_numbers<[2], [2], [1], [1], [0, 0, 0, 1, 1, 1], [0], [0]>} : vector<4x8x8xbf16>, vector<4x8x8xbf16>, vector<4x8x8xf32> -> vector<4x8x8xf32>
    "tpu.trace_stop"() : () -> ()
    %cst_33 = arith.constant 0.353553385 : f32
    %82 = vector.broadcast %cst_33 : f32 to vector<4x8x8xf32>
    %83 = arith.mulf %81, %82 : vector<4x8x8xf32>
    %84 = arith.addf %83, %17 : vector<4x8x8xf32>
    %cst_34 = arith.constant dense<0xFF800000> : vector<4x8xf32>
    %85 = vector.multi_reduction <maximumf>, %84, %cst_34 [2] : vector<4x8x8xf32> to vector<4x8xf32>
    %86 = vector.shape_cast %85 : vector<4x8xf32> to vector<4x8x1xf32>
    %87 = vector.broadcast %86 : vector<4x8x1xf32> to vector<4x8x8xf32>
    %88 = arith.subf %84, %87 : vector<4x8x8xf32>
    %89 = math.exp %88 : vector<4x8x8xf32>
    %cst_35 = arith.constant dense<0.000000e+00> : vector<4x8xf32>
    %90 = vector.multi_reduction <add>, %89, %cst_35 [2] : vector<4x8x8xf32> to vector<4x8xf32>
    %91 = vector.shape_cast %90 : vector<4x8xf32> to vector<4x8x1xf32>
    %92 = tpu.reciprocal %91 {approx = true} : vector<4x8x1xf32> -> vector<4x8x1xf32>
    %93 = vector.broadcast %92 : vector<4x8x1xf32> to vector<4x8x8xf32>
    %94 = arith.mulf %89, %93 : vector<4x8x8xf32>
    %95 = arith.truncf %94 : vector<4x8x8xf32> to vector<4x8x8xbf16>
    "tpu.trace_start"() <{level = 10 : i32, message = "bqk,bkd->bqd"}> : () -> ()
    %cst_36 = arith.constant dense<0.000000e+00> : vector<4x8x8xf32>
    %96 = tpu.matmul %95, %80, %cst_36 {dimension_numbers = #tpu.dot_dimension_numbers<[2], [1], [1], [2], [0, 0, 0, 1, 1, 2], [0], [0]>} : vector<4x8x8xbf16>, vector<4x8x8xbf16>, vector<4x8x8xf32> -> vector<4x8x8xf32>
    "tpu.trace_stop"() : () -> ()
    %c0_37 = arith.constant 0 : index
    %c0_38 = arith.constant 0 : index
    %c24 = arith.constant 24 : index
    %97 = vector.load %arg26[%c0_37, %c0_38, %c24] : memref<4x8x32xf32, #tpu.memory_space<vmem>>, vector<4x8x8xf32>
    tpu.vector_store %arg26[%c0_37, %c0_38, %c24], %96 {strides = array<i32>} : memref<4x8x32xf32, #tpu.memory_space<vmem>>, vector<4x8x8xf32>,
    %c0_39 = arith.constant 0 : index
    %c0_40 = arith.constant 0 : index
    %c0_41 = arith.constant 0 : index
    %98 = vector.load %arg26[%c0_39, %c0_40, %c0_41] : memref<4x8x32xf32, #tpu.memory_space<vmem>>, vector<4x8x32xf32>
    %99 = vector.shape_cast %98 : vector<4x8x32xf32> to vector<32x32xf32>
    %100 = arith.truncf %99 : vector<32x32xf32> to vector<32x32xbf16>
    %c0_42 = arith.constant 0 : index
    %c0_43 = arith.constant 0 : index
    %c0_44 = arith.constant 0 : index
    %101 = vector.load %arg7[%c0_42, %c0_43, %c0_44] : memref<1x32x32xbf16, #tpu.memory_space<vmem>>, vector<1x32x32xbf16>
    %102 = vector.shape_cast %101 : vector<1x32x32xbf16> to vector<32x32xbf16>
    %cst_45 = arith.constant dense<0.000000e+00> : vector<32x32xf32>
    %103 = tpu.matmul %100, %102, %cst_45 {dimension_numbers = #tpu.dot_dimension_numbers<[1], [0], [0], [1], [0, 0, 1, 1], [], []>} : vector<32x32xbf16>, vector<32x32xbf16>, vector<32x32xf32> -> vector<32x32xf32>
    %c0_46 = arith.constant 0 : index
    %c0_47 = arith.constant 0 : index
    %c0_48 = arith.constant 0 : index
    %104 = vector.load %arg8[%c0_46, %c0_47, %c0_48] : memref<1x1x32xf32, #tpu.memory_space<vmem>>, vector<1x1x32xf32>
    %105 = vector.shape_cast %104 : vector<1x1x32xf32> to vector<1x32xf32>
    %106 = vector.broadcast %105 : vector<1x32xf32> to vector<32x32xf32>
    %107 = arith.addf %103, %106 : vector<32x32xf32>
    %108 = arith.addf %107, %3 : vector<32x32xf32>
    %c0_49 = arith.constant 0 : index
    %c0_50 = arith.constant 0 : index
    %c0_51 = arith.constant 0 : index
    %109 = vector.load %arg9[%c0_49, %c0_50, %c0_51] : memref<1x1x32xf32, #tpu.memory_space<vmem>>, vector<1x1x32xf32>
    %110 = vector.shape_cast %109 : vector<1x1x32xf32> to vector<1x32xf32>
    %c0_52 = arith.constant 0 : index
    %c0_53 = arith.constant 0 : index
    %c0_54 = arith.constant 0 : index
    %111 = vector.load %arg10[%c0_52, %c0_53, %c0_54] : memref<1x1x32xf32, #tpu.memory_space<vmem>>, vector<1x1x32xf32>
    %112 = vector.shape_cast %111 : vector<1x1x32xf32> to vector<1x32xf32>
    %cst_55 = arith.constant dense<0.000000e+00> : vector<32xf32>
    %113 = vector.multi_reduction <add>, %108, %cst_55 [1] : vector<32x32xf32> to vector<32xf32>
    %114 = vector.shape_cast %113 : vector<32xf32> to vector<32x1xf32>
    %cst_56 = arith.constant 3.200000e+01 : f32
    %115 = vector.broadcast %cst_56 : f32 to vector<32x1xf32>
    %116 = arith.divf %114, %115 : vector<32x1xf32>
    %117 = vector.broadcast %116 : vector<32x1xf32> to vector<32x32xf32>
    %118 = arith.subf %108, %117 : vector<32x32xf32>
    %119 = arith.mulf %118, %118 : vector<32x32xf32>
    %cst_57 = arith.constant dense<0.000000e+00> : vector<32xf32>
    %120 = vector.multi_reduction <add>, %119, %cst_57 [1] : vector<32x32xf32> to vector<32xf32>
    %121 = vector.shape_cast %120 : vector<32xf32> to vector<32x1xf32>
    %cst_58 = arith.constant 3.200000e+01 : f32
    %122 = vector.broadcast %cst_58 : f32 to vector<32x1xf32>
    %123 = arith.divf %121, %122 : vector<32x1xf32>
    %cst_59 = arith.constant 9.99999974E-6 : f32
    %124 = vector.broadcast %cst_59 : f32 to vector<32x1xf32>
    %125 = arith.addf %123, %124 : vector<32x1xf32>
    %126 = math.rsqrt %125 : vector<32x1xf32>
    %127 = vector.broadcast %126 : vector<32x1xf32> to vector<32x32xf32>
    %128 = arith.mulf %118, %127 : vector<32x32xf32>
    %129 = vector.broadcast %110 : vector<1x32xf32> to vector<32x32xf32>
    %130 = arith.mulf %128, %129 : vector<32x32xf32>
    %131 = vector.broadcast %112 : vector<1x32xf32> to vector<32x32xf32>
    %132 = arith.addf %130, %131 : vector<32x32xf32>
    %133 = arith.truncf %132 : vector<32x32xf32> to vector<32x32xbf16>
    %c0_60 = arith.constant 0 : index
    %c0_61 = arith.constant 0 : index
    %c0_62 = arith.constant 0 : index
    %134 = vector.load %arg11[%c0_60, %c0_61, %c0_62] : memref<1x32x64xbf16, #tpu.memory_space<vmem>>, vector<1x32x64xbf16>
    %135 = vector.shape_cast %134 : vector<1x32x64xbf16> to vector<32x64xbf16>
    %cst_63 = arith.constant dense<0.000000e+00> : vector<32x64xf32>
    %136 = tpu.matmul %133, %135, %cst_63 {dimension_numbers = #tpu.dot_dimension_numbers<[1], [0], [0], [1], [0, 0, 1, 1], [], []>} : vector<32x32xbf16>, vector<32x64xbf16>, vector<32x64xf32> -> vector<32x64xf32>
    %c0_64 = arith.constant 0 : index
    %c0_65 = arith.constant 0 : index
    %c0_66 = arith.constant 0 : index
    %137 = vector.load %arg12[%c0_64, %c0_65, %c0_66] : memref<1x1x64xf32, #tpu.memory_space<vmem>>, vector<1x1x64xf32>
    %138 = vector.shape_cast %137 : vector<1x1x64xf32> to vector<1x64xf32>
    %139 = vector.broadcast %138 : vector<1x64xf32> to vector<32x64xf32>
    %140 = arith.addf %136, %139 : vector<32x64xf32>
    %141 = arith.mulf %140, %140 : vector<32x64xf32>
    %142 = arith.mulf %140, %141 : vector<32x64xf32>
    %cst_67 = arith.constant 4.471500e-02 : f32
    %143 = vector.broadcast %cst_67 : f32 to vector<32x64xf32>
    %144 = arith.mulf %143, %142 : vector<32x64xf32>
    %145 = arith.addf %140, %144 : vector<32x64xf32>
    %cst_68 = arith.constant 0.797884583 : f32
    %146 = vector.broadcast %cst_68 : f32 to vector<32x64xf32>
    %147 = arith.mulf %146, %145 : vector<32x64xf32>
    %148 = math.tanh %147 : vector<32x64xf32>
    %cst_69 = arith.constant 1.000000e+00 : f32
    %149 = vector.broadcast %cst_69 : f32 to vector<32x64xf32>
    %150 = arith.addf %149, %148 : vector<32x64xf32>
    %cst_70 = arith.constant 5.000000e-01 : f32
    %151 = vector.broadcast %cst_70 : f32 to vector<32x64xf32>
    %152 = arith.mulf %151, %150 : vector<32x64xf32>
    %153 = arith.mulf %140, %152 : vector<32x64xf32>
    %154 = arith.truncf %153 : vector<32x64xf32> to vector<32x64xbf16>
    %c0_71 = arith.constant 0 : index
    %c0_72 = arith.constant 0 : index
    %c0_73 = arith.constant 0 : index
    %155 = vector.load %arg13[%c0_71, %c0_72, %c0_73] : memref<1x64x32xbf16, #tpu.memory_space<vmem>>, vector<1x64x32xbf16>
    %156 = vector.shape_cast %155 : vector<1x64x32xbf16> to vector<64x32xbf16>
    %cst_74 = arith.constant dense<0.000000e+00> : vector<32x32xf32>
    %157 = tpu.matmul %154, %156, %cst_74 {dimension_numbers = #tpu.dot_dimension_numbers<[1], [0], [0], [1], [0, 0, 1, 1], [], []>} : vector<32x64xbf16>, vector<64x32xbf16>, vector<32x32xf32> -> vector<32x32xf32>
    %c0_75 = arith.constant 0 : index
    %c0_76 = arith.constant 0 : index
    %c0_77 = arith.constant 0 : index
    %158 = vector.load %arg14[%c0_75, %c0_76, %c0_77] : memref<1x1x32xf32, #tpu.memory_space<vmem>>, vector<1x1x32xf32>
    %159 = vector.shape_cast %158 : vector<1x1x32xf32> to vector<1x32xf32>
    %160 = vector.broadcast %159 : vector<1x32xf32> to vector<32x32xf32>
    %161 = arith.addf %157, %160 : vector<32x32xf32>
    %162 = arith.addf %161, %132 : vector<32x32xf32>
    %c0_78 = arith.constant 0 : index
    %c0_79 = arith.constant 0 : index
    %c0_80 = arith.constant 0 : index
    %163 = vector.load %arg15[%c0_78, %c0_79, %c0_80] : memref<1x1x32xf32, #tpu.memory_space<vmem>>, vector<1x1x32xf32>
    %164 = vector.shape_cast %163 : vector<1x1x32xf32> to vector<1x32xf32>
    %c0_81 = arith.constant 0 : index
    %c0_82 = arith.constant 0 : index
    %c0_83 = arith.constant 0 : index
    %165 = vector.load %arg16[%c0_81, %c0_82, %c0_83] : memref<1x1x32xf32, #tpu.memory_space<vmem>>, vector<1x1x32xf32>
    %166 = vector.shape_cast %165 : vector<1x1x32xf32> to vector<1x32xf32>
    %cst_84 = arith.constant dense<0.000000e+00> : vector<32xf32>
    %167 = vector.multi_reduction <add>, %162, %cst_84 [1] : vector<32x32xf32> to vector<32xf32>
    %168 = vector.shape_cast %167 : vector<32xf32> to vector<32x1xf32>
    %cst_85 = arith.constant 3.200000e+01 : f32
    %169 = vector.broadcast %cst_85 : f32 to vector<32x1xf32>
    %170 = arith.divf %168, %169 : vector<32x1xf32>
    %171 = vector.broadcast %170 : vector<32x1xf32> to vector<32x32xf32>
    %172 = arith.subf %162, %171 : vector<32x32xf32>
    %173 = arith.mulf %172, %172 : vector<32x32xf32>
    %cst_86 = arith.constant dense<0.000000e+00> : vector<32xf32>
    %174 = vector.multi_reduction <add>, %173, %cst_86 [1] : vector<32x32xf32> to vector<32xf32>
    %175 = vector.shape_cast %174 : vector<32xf32> to vector<32x1xf32>
    %cst_87 = arith.constant 3.200000e+01 : f32
    %176 = vector.broadcast %cst_87 : f32 to vector<32x1xf32>
    %177 = arith.divf %175, %176 : vector<32x1xf32>
    %cst_88 = arith.constant 9.99999974E-6 : f32
    %178 = vector.broadcast %cst_88 : f32 to vector<32x1xf32>
    %179 = arith.addf %177, %178 : vector<32x1xf32>
    %180 = math.rsqrt %179 : vector<32x1xf32>
    %181 = vector.broadcast %180 : vector<32x1xf32> to vector<32x32xf32>
    %182 = arith.mulf %172, %181 : vector<32x32xf32>
    %183 = vector.broadcast %164 : vector<1x32xf32> to vector<32x32xf32>
    %184 = arith.mulf %182, %183 : vector<32x32xf32>
    %185 = vector.broadcast %166 : vector<1x32xf32> to vector<32x32xf32>
    %186 = arith.addf %184, %185 : vector<32x32xf32>
    %c0_89 = arith.constant 0 : index
    %c0_90 = arith.constant 0 : index
    %187 = vector.load %arg25[%c0_89, %c0_90] : memref<32x32xf32, #tpu.memory_space<vmem>>, vector<32x32xf32>
    tpu.vector_store %arg25[%c0_89, %c0_90], %186 {strides = array<i32>} : memref<32x32xf32, #tpu.memory_space<vmem>>, vector<32x32xf32>,
    %c1_i32 = arith.constant 1 : i32
    %188 = arith.cmpi eq, %arg0, %c1_i32 : i32
    %189 = arith.extui %188 : i1 to i32
    %c0_i32_91 = arith.constant 0 : i32
    %190 = arith.cmpi ne, %189, %c0_i32_91 : i32
    scf.if %190 {
      %c0_92 = arith.constant 0 : index
      %c0_93 = arith.constant 0 : index
      %191 = tpu.strided_load %arg25[%c0_92, %c0_93] {strides = array<i32: 8, 1>} : memref<32x32xf32, #tpu.memory_space<vmem>>, vector<4x32xf32>
      %192 = arith.truncf %191 : vector<4x32xf32> to vector<4x32xbf16>
      %c0_94 = arith.constant 0 : index
      %c0_95 = arith.constant 0 : index
      %193 = vector.load %arg17[%c0_94, %c0_95] : memref<32x32xbf16, #tpu.memory_space<vmem>>, vector<32x32xbf16>
      %cst_96 = arith.constant dense<0.000000e+00> : vector<4x32xf32>
      %194 = tpu.matmul %192, %193, %cst_96 {dimension_numbers = #tpu.dot_dimension_numbers<[1], [0], [0], [1], [0, 0, 1, 1], [], []>} : vector<4x32xbf16>, vector<32x32xbf16>, vector<4x32xf32> -> vector<4x32xf32>
      %c0_97 = arith.constant 0 : index
      %c0_98 = arith.constant 0 : index
      %195 = vector.load %arg18[%c0_97, %c0_98] : memref<1x32xf32, #tpu.memory_space<vmem>>, vector<1x32xf32>
      %196 = vector.broadcast %195 : vector<1x32xf32> to vector<4x32xf32>
      %197 = arith.addf %194, %196 : vector<4x32xf32>
      %198 = math.tanh %197 : vector<4x32xf32>
      %199 = vector.extract_strided_slice %198 {offsets = [0, 0], sizes = [2, 32], strides = [1, 1]} : vector<4x32xf32> to vector<2x32xf32>
      %200 = arith.truncf %199 : vector<2x32xf32> to vector<2x32xbf16>
      %201 = vector.extract_strided_slice %198 {offsets = [2, 0], sizes = [2, 32], strides = [1, 1]} : vector<4x32xf32> to vector<2x32xf32>
      %202 = arith.truncf %201 : vector<2x32xf32> to vector<2x32xbf16>
      %c0_99 = arith.constant 0 : index
      %c0_100 = arith.constant 0 : index
      %203 = vector.load %arg19[%c0_99, %c0_100] : memref<32x64xbf16, #tpu.memory_space<vmem>>, vector<32x64xbf16>
      %cst_101 = arith.constant dense<0.000000e+00> : vector<2x64xf32>
      %204 = tpu.matmul %200, %203, %cst_101 {dimension_numbers = #tpu.dot_dimension_numbers<[1], [0], [0], [1], [0, 0, 1, 1], [], []>} : vector<2x32xbf16>, vector<32x64xbf16>, vector<2x64xf32> -> vector<2x64xf32>
      %c0_102 = arith.constant 0 : index
      %c0_103 = arith.constant 0 : index
      %205 = vector.load %arg20[%c0_102, %c0_103] : memref<32x64xbf16, #tpu.memory_space<vmem>>, vector<32x64xbf16>
      %cst_104 = arith.constant dense<0.000000e+00> : vector<2x64xf32>
      %206 = tpu.matmul %202, %205, %cst_104 {dimension_numbers = #tpu.dot_dimension_numbers<[1], [0], [0], [1], [0, 0, 1, 1], [], []>} : vector<2x32xbf16>, vector<32x64xbf16>, vector<2x64xf32> -> vector<2x64xf32>
      %207 = arith.addf %204, %206 : vector<2x64xf32>
      %c0_105 = arith.constant 0 : index
      %c0_106 = arith.constant 0 : index
      %208 = vector.load %arg21[%c0_105, %c0_106] : memref<1x64xf32, #tpu.memory_space<vmem>>, vector<1x64xf32>
      %209 = vector.broadcast %208 : vector<1x64xf32> to vector<2x64xf32>
      %210 = arith.addf %207, %209 : vector<2x64xf32>
      %211 = arith.truncf %210 : vector<2x64xf32> to vector<2x64xbf16>
      %c0_107 = arith.constant 0 : index
      %c0_108 = arith.constant 0 : index
      %212 = vector.load %arg22[%c0_107, %c0_108] : memref<64x128xbf16, #tpu.memory_space<vmem>>, vector<64x128xbf16>
      %cst_109 = arith.constant dense<0.000000e+00> : vector<2x128xf32>
      %213 = tpu.matmul %211, %212, %cst_109 {dimension_numbers = #tpu.dot_dimension_numbers<[1], [0], [0], [1], [0, 0, 1, 1], [], []>} : vector<2x64xbf16>, vector<64x128xbf16>, vector<2x128xf32> -> vector<2x128xf32>
      %c0_110 = arith.constant 0 : index
      %c0_111 = arith.constant 0 : index
      %214 = vector.load %arg23[%c0_110, %c0_111] : memref<1x128xf32, #tpu.memory_space<vmem>>, vector<1x128xf32>
      %215 = vector.broadcast %214 : vector<1x128xf32> to vector<2x128xf32>
      %216 = arith.addf %213, %215 : vector<2x128xf32>
      %c0_112 = arith.constant 0 : index
      %c0_113 = arith.constant 0 : index
      %217 = vector.load %arg24[%c0_112, %c0_113] : memref<2x128xf32, #tpu.memory_space<vmem>>, vector<2x128xf32>
      tpu.vector_store %arg24[%c0_112, %c0_113], %216 {strides = array<i32>} : memref<2x128xf32, #tpu.memory_space<vmem>>, vector<2x128xf32>,
    } else {
    }
    return
  }
  func.func @transform_0(%arg0: i32) -> (i32, i32) {
    %c0_i32 = arith.constant 0 : i32
    %c0_i32_0 = arith.constant 0 : i32
    %c0_i32_1 = arith.constant 0 : i32
    return %c0_i32, %c0_i32_0 : i32, i32
  }
  func.func @transform_1(%arg0: i32) -> (i32, i32) {
    %c0_i32 = arith.constant 0 : i32
    %c0_i32_0 = arith.constant 0 : i32
    %c0_i32_1 = arith.constant 0 : i32
    return %c0_i32, %c0_i32_0 : i32, i32
  }
  func.func @transform_2(%arg0: i32) -> (i32, i32) {
    %c0_i32 = arith.constant 0 : i32
    %c0_i32_0 = arith.constant 0 : i32
    %c0_i32_1 = arith.constant 0 : i32
    return %c0_i32, %c0_i32_0 : i32, i32
  }
  func.func @transform_3(%arg0: i32) -> (i32, i32) {
    %c0_i32 = arith.constant 0 : i32
    %c0_i32_0 = arith.constant 0 : i32
    %c0_i32_1 = arith.constant 0 : i32
    return %c0_i32, %c0_i32_0 : i32, i32
  }
  func.func @transform_4(%arg0: i32) -> (i32, i32, i32) {
    %c0_i32 = arith.constant 0 : i32
    %c0_i32_0 = arith.constant 0 : i32
    %c0_i32_1 = arith.constant 0 : i32
    return %arg0, %c0_i32, %c0_i32_0 : i32, i32, i32
  }
  func.func @transform_5(%arg0: i32) -> (i32, i32, i32) {
    %c0_i32 = arith.constant 0 : i32
    %c0_i32_0 = arith.constant 0 : i32
    %c0_i32_1 = arith.constant 0 : i32
    return %arg0, %c0_i32, %c0_i32_0 : i32, i32, i32
  }
  func.func @transform_6(%arg0: i32) -> (i32, i32, i32) {
    %c0_i32 = arith.constant 0 : i32
    %c0_i32_0 = arith.constant 0 : i32
    %c0_i32_1 = arith.constant 0 : i32
    return %arg0, %c0_i32, %c0_i32_0 : i32, i32, i32
  }
  func.func @transform_7(%arg0: i32) -> (i32, i32, i32) {
    %c0_i32 = arith.constant 0 : i32
    %c0_i32_0 = arith.constant 0 : i32
    %c0_i32_1 = arith.constant 0 : i32
    return %arg0, %c0_i32, %c0_i32_0 : i32, i32, i32
  }
  func.func @transform_8(%arg0: i32) -> (i32, i32, i32) {
    %c0_i32 = arith.constant 0 : i32
    %c0_i32_0 = arith.constant 0 : i32
    %c0_i32_1 = arith.constant 0 : i32
    return %arg0, %c0_i32, %c0_i32_0 : i32, i32, i32
  }
  func.func @transform_9(%arg0: i32) -> (i32, i32, i32) {
    %c0_i32 = arith.constant 0 : i32
    %c0_i32_0 = arith.constant 0 : i32
    %c0_i32_1 = arith.constant 0 : i32
    return %arg0, %c0_i32, %c0_i32_0 : i32, i32, i32
  }
  func.func @transform_10(%arg0: i32) -> (i32, i32, i32) {
    %c0_i32 = arith.constant 0 : i32
    %c0_i32_0 = arith.constant 0 : i32
    %c0_i32_1 = arith.constant 0 : i32
    return %arg0, %c0_i32, %c0_i32_0 : i32, i32, i32
  }
  func.func @transform_11(%arg0: i32) -> (i32, i32, i32) {
    %c0_i32 = arith.constant 0 : i32
    %c0_i32_0 = arith.constant 0 : i32
    %c0_i32_1 = arith.constant 0 : i32
    return %arg0, %c0_i32, %c0_i32_0 : i32, i32, i32
  }
  func.func @transform_12(%arg0: i32) -> (i32, i32, i32) {
    %c0_i32 = arith.constant 0 : i32
    %c0_i32_0 = arith.constant 0 : i32
    %c0_i32_1 = arith.constant 0 : i32
    return %arg0, %c0_i32, %c0_i32_0 : i32, i32, i32
  }
  func.func @transform_13(%arg0: i32) -> (i32, i32, i32) {
    %c0_i32 = arith.constant 0 : i32
    %c0_i32_0 = arith.constant 0 : i32
    %c0_i32_1 = arith.constant 0 : i32
    return %arg0, %c0_i32, %c0_i32_0 : i32, i32, i32
  }
  func.func @transform_14(%arg0: i32) -> (i32, i32, i32) {
    %c0_i32 = arith.constant 0 : i32
    %c0_i32_0 = arith.constant 0 : i32
    %c0_i32_1 = arith.constant 0 : i32
    return %arg0, %c0_i32, %c0_i32_0 : i32, i32, i32
  }
  func.func @transform_15(%arg0: i32) -> (i32, i32, i32) {
    %c0_i32 = arith.constant 0 : i32
    %c0_i32_0 = arith.constant 0 : i32
    %c0_i32_1 = arith.constant 0 : i32
    return %arg0, %c0_i32, %c0_i32_0 : i32, i32, i32
  }
  func.func @transform_16(%arg0: i32) -> (i32, i32) {
    %c0_i32 = arith.constant 0 : i32
    %c0_i32_0 = arith.constant 0 : i32
    %c0_i32_1 = arith.constant 0 : i32
    return %c0_i32, %c0_i32_0 : i32, i32
  }
  func.func @transform_17(%arg0: i32) -> (i32, i32) {
    %c0_i32 = arith.constant 0 : i32
    %c0_i32_0 = arith.constant 0 : i32
    %c0_i32_1 = arith.constant 0 : i32
    return %c0_i32, %c0_i32_0 : i32, i32
  }
  func.func @transform_18(%arg0: i32) -> (i32, i32) {
    %c0_i32 = arith.constant 0 : i32
    %c0_i32_0 = arith.constant 0 : i32
    %c0_i32_1 = arith.constant 0 : i32
    return %c0_i32, %c0_i32_0 : i32, i32
  }
  func.func @transform_19(%arg0: i32) -> (i32, i32) {
    %c0_i32 = arith.constant 0 : i32
    %c0_i32_0 = arith.constant 0 : i32
    %c0_i32_1 = arith.constant 0 : i32
    return %c0_i32, %c0_i32_0 : i32, i32
  }
  func.func @transform_20(%arg0: i32) -> (i32, i32) {
    %c0_i32 = arith.constant 0 : i32
    %c0_i32_0 = arith.constant 0 : i32
    %c0_i32_1 = arith.constant 0 : i32
    return %c0_i32, %c0_i32_0 : i32, i32
  }
  func.func @transform_21(%arg0: i32) -> (i32, i32) {
    %c0_i32 = arith.constant 0 : i32
    %c0_i32_0 = arith.constant 0 : i32
    %c0_i32_1 = arith.constant 0 : i32
    return %c0_i32, %c0_i32_0 : i32, i32
  }
  func.func @transform_22(%arg0: i32) -> (i32, i32) {
    %c0_i32 = arith.constant 0 : i32
    %c0_i32_0 = arith.constant 0 : i32
    %c0_i32_1 = arith.constant 0 : i32
    return %c0_i32, %c0_i32_0 : i32, i32
  }
  func.func @transform_23(%arg0: i32) -> (i32, i32) {
    %c0_i32 = arith.constant 0 : i32
    %c0_i32_0 = arith.constant 0 : i32
    %c0_i32_1 = arith.constant 0 : i32
    return %c0_i32, %c0_i32_0 : i32, i32
  }
}

</mosaic_0001>

<bundles_post_ra>
// kernel: tpu_custom_call.1
= control target key start
LH: loop header
LB: loop body
LE: loop exit
PB: predicated region body
PF: predicated region fallthrough
CT: control target
= control target key end

     0   :  { %s6673_s0 = inlined_call_operand.vmem [shape: f32[32,32], index: 0, kind: input, shape index: {}]   ;;  %s6674_s1 = inlined_call_operand.hbm [shape: f32[4,8], index: 1, kind: input, shape index: {}]   ;;  %s6675_s2 = inlined_call_operand.hbm [shape: f32[1,32], index: 2, kind: input, shape index: {}]   ;;  %s6676_s3 = inlined_call_operand.hbm [shape: f32[1,32], index: 3, kind: input, shape index: {}]   ;;  %s6677_s4 = inlined_call_operand.vmem [shape: bf16[2,32,96], index: 4, kind: input, shape index: {}]   ;;  %s6678_s5 = inlined_call_operand.hbm [shape: f32[2,1,96], index: 5, kind: input, shape index: {}]   ;;  %s6679_s6 = inlined_call_operand.vmem [shape: bf16[2,32,32], index: 6, kind: input, shape index: {}]   ;;  %s6680_s7 = inlined_call_operand.hbm [shape: f32[2,1,32], index: 7, kind: input, shape index: {}]   ;;  %s6681_s8 = inlined_call_operand.hbm [shape: f32[2,1,32], index: 8, kind: input, shape index: {}]   ;;  %s6682_s9 = inlined_call_operand.hbm [shape: f32[2,1,32], index: 9, kind: input, shape index: {}]   ;;  %s6683_s10 = inlined_call_operand.hbm [shape: bf16[2,32,64], index: 10, kind: input, shape index: {}]   ;;  %s6684_s11 = inlined_call_operand.hbm [shape: f32[2,1,64], index: 11, kind: input, shape index: {}]   ;;  %s6685_s12 = inlined_call_operand.vmem [shape: bf16[2,64,32], index: 12, kind: input, shape index: {}]   ;;  %s6686_s13 = inlined_call_operand.hbm [shape: f32[2,1,32], index: 13, kind: input, shape index: {}]   ;;  %s6687_s14 = inlined_call_operand.hbm [shape: f32[2,1,32], index: 14, kind: input, shape index: {}]   ;;  %s6688_s15 = inlined_call_operand.hbm [shape: f32[2,1,32], index: 15, kind: input, shape index: {}]   ;;  %s6689_s16 = inlined_call_operand.hbm [shape: bf16[32,32], index: 16, kind: input, shape index: {}]   ;;  %s6690_s17 = inlined_call_operand.hbm [shape: f32[1,32], index: 17, kind: input, shape index: {}]   ;;  %s6691_s18 = inlined_call_operand.hbm [shape: bf16[32,64], index: 18, kind: input, shape index: {}]   ;;  %s6692_s19 = inlined_call_operand.hbm [shape: bf16[32,64], index: 19, kind: input, shape index: {}]   ;;  %s6693_s20 = inlined_call_operand.vmem [shape: f32[1,64], index: 20, kind: input, shape index: {}]   ;;  %s6694_s21 = inlined_call_operand.vmem [shape: bf16[64,128], index: 21, kind: input, shape index: {}]   ;;  %s6695_s22 = inlined_call_operand.vmem [shape: f32[1,128], index: 22, kind: input, shape index: {}]   ;;  %s6696_s23 = inlined_call_operand.hbm [shape: f32[2,128], index: 23, kind: output, shape index: {}]  }
   0x1   :  { %6729 = sst [smem:[#allocation49_spill]] %s6673_s0 }
   0x2   :  { %6730 = sst [smem:[#allocation50_spill]] %s6674_s1 }
   0x3   :  { %6731 = sst [smem:[#allocation51_spill]] %s6675_s2 }
   0x4   :  { %6732 = sst [smem:[#allocation52_spill]] %s6676_s3 }
   0x5   :  { %6733 = sst [smem:[#allocation53_spill]] %s6677_s4 }
   0x6   :  { %6734 = sst [smem:[#allocation54_spill]] %s6678_s5 }
   0x7   :  { %6735 = sst [smem:[#allocation55_spill]] %s6679_s6 }
   0x8   :  { %6736 = sst [smem:[#allocation56_spill]] %s6680_s7 }
   0x9   :  { %6737 = sst [smem:[#allocation57_spill]] %s6685_s12 }
   0xa   :  { %6738 = sst [smem:[#allocation58_spill]] %s6689_s16 }
   0xb   :  { %6739 = sst [smem:[#allocation59_spill]] %s6690_s17 }
   0xc   :  { %6740 = sst [smem:[#allocation60_spill]] %s6693_s20 }
   0xd   :  { %6741 = sst [smem:[#allocation61_spill]] %s6694_s21 }
   0xe   :  { %6742 = sst [smem:[#allocation62_spill]] %s6695_s22 }
   0xf   :  { %6743 = sst [smem:[#allocation63_spill]] %s6696_s23 }
  0x10   :  { %28 = vsyncpa [#allocation5], 0 }
  0x11   :  { %29 = vsyncpa [#allocation8], 0 }
  0x12   :  { %30 = vsyncpa [#allocation11], 0 }
  0x13   :  { %32 = vsyncpa [#allocation11 + $0x1], 0 }
  0x14   :  { %33 = vsyncpa [#allocation14], 0 }
  0x15   :  { %35 = vsyncpa [#allocation14 + $0x1], 0 }
  0x16   :  { %36 = vsyncpa [#allocation17], 0 }
  0x17   :  { %38 = vsyncpa [#allocation17 + $0x1], 0 }
  0x18   :  { %39 = vsyncpa [#allocation20], 0 }
  0x19   :  { %41 = vsyncpa [#allocation20 + $0x1], 0 }
  0x1a   :  { %42 = vsyncpa [#allocation23], 0 }
  0x1b   :  { %44 = vsyncpa [#allocation23 + $0x1], 0 }
  0x1c   :  { %45 = vsyncpa [#allocation26], 0 }
  0x1d   :  { %46 = vsyncpa [#allocation29], 0 }
  0x1e   :  { %47 = vsyncpa [#allocation6], 0  ;;  %s5742_s4 = smov 0   ;;  %s5744_s30 = smov 0  }
  0x1f   :  { %s5746_s24 = smov 0   ;;  %s5748_s25 = smov 0  }
  0x20 LB: > { %6744 = sst [smem:[#allocation42_spill]] %s5574_s30  ;;  %s5584_s5 = smov [#allocation7]   ;;  %s5582_s25 = sphi %s5748_s25, %s6811_s25   ;;  %s5578_s24 = sphi %s5746_s24, %s6814_s24   ;;  %s5574_s30 = sphi %s5744_s30, %s6813_s30   ;;  %s5570_s4 = sphi %s5742_s4, %s6812_s4  }
  0x21   : > { %6745 = sst [smem:[#allocation43_spill]] %s5578_s24  ;;  %s649_s1 = sshll.u32 %s5584_s5, 4  ;;  %s650_s1 = int_to_ptr.vmem [resolvable:$true] %s649_s1 }
  0x22   : > { %s5763_s26 = sadd.s32 4294967295, %s5582_s25   ;;  %p4267_p0 = scmp.ge.s32.totalorder %s5582_s25, 1 }
  0x23   : > { %6746 = sst [smem:[#allocation44_spill]] %s5763_s26  ;;  %p6710_p1 = scmp.eq.s32.totalorder %s5763_s26, 0 }
  0x24   : > { %p622_p2 = scmp.lt.s32.totalorder %s5582_s25, 3  ;;  %s5585_s6 = smov [#allocation24]  }
  0x25   : > { %s670_s27 = sshll.u32 %s5585_s6, 4  ;;  %s5586_s28 = smov [#allocation25]   ;;  %s5775_s27 = int_to_ptr.vmem [resolvable:$true] %s670_s27 }
  0x26   : > { %p5769_p4 = pnand %p4267_p0, %p622_p2  ;;  %s684_s29 = sshll.u32 %s5586_s28, 4  ;;  %s5783_s29 = int_to_ptr.vmem [resolvable:$true] %s684_s29 }
  0x27   : > { %s5061_s0 = scalar_lea.vmem %s650_s1, 16  ;;  %s5068_s5 = scalar_lea.vmem %s650_s1, 32 }
  0x28   : > { %s6747_s2 = scalar_select %p5769_p4, 1, 0 }
  0x29   : > { %p4800_p5 = pneg %p5769_p4  ;;  %p5062_p8 = scmp.ne.s32.totalorder %s650_s1, %s5061_s0 }
  0x2a   : > { %6748 = sst [smem:[#allocation45_spill]] %s6747_s2  ;;  %p5069_p11 = scmp.lt.s32.totalorder %s650_s1, %s650_s1 }
  0x2b   : > { %p5779_p6 = pnand %p4800_p5, %p6710_p1  ;;  %p5070_p12 = scmp.lt.s32.totalorder %s5068_s5, %s5061_s0 }
  0x2d   : > { %s6749_s7 = scalar_select %p5779_p6, 1, 0 }
  0x2e   : > { %p5787_p7 = pneg %p5779_p6  ;;  %p5071_p13 = por %p5070_p12, %p5069_p11 }
  0x30   : > { %s6750_s3 = scalar_select %p5787_p7, 1, 0 }
  0x31   : > { %p5064_p9 = pnand %p5062_p8, %p5787_p7 }
  0x33   : > { %p5065_p10 = pneg %p5064_p9 }
  0x35   : > { %p5072_p0 = pnand %p5071_p13, %p5065_p10 }
  0x37   : > { %5075 = shalt.err (!%p5072_p0)
}
  0x38   : > { %s6751_s23 = sld [smem:[#allocation51_spill]]  ;;  %s5087_s22 = scalar_lea.vmem %s5775_s27, 256 }
  0x39   : > { %p5088_p2 = scmp.ne.s32.totalorder %s5775_s27, %s5087_s22  ;;  %p5095_p9 = scmp.lt.s32.totalorder %s5775_s27, %s5775_s27 }
  0x3a   : > { %p5096_p11 = scmp.lt.s32.totalorder %s5087_s22, %s5087_s22 }
  0x3b   : > { %p5090_p5 = pnand %p5088_p2, %p5787_p7 }
  0x3c   : > { %p5097_p10 = por %p5096_p11, %p5095_p9 }
  0x3d   : > { %p5091_p8 = pneg %p5090_p5 }
  0x3e   : > { %4806 = dma.hbm_to_vmem [thread:$0]  (!%p5779_p6), %s6751_s23, 16, %s650_s1, [#allocation8]  }
  0x3f   : > { %p5098_p12 = pnand %p5097_p10, %p5091_p8 }
  0x41   : > { %5101 = shalt.err (!%p5098_p12)
}
  0x42   : > { %s6700_s0 = smov 64   ;;  %s6702_s23 = smov 4  }
  0x43   : > { %s6752_s16 = sld [smem:[#allocation58_spill]]  ;;  %s5113_s22 = scalar_lea.vmem %s5783_s29, 16 }
  0x44   : > { %p5114_p13 = scmp.ne.s32.totalorder %s5783_s29, %s5113_s22  ;;  %s5120_s6 = scalar_lea.vmem %s5783_s29, 32 }
  0x45   : > { %p5121_p5 = scmp.lt.s32.totalorder %s5783_s29, %s5783_s29  ;;  %p5122_p8 = scmp.lt.s32.totalorder %s5120_s6, %s5113_s22 }
  0x46   : > { %p5116_p0 = pnand %p5114_p13, %p5787_p7 }
  0x47   : > { %p5123_p9 = por %p5122_p8, %p5121_p5 }
  0x48   : > { %p5117_p2 = pneg %p5116_p0 }
  0x49   : > { %4812 = dma.hbm_to_vmem [thread:$0]  (!%p5779_p6), %s6752_s16, 256, %s5775_s27, [#allocation23], %s6700_s0, %s6700_s0, %s6702_s23  }
  0x4a   : > { %p5124_p11 = pnand %p5123_p9, %p5117_p2 }
  0x4c   : > { %5127 = shalt.err (!%p5124_p11)
}
  0x4d   : > { %s6753_s17 = sld [smem:[#allocation59_spill]]  ;;  %s5827_s27 = sadd.s32 1, %s5582_s25  }
  0x4e   : > { %6754 = sst [smem:[#allocation46_spill]] %s5827_s27  ;;  %s167_s1 = ssub.s32 %s5582_s25, %s5827_s27 }
  0x4f   : > { %s170_s20 = sadd.s32 1, %s5578_s24  ;;  %p168_p10 = scmp.eq.s32.totalorder %s167_s1, 0 }
  0x50   : > { %p177_p12 = scmp.ne.s32.totalorder %s5578_s24, %s5574_s30  ;;  %p178_p13 = scmp.eq.s32.totalorder %s5582_s25, 0 }
  0x51   : > { %p183_p0 = scmp.ne.s32.totalorder %s5574_s30, %s5570_s4  ;;  %p4857_p8 = scmp.lt.s32.totalorder %s5582_s25, 2 }
  0x52   : > { %s5838_s5 = scalar_select %p168_p10, %s5578_s24, %s170_s20  }
  0x53   : > { %4815 = dma.hbm_to_vmem [thread:$0]  (!%p5779_p6), %s6753_s17, 16, %s5783_s29, [#allocation26]  }
  0x54   : > { %6755 = sst [smem:[#allocation47_spill]] %s5838_s5  ;;  %p179_p2 = por %p178_p13, %p177_p12 }
  0x55   : > { %p5842_p5 = por %p6710_p1, %p183_p0  ;;  %s5848_s6 = sand.u32 1, %s5582_s25  }
  0x56   : > { %s5851_s29 = sand.u32 1, %s5578_s24   ;;  %s5854_s28 = sshll.u32 %s5582_s25, 4 }
  0x57   : > { %s6756_s22 = scalar_select %p5842_p5, 1, 0 }
  0x58   : > { %s6758_s20 = sld [smem:[#allocation54_spill]]  ;;  %s741_s23 = scalar_lea.vmem [#allocation10], %s5851_s29 }
  0x59   : > { %6757 = sst [smem:[#allocation48_spill]] %s6756_s22  ;;  %s748_s16 = sshll.u32 %s741_s23, 4  ;;  %s5863_s16 = int_to_ptr.vmem [resolvable:$true] %s748_s16 }
  0x5a   : > { %p5865_p9 = pnand %p4857_p8, %p179_p2  ;;  %s5873_s27 = scalar_lea.hbm %s6681_s8, %s5854_s28 }
  0x5c   : > { %s6759_s17 = scalar_select %p5865_p9, 1, 0 }
  0x5d   : > { %p5880_p10 = pneg %p5865_p9 }
  0x5e   : > { %s5860_s0 = scalar_lea.hbm %s6758_s20, %s5854_s28  ;;  %s5133_s22 = scalar_lea.hbm %s6758_s20, 32 }
  0x5f   : > { %s5128_s4 = scalar_lea.hbm %s5860_s0, 16  ;;  %p5134_p0 = scmp.lt.s32.totalorder %s5860_s0, %s6758_s20 }
  0x60   : > { %p5129_p11 = scmp.ne.s32.totalorder %s5860_s0, %s5128_s4  ;;  %p5135_p2 = scmp.lt.s32.totalorder %s5133_s22, %s5128_s4 }
  0x61   : > { %s6760_s21 = scalar_select %p5880_p10, 1, 0 }
  0x62   : > { %p5131_p12 = pnand %p5880_p10, %p5129_p11  ;;  %p5136_p8 = por %p5135_p2, %p5134_p0 }
  0x64   : > { %p5132_p13 = pneg %p5131_p12 }
  0x66   : > { %p5137_p3 = pnand %p5136_p8, %p5132_p13 }
  0x68   : > { %5140 = shalt.err (!%p5137_p3)
}
  0x69   : > { %s5141_s1 = scalar_lea.vmem %s5863_s16, 16  ;;  %s5589_s30 = smov [#allocation10]  }
  0x6a   : > { %p5142_p1 = scmp.ne.s32.totalorder %s5863_s16, %s5141_s1  ;;  %s5146_s12 = sshll.u32 %s5589_s30, 4  ;;  %s5147_s12 = int_to_ptr.vmem [resolvable:$false] %s5146_s12 }
  0x6b   : > { %s5148_s23 = scalar_lea.vmem %s5147_s12, 32  ;;  %p5149_p5 = scmp.lt.s32.totalorder %s5863_s16, %s5147_s12 }
  0x6c   : > { %p5144_p11 = pnand %p5142_p1, %p5880_p10  ;;  %p5150_p4 = scmp.lt.s32.totalorder %s5148_s23, %s5141_s1 }
  0x6e   : > { %p5145_p12 = pneg %p5144_p11  ;;  %p5151_p6 = por %p5150_p4, %p5149_p5 }
  0x70   : > { %p5152_p7 = pnand %p5151_p6, %p5145_p12 }
  0x72   : > { %5155 = shalt.err (!%p5152_p7)
}
  0x73   : > { %s6761_s22 = scalar_lea.sflag [#allocation11], %s5848_s6  ;;  %s783_s30 = scalar_lea.vmem [#allocation13], %s5851_s29 }
  0x74   : > { %4825 = dma.hbm_to_vmem [thread:$0]  (!%p5865_p9), %s5860_s0, 16, %s5863_s16, %s6761_s22  }
  0x75   : > { %s790_s4 = sshll.u32 %s783_s30, 4  ;;  %s4280_s1 = sshll.u32 %s5851_s29, 4  ;;  %s791_s4 = int_to_ptr.vmem [resolvable:$true] %s790_s4 }
  0x76   : > { %s6724_s24 = scalar_lea.sflag [#allocation14], %s5848_s6  ;;  %s5156_s5 = scalar_lea.hbm %s5873_s27, 16 }
  0x77   : > { %p5157_p1 = scmp.ne.s32.totalorder %s5873_s27, %s5156_s5  ;;  %s5161_s20 = scalar_lea.hbm %s6681_s8, 32 }
  0x78   : > { %p5162_p6 = scmp.lt.s32.totalorder %s5873_s27, %s6681_s8  ;;  %p5163_p7 = scmp.lt.s32.totalorder %s5161_s20, %s5156_s5 }
  0x79   : > { %p5159_p3 = pnand %p5157_p1, %p5880_p10 }
  0x7a   : > { %p5164_p5 = por %p5163_p7, %p5162_p6 }
  0x7b   : > { %p5160_p4 = pneg %p5159_p3 }
  0x7d   : > { %p5165_p13 = pnand %p5164_p5, %p5160_p4 }
  0x7f   : > { %5168 = shalt.err (!%p5165_p13)
}
  0x80   : > { %s5169_s16 = scalar_lea.vmem %s791_s4, 16  ;;  %s5590_s0 = smov [#allocation13]  }
  0x81   : > { %p5170_p0 = scmp.ne.s32.totalorder %s791_s4, %s5169_s16  ;;  %s5174_s22 = sshll.u32 %s5590_s0, 4  ;;  %s5175_s22 = int_to_ptr.vmem [resolvable:$false] %s5174_s22 }
  0x82   : > { %s5176_s30 = scalar_lea.vmem %s5175_s22, 32  ;;  %p5177_p11 = scmp.lt.s32.totalorder %s791_s4, %s5175_s22 }
  0x83   : > { %p5172_p2 = pnand %p5170_p0, %p5880_p10  ;;  %p5178_p12 = scmp.lt.s32.totalorder %s5176_s30, %s5169_s16 }
  0x85   : > { %p5173_p8 = pneg %p5172_p2  ;;  %p5179_p1 = por %p5178_p12, %p5177_p11 }
  0x87   : > { %p5180_p3 = pnand %p5179_p1, %p5173_p8 }
  0x89   : > { %5183 = shalt.err (!%p5180_p3)
}
  0x8a   : > { %4831 = dma.hbm_to_vmem [thread:$0]  (!%p5865_p9), %s5873_s27, 16, %s791_s4, %s6724_s24  }
  0x8b   : > { %s4386_s26 = sshll.u32 %s5582_s25, 8  ;;  %s818_s12 = scalar_lea.vmem [#allocation16], %s4280_s1 }
  0x8c   : > { %s5929_s5 = scalar_lea.hbm %s6683_s10, %s4386_s26  ;;  %s825_s23 = sshll.u32 %s818_s12, 4  ;;  %s5931_s23 = int_to_ptr.vmem [resolvable:$true] %s825_s23 }
  0x8d   : > { %s6723_s16 = scalar_lea.sflag [#allocation17], %s5848_s6  ;;  %s5184_s0 = scalar_lea.hbm %s5929_s5, 256 }
  0x8e   : > { %p5185_p4 = scmp.ne.s32.totalorder %s5929_s5, %s5184_s0  ;;  %s5189_s4 = scalar_lea.hbm %s6683_s10, 512 }
  0x8f   : > { %p5190_p5 = scmp.lt.s32.totalorder %s5929_s5, %s6683_s10  ;;  %p5191_p13 = scmp.lt.s32.totalorder %s5189_s4, %s5184_s0 }
  0x90   : > { %p5187_p6 = pnand %p5185_p4, %p5880_p10 }
  0x91   : > { %p5192_p0 = por %p5191_p13, %p5190_p5 }
  0x92   : > { %p5188_p7 = pneg %p5187_p6 }
  0x94   : > { %p5193_p2 = pnand %p5192_p0, %p5188_p7 }
  0x96   : > { %5196 = shalt.err (!%p5193_p2)
}
  0x97   : > { %s5197_s1 = scalar_lea.vmem %s5931_s23, 256  ;;  %s5591_s26 = smov [#allocation16]  }
  0x98   : > { %p5198_p8 = scmp.ne.s32.totalorder %s5931_s23, %s5197_s1  ;;  %s5202_s2 = sshll.u32 %s5591_s26, 4  ;;  %s5203_s2 = int_to_ptr.vmem [resolvable:$false] %s5202_s2 }
  0x99   : > { %s5204_s20 = scalar_lea.vmem %s5203_s2, 512  ;;  %p5205_p1 = scmp.lt.s32.totalorder %s5931_s23, %s5203_s2 }
  0x9a   : > { %p5200_p11 = pnand %p5198_p8, %p5880_p10  ;;  %p5206_p3 = scmp.lt.s32.totalorder %s5204_s20, %s5197_s1 }
  0x9c   : > { %p5201_p12 = pneg %p5200_p11  ;;  %p5207_p4 = por %p5206_p3, %p5205_p1 }
  0x9e   : > { %p5208_p6 = pnand %p5207_p4, %p5201_p12 }
  0xa0   : > { %5211 = shalt.err (!%p5208_p6)
}
  0xa1   : > { %s6762_s12 = smov 4   ;;  %s6763_s0 = smov 64  }
  0xa2   : > { %4837 = dma.hbm_to_vmem [thread:$0]  (!%p5865_p9), %s5929_s5, 256, %s5931_s23, %s6723_s16, %s6763_s0, %s6763_s0, %s6762_s12  }
  0xa3   : > { %s5963_s4 = scalar_lea.hbm %s6686_s13, %s5854_s28  ;;  %s863_s22 = scalar_lea.vmem [#allocation19], %s5851_s29 }
  0xa4   : > { %s870_s30 = sshll.u32 %s863_s22, 4  ;;  %s5592_s1 = smov [#allocation4]   ;;  %s871_s30 = int_to_ptr.vmem [resolvable:$true] %s870_s30 }
  0xa5   : > { %s638_s26 = sshll.u32 %s5592_s1, 4  ;;  %s5212_s20 = scalar_lea.hbm %s5963_s4, 16  ;;  %s639_s26 = int_to_ptr.vmem [resolvable:$true] %s638_s26 }
  0xa6   : > { %p5213_p7 = scmp.ne.s32.totalorder %s5963_s4, %s5212_s20  ;;  %s5217_s27 = scalar_lea.hbm %s6686_s13, 32 }
  0xa7   : > { %p5218_p0 = scmp.lt.s32.totalorder %s5963_s4, %s6686_s13  ;;  %p5219_p2 = scmp.lt.s32.totalorder %s5217_s27, %s5212_s20 }
  0xa8   : > { %p5215_p5 = pnand %p5213_p7, %p5880_p10 }
  0xa9   : > { %p5220_p8 = por %p5219_p2, %p5218_p0 }
  0xaa   : > { %p5216_p13 = pneg %p5215_p5 }
  0xac   : > { %p5221_p11 = pnand %p5220_p8, %p5216_p13 }
  0xae   : > { %5224 = shalt.err (!%p5221_p11)
}
  0xaf   : > { %s5225_s22 = scalar_lea.vmem %s871_s30, 16  ;;  %s5593_s1 = smov [#allocation19]  }
  0xb0   : > { %p5226_p12 = scmp.ne.s32.totalorder %s871_s30, %s5225_s22  ;;  %s5230_s24 = sshll.u32 %s5593_s1, 4  ;;  %s5231_s24 = int_to_ptr.vmem [resolvable:$false] %s5230_s24 }
  0xb1   : > { %s5232_s2 = scalar_lea.vmem %s5231_s24, 32  ;;  %p5233_p4 = scmp.lt.s32.totalorder %s871_s30, %s5231_s24 }
  0xb2   : > { %p5228_p1 = pnand %p5226_p12, %p5880_p10  ;;  %p5234_p6 = scmp.lt.s32.totalorder %s5232_s2, %s5225_s22 }
  0xb4   : > { %p5229_p3 = pneg %p5228_p1  ;;  %p5235_p7 = por %p5234_p6, %p5233_p4 }
  0xb6   : > { %p5236_p5 = pnand %p5235_p7, %p5229_p3 }
  0xb8   : > { %5239 = shalt.err (!%p5236_p5)
}
  0xb9   : > { %s6764_s16 = scalar_lea.sflag [#allocation20], %s5848_s6  ;;  %s5251_s20 = scalar_lea.vmem %s639_s26, 64 }
  0xba   : > { %4843 = dma.hbm_to_vmem [thread:$0]  (!%p5865_p9), %s5963_s4, 16, %s871_s30, %s6764_s16  }
  0xbb   : > { %p5252_p13 = scmp.ne.s32.totalorder %s639_s26, %s5251_s20  ;;  %p6765_p0 = scmp.ne.s32.totalorder %s6750_s3, 0 }
  0xbc   : > { %p5259_p11 = scmp.lt.s32.totalorder %s639_s26, %s639_s26  ;;  %p5260_p12 = scmp.lt.s32.totalorder %s5251_s20, %s5251_s20 }
  0xbd   : > { %p5254_p2 = pnand %p5252_p13, %p6765_p0 }
  0xbe   : > { %p5261_p1 = por %p5260_p12, %p5259_p11 }
  0xbf   : > { %p5255_p8 = pneg %p5254_p2 }
  0xc1   : > { %p5262_p10 = pnand %p5261_p1, %p5255_p8 }
  0xc3   : > { %5265 = shalt.err (!%p5262_p10)
}
  0xc4   : > { %p6766_p3 = scmp.ne.s32.totalorder %s6749_s7, 0  ;;  %s6767_s5 = sld [smem:[#allocation50_spill]] }
  0xc5   : > { %s5594_s23 = smov [#allocation9]   ;;  %s5595_s30 = smov [#allocation27]  }
  0xc6   : > { %s660_s4 = sshll.u32 %s5594_s23, 4  ;;  %s694_s27 = sshll.u32 %s5595_s30, 4  ;;  %s661_s4 = int_to_ptr.vmem [resolvable:$true] %s660_s4  ;;  %s695_s27 = int_to_ptr.vmem [resolvable:$true] %s694_s27 }
  0xc7   : > { %s5277_s25 = scalar_lea.vmem %s661_s4, 16  ;;  %s5284_s22 = scalar_lea.vmem %s661_s4, 32 }
  0xc8   : > { %p5278_p4 = scmp.ne.s32.totalorder %s661_s4, %s5277_s25  ;;  %p5285_p5 = scmp.lt.s32.totalorder %s661_s4, %s661_s4 }
  0xc9   : > { %p5286_p10 = scmp.lt.s32.totalorder %s5284_s22, %s5277_s25 }
  0xca   : > { %4803 = dma.hbm_to_vmem [thread:$0]  (!%p6766_p3), %s6767_s5, 64, %s639_s26, [#allocation5]  }
  0xcb   : > { %p5280_p6 = pnand %p5278_p4, %p6765_p0  ;;  %p5287_p13 = por %p5286_p10, %p5285_p5 }
  0xcd   : > { %p5281_p7 = pneg %p5280_p6 }
  0xcf   : > { %p5288_p2 = pnand %p5287_p13, %p5281_p7 }
  0xd1   : > { %5291 = shalt.err (!%p5288_p2)
}
  0xd2   : > { %s6768_s16 = sld [smem:[#allocation52_spill]]  ;;  %s5303_s20 = scalar_lea.vmem %s695_s27, 256 }
  0xd3   : > { %p5304_p8 = scmp.ne.s32.totalorder %s695_s27, %s5303_s20  ;;  %p5311_p1 = scmp.lt.s32.totalorder %s695_s27, %s695_s27 }
  0xd4   : > { %p5312_p4 = scmp.lt.s32.totalorder %s5303_s20, %s5303_s20 }
  0xd5   : > { %p5306_p11 = pnand %p5304_p8, %p6765_p0 }
  0xd6   : > { %p5313_p6 = por %p5312_p4, %p5311_p1 }
  0xd7   : > { %p5307_p12 = pneg %p5306_p11 }
  0xd8   : > { %4809 = dma.hbm_to_vmem [thread:$0]  (!%p6766_p3), %s6768_s16, 16, %s661_s4, [#allocation8]  }
  0xd9   : > { %p5314_p9 = pnand %p5313_p6, %p5307_p12 }
  0xdb   : > { %5317 = shalt.err (!%p5314_p9)
}
  0xdc   : > { %4818 = dma.hbm_to_vmem [thread:$0]  (!%p6766_p3), %s6691_s18, 256, %s695_s27, [#allocation26], %s6763_s0, %s6763_s0, %s6762_s12  }
  0xdd   : > { %s5596_s5 = smov [#allocation28]   ;;  %s6769_s25 = sld [smem:[#allocation56_spill]] }
  0xde   : > { %s707_s23 = sshll.u32 %s5596_s5, 4  ;;  %s708_s23 = int_to_ptr.vmem [resolvable:$true] %s707_s23 }
  0xdf   : > { %s5329_s26 = scalar_lea.vmem %s708_s23, 256  ;;  %p5337_p10 = scmp.lt.s32.totalorder %s708_s23, %s708_s23 }
  0xe0   : > { %p5330_p9 = scmp.ne.s32.totalorder %s708_s23, %s5329_s26  ;;  %p5338_p13 = scmp.lt.s32.totalorder %s5329_s26, %s5329_s26 }
  0xe2   : > { %p5332_p7 = pnand %p5330_p9, %p6765_p0  ;;  %p5339_p2 = por %p5338_p13, %p5337_p10 }
  0xe3   : > { %s6770_s22 = smov %s6769_s25  ;;  %s6013_s1 = scalar_lea.hbm %s6769_s25, %s5854_s28 }
  0xe4   : > { %p5333_p5 = pneg %p5332_p7 }
  0xe6   : > { %p5340_p8 = pnand %p5339_p2, %p5333_p5 }
  0xe8   : > { %5343 = shalt.err (!%p5340_p8)
}
  0xe9   : > { %4821 = dma.hbm_to_vmem [thread:$0]  (!%p6766_p3), %s6692_s19, 256, %s708_s23, [#allocation29], %s6763_s0, %s6763_s0, %s6762_s12  }
  0xea   : > { %s766_s3 = scalar_lea.vmem [#allocation12], %s5851_s29  ;;  %s6030_s7 = scalar_lea.hbm %s6682_s9, %s5854_s28 }
  0xeb   : > { %s773_s20 = sshll.u32 %s766_s3, 4  ;;  %s5344_s5 = scalar_lea.hbm %s6013_s1, 16  ;;  %s774_s20 = int_to_ptr.vmem [resolvable:$true] %s773_s20 }
  0xec   : > { %p5345_p0 = scmp.ne.s32.totalorder %s6013_s1, %s5344_s5  ;;  %p6771_p11 = scmp.ne.s32.totalorder %s6760_s21, 0 }
  0xed   : > { %s5349_s25 = scalar_lea.hbm %s6770_s22, 32  ;;  %p5350_p3 = scmp.lt.s32.totalorder %s6013_s1, %s6770_s22 }
  0xee   : > { %p5347_p12 = pnand %p5345_p0, %p6771_p11  ;;  %p5351_p4 = scmp.lt.s32.totalorder %s5349_s25, %s5344_s5 }
  0xf0   : > { %p5348_p1 = pneg %p5347_p12  ;;  %p5352_p6 = por %p5351_p4, %p5350_p3 }
  0xf2   : > { %p5353_p9 = pnand %p5352_p6, %p5348_p1 }
  0xf4   : > { %5356 = shalt.err (!%p5353_p9)
}
  0xf5   : > { %s5357_s12 = scalar_lea.vmem %s774_s20, 16  ;;  %s5597_s0 = smov [#allocation12]  }
  0xf6   : > { %p5358_p7 = scmp.ne.s32.totalorder %s774_s20, %s5357_s12  ;;  %s5362_s23 = sshll.u32 %s5597_s0, 4  ;;  %s5363_s23 = int_to_ptr.vmem [resolvable:$false] %s5362_s23 }
  0xf7   : > { %s5364_s16 = scalar_lea.vmem %s5363_s23, 32  ;;  %p5365_p13 = scmp.lt.s32.totalorder %s774_s20, %s5363_s23 }
  0xf8   : > { %p5360_p5 = pnand %p5358_p7, %p6771_p11  ;;  %p5366_p2 = scmp.lt.s32.totalorder %s5364_s16, %s5357_s12 }
  0xfa   : > { %p5361_p10 = pneg %p5360_p5  ;;  %p5367_p8 = por %p5366_p2, %p5365_p13 }
  0xfc   : > { %p5368_p0 = pnand %p5367_p8, %p5361_p10 }
  0xfe   : > { %5371 = shalt.err (!%p5368_p0)
}
  0xff   : > { %p6772_p12 = scmp.ne.s32.totalorder %s6759_s17, 0  ;;  %s6773_s3 = scalar_lea.sflag [#allocation11], %s5848_s6 }
 0x100   : > { %s800_s24 = scalar_lea.vmem [#allocation15], %s5851_s29  ;;  %s6055_s30 = scalar_lea.hbm %s6684_s11, %s5854_s28 }
 0x101   : > { %4828 = dma.hbm_to_vmem [thread:$0]  (!%p6772_p12), %s6013_s1, 16, %s774_s20, %s6773_s3  }
 0x102   : > { %s807_s2 = sshll.u32 %s800_s24, 4  ;;  %s5372_s25 = scalar_lea.hbm %s6030_s7, 16  ;;  %s808_s2 = int_to_ptr.vmem [resolvable:$true] %s807_s2 }
 0x103   : > { %p5373_p1 = scmp.ne.s32.totalorder %s6030_s7, %s5372_s25  ;;  %s5377_s12 = scalar_lea.hbm %s6682_s9, 32 }
 0x104   : > { %p5378_p6 = scmp.lt.s32.totalorder %s6030_s7, %s6682_s9  ;;  %p5379_p9 = scmp.lt.s32.totalorder %s5377_s12, %s5372_s25 }
 0x105   : > { %p5375_p3 = pnand %p5373_p1, %p6771_p11 }
 0x106   : > { %p5380_p7 = por %p5379_p9, %p5378_p6 }
 0x107   : > { %p5376_p4 = pneg %p5375_p3 }
 0x109   : > { %p5381_p5 = pnand %p5380_p7, %p5376_p4 }
 0x10b   : > { %5384 = shalt.err (!%p5381_p5)
}
 0x10c   : > { %s5385_s1 = scalar_lea.vmem %s808_s2, 16  ;;  %s5598_s20 = smov [#allocation15]  }
 0x10d   : > { %p5386_p10 = scmp.ne.s32.totalorder %s808_s2, %s5385_s1  ;;  %s5390_s16 = sshll.u32 %s5598_s20, 4  ;;  %s5391_s16 = int_to_ptr.vmem [resolvable:$false] %s5390_s16 }
 0x10e   : > { %s5392_s3 = scalar_lea.vmem %s5391_s16, 32  ;;  %p5393_p8 = scmp.lt.s32.totalorder %s808_s2, %s5391_s16 }
 0x10f   : > { %p5388_p13 = pnand %p5386_p10, %p6771_p11  ;;  %p5394_p0 = scmp.lt.s32.totalorder %s5392_s3, %s5385_s1 }
 0x111   : > { %p5389_p2 = pneg %p5388_p13  ;;  %p5395_p1 = por %p5394_p0, %p5393_p8 }
 0x113   : > { %p5396_p3 = pnand %p5395_p1, %p5389_p2 }
 0x115   : > { %5399 = shalt.err (!%p5396_p3)
}
 0x116   : > { %s6774_s24 = scalar_lea.sflag [#allocation14], %s5848_s6  ;;  %s838_s5 = scalar_lea.vmem [#allocation18], %s5851_s29 }
 0x117   : > { %4834 = dma.hbm_to_vmem [thread:$0]  (!%p6772_p12), %s6030_s7, 16, %s808_s2, %s6774_s24  }
 0x118   : > { %s845_s4 = sshll.u32 %s838_s5, 4  ;;  %s6080_s27 = scalar_lea.hbm %s6687_s14, %s5854_s28  ;;  %s846_s4 = int_to_ptr.vmem [resolvable:$true] %s845_s4 }
 0x119   : > { %s5400_s12 = scalar_lea.hbm %s6055_s30, 16  ;;  %s5405_s1 = scalar_lea.hbm %s6684_s11, 32 }
 0x11a   : > { %p5401_p4 = scmp.ne.s32.totalorder %s6055_s30, %s5400_s12  ;;  %p5406_p7 = scmp.lt.s32.totalorder %s6055_s30, %s6684_s11 }
 0x11b   : > { %p5407_p5 = scmp.lt.s32.totalorder %s5405_s1, %s5400_s12 }
 0x11c   : > { %p5403_p6 = pnand %p5401_p4, %p6771_p11 }
 0x11d   : > { %p5408_p10 = por %p5407_p5, %p5406_p7 }
 0x11e   : > { %p5404_p9 = pneg %p5403_p6 }
 0x120   : > { %p5409_p13 = pnand %p5408_p10, %p5404_p9 }
 0x122   : > { %5412 = shalt.err (!%p5409_p13)
}
 0x123   : > { %s5413_s7 = scalar_lea.vmem %s846_s4, 16  ;;  %s5599_s2 = smov [#allocation18]  }
 0x124   : > { %p5414_p2 = scmp.ne.s32.totalorder %s846_s4, %s5413_s7  ;;  %s5418_s3 = sshll.u32 %s5599_s2, 4  ;;  %s5419_s3 = int_to_ptr.vmem [resolvable:$false] %s5418_s3 }
 0x125   : > { %s5420_s24 = scalar_lea.vmem %s5419_s3, 32  ;;  %p5421_p1 = scmp.lt.s32.totalorder %s846_s4, %s5419_s3 }
 0x126   : > { %p5416_p8 = pnand %p5414_p2, %p6771_p11  ;;  %p5422_p3 = scmp.lt.s32.totalorder %s5420_s24, %s5413_s7 }
 0x128   : > { %p5417_p0 = pneg %p5416_p8  ;;  %p5423_p4 = por %p5422_p3, %p5421_p1 }
 0x12a   : > { %p5424_p6 = pnand %p5423_p4, %p5417_p0 }
 0x12c   : > { %5427 = shalt.err (!%p5424_p6)
}
 0x12d   : > { %s6775_s5 = scalar_lea.sflag [#allocation17], %s5848_s6  ;;  %s880_s25 = scalar_lea.vmem [#allocation21], %s5851_s29 }
 0x12e   : > { %4840 = dma.hbm_to_vmem [thread:$0]  (!%p6772_p12), %s6055_s30, 16, %s846_s4, %s6775_s5  }
 0x12f   : > { %s887_s26 = sshll.u32 %s880_s25, 4  ;;  %s5428_s12 = scalar_lea.hbm %s6080_s27, 16  ;;  %s888_s26 = int_to_ptr.vmem [resolvable:$true] %s887_s26 }
 0x130   : > { %p5429_p9 = scmp.ne.s32.totalorder %s6080_s27, %s5428_s12  ;;  %s5433_s1 = scalar_lea.hbm %s6687_s14, 32 }
 0x131   : > { %p5434_p10 = scmp.lt.s32.totalorder %s6080_s27, %s6687_s14  ;;  %p5435_p13 = scmp.lt.s32.totalorder %s5433_s1, %s5428_s12 }
 0x132   : > { %p5431_p7 = pnand %p5429_p9, %p6771_p11 }
 0x133   : > { %p5436_p2 = por %p5435_p13, %p5434_p10 }
 0x134   : > { %p5432_p5 = pneg %p5431_p7 }
 0x136   : > { %p5437_p8 = pnand %p5436_p2, %p5432_p5 }
 0x138   : > { %5440 = shalt.err (!%p5437_p8)
}
 0x139   : > { %s5441_s30 = scalar_lea.vmem %s888_s26, 16  ;;  %s5600_s4 = smov [#allocation21]  }
 0x13a   : > { %p5442_p0 = scmp.ne.s32.totalorder %s888_s26, %s5441_s30  ;;  %s5446_s7 = sshll.u32 %s5600_s4, 4  ;;  %s5447_s7 = int_to_ptr.vmem [resolvable:$false] %s5446_s7 }
 0x13b   : > { %s5448_s2 = scalar_lea.vmem %s5447_s7, 32  ;;  %p5449_p4 = scmp.lt.s32.totalorder %s888_s26, %s5447_s7 }
 0x13c   : > { %p5444_p1 = pnand %p5442_p0, %p6771_p11  ;;  %p5450_p6 = scmp.lt.s32.totalorder %s5448_s2, %s5441_s30 }
 0x13e   : > { %p5445_p3 = pneg %p5444_p1  ;;  %p5451_p9 = por %p5450_p6, %p5449_p4 }
 0x140   : > { %p5452_p7 = pnand %p5451_p9, %p5445_p3 }
 0x142   : > { %5455 = shalt.err (!%p5452_p7)
}
 0x143   : > { %s6776_s3 = scalar_lea.sflag [#allocation20], %s5848_s6  ;;  %s6123_s25 = scalar_lea.hbm %s6688_s15, %s5854_s28 }
 0x144   : > { %4846 = dma.hbm_to_vmem [thread:$0]  (!%p6772_p12), %s6080_s27, 16, %s888_s26, %s6776_s3  }
 0x145   : > { %s897_s12 = scalar_lea.vmem [#allocation22], %s5851_s29  ;;  %s895_s23 = scalar_lea.sflag [#allocation23], %s5848_s6 }
 0x146   : > { %s904_s0 = sshll.u32 %s897_s12, 4  ;;  %s5456_s1 = scalar_lea.hbm %s6123_s25, 16  ;;  %s905_s0 = int_to_ptr.vmem [resolvable:$true] %s904_s0 }
 0x147   : > { %p5457_p5 = scmp.ne.s32.totalorder %s6123_s25, %s5456_s1  ;;  %s5461_s27 = scalar_lea.hbm %s6688_s15, 32 }
 0x148   : > { %p5462_p2 = scmp.lt.s32.totalorder %s6123_s25, %s6688_s15  ;;  %p5463_p8 = scmp.lt.s32.totalorder %s5461_s27, %s5456_s1 }
 0x149   : > { %p5459_p10 = pnand %p5457_p5, %p6771_p11 }
 0x14a   : > { %p5464_p0 = por %p5463_p8, %p5462_p2 }
 0x14b   : > { %p5460_p13 = pneg %p5459_p10 }
 0x14d   : > { %p5465_p1 = pnand %p5464_p0, %p5460_p13 }
 0x14f   : > { %5468 = shalt.err (!%p5465_p1)
}
 0x150   : > { %s5469_s29 = scalar_lea.vmem %s905_s0, 16  ;;  %s5601_s6 = smov [#allocation22]  }
 0x151   : > { %p5470_p3 = scmp.ne.s32.totalorder %s905_s0, %s5469_s29  ;;  %s5474_s28 = sshll.u32 %s5601_s6, 4  ;;  %s5475_s28 = int_to_ptr.vmem [resolvable:$false] %s5474_s28 }
 0x152   : > { %s5476_s4 = scalar_lea.vmem %s5475_s28, 32  ;;  %p5477_p9 = scmp.lt.s32.totalorder %s905_s0, %s5475_s28 }
 0x153   : > { %p5472_p4 = pnand %p5470_p3, %p6771_p11  ;;  %p5478_p7 = scmp.lt.s32.totalorder %s5476_s4, %s5469_s29 }
 0x155   : > { %p5473_p6 = pneg %p5472_p4  ;;  %p5479_p5 = por %p5478_p7, %p5477_p9 }
 0x157   : > { %p5480_p10 = pnand %p5479_p5, %p5473_p6 }
 0x159   : > { %5483 = shalt.err (!%p5480_p10)
}
 0x15a   : > { %4849 = dma.hbm_to_vmem [thread:$0]  (!%p6772_p12), %s6123_s25, 16, %s905_s0, %s895_s23  }
 0x15b   : > { %s6777_s7 = sld [smem:[#allocation45_spill]] }
 0x161   : > { %p6778_p13 = scmp.ne.s32.totalorder %s6777_s7, 0 }
 0x162   : > { %s6779_s2 = sld [smem:[#allocation44_spill]] (!%p6778_p13) }
 0x163   : > { %913 = sbr.rel (%p6778_p13) target bundleno = 5534 (0x159e), region = 112 }
 0x168   : > { %p6780_p2 = scmp.eq.s32.totalorder %s6779_s2, 0 }
 0x16a   : > { %5525 = dma.done.wait (%p6780_p2), [#allocation5], 64   ;;  %p6781_p11 = pmov %p6780_p2 }
 0x16b   : > { %p6782_p8 = pmov %p6780_p2 }
 0x16c   : > { %5527 = vsyncadd (%p6781_p11), [#allocation5], 4294967232 }
 0x16d   : > { %5529 = dma.done.wait (%p6782_p8), [#allocation8], 32   ;;  %p6783_p0 = pmov %p6780_p2 }
 0x16e   : > { %s6784_s21 = sld [smem:[#allocation42_spill]]  ;;  %s927_s3 = sand.u32 1, %s6779_s2  }
 0x16f   : > { %5531 = vsyncadd (%p6783_p0), [#allocation8], 4294967264  ;;  %s6785_s17 = sld [smem:[#allocation48_spill]]  ;;  %s928_s5 = scalar_lea.sflag [#allocation11], %s927_s3 }
 0x174   : > { %s6155_s24 = sand.u32 1, %s6784_s21  }
 0x175   : > { %s930_s25 = scalar_lea.vmem [#allocation10], %s6155_s24  ;;  %p6786_p12 = scmp.ne.s32.totalorder %s6785_s17, 0 }
 0x177   : > { %5533 = dma.done.wait (%p6786_p12), %s928_s5, 32  }
 0x178   : > { %5535 = vsyncadd (%p6786_p12), %s928_s5, 4294967264  ;;  %s944_s0 = scalar_lea.sflag [#allocation14], %s927_s3 }
 0x179   : > { %5537 = dma.done.wait (%p6786_p12), %s944_s0, 32  }
 0x17a   : > { %5539 = vsyncadd (%p6786_p12), %s944_s0, 4294967264  ;;  %s4291_s1 = sshll.u32 %s6155_s24, 4  ;;  %s960_s16 = scalar_lea.sflag [#allocation17], %s927_s3 }
 0x17b   : > { %s6170_s27 = scalar_lea.vmem [#allocation16], %s4291_s1 }
 0x17c   : > { %5541 = dma.done.wait (%p6786_p12), %s960_s16, 272  }
 0x17d   : > { %5543 = vsyncadd (%p6786_p12), %s960_s16, 4294967024  ;;  %s977_s30 = scalar_lea.sflag [#allocation20], %s927_s3 }
 0x17e   : > { %5545 = dma.done.wait (%p6786_p12), %s977_s30, 32  }
 0x17f   : > { %5547 = vsyncadd (%p6786_p12), %s977_s30, 4294967264  ;;  %s993_s28 = scalar_lea.sflag [#allocation23], %s927_s3 }
 0x180   : > { %5549 = dma.done.wait (%p6786_p12), %s993_s28, 16  }
 0x181   : > { %5551 = vsyncadd (%p6786_p12), %s993_s28, 4294967280  ;;  %p6787_p1 = pmov %p6783_p0 }
 0x182   : > { %p6788_p3 = pmov %p6783_p0 }
 0x183   : > { %5553 = dma.done.wait (%p6787_p1), [#allocation23], 256  }
 0x184   : > { %5555 = vsyncadd (%p6788_p3), [#allocation23], 4294967040  ;;  %p6789_p4 = pmov %p6783_p0 }
 0x185   : > { %p6790_p6 = pmov %p6783_p0 }
 0x186   : > { %5557 = dma.done.wait (%p6789_p4), [#allocation26], 272  }
 0x187   : > { %5559 = vsyncadd (%p6790_p6), [#allocation26], 4294967024  ;;  %p6791_p9 = pmov %p6783_p0 }
 0x188   : > { %p6792_p7 = pmov %p6783_p0 }
 0x189   : > { %5561 = dma.done.wait (%p6791_p9), [#allocation29], 256  }
 0x18a   : > { %5563 = vsyncadd (%p6792_p7), [#allocation29], 4294967040  ;;  %p1116_p5 = scmp.lt.s32.totalorder %s6779_s2, 1  ;;  %s6793_s0 = sld [smem:[#allocation53_spill]] }
 0x18b   : > { %s6794_s28 = sld [smem:[#allocation55_spill]]  ;;  %p6796_p10 = scmp.ne.s32.totalorder %s6779_s2, 0 }
 0x18c   : > { %s1117_s7 = scalar_select %p1116_p5, %s6779_s2, 1 }
 0x18d   : > { %s6795_s26 = sld [smem:[#allocation57_spill]] }
 0x18e   : > { %s4387_s21 = sshll.u32 %s1117_s7, 4  ;;  %s4389_s17 = sshll.u32 %s1117_s7, 5 }
 0x18f   : > { %1135 = sbr.rel (%p6796_p10) target bundleno = 723 (0x2d3), region = 180  ;;  %s6797_s12 = sld [smem:[#allocation49_spill]] (!%p6796_p10) }
 0x190   : > { %s6205_s1 = scalar_lea.vmem %s6793_s0, %s4387_s21 }
 0x191   : > { %s6210_s4 = scalar_lea.vmem %s6794_s28, %s4387_s21 }
 0x193   : > { %s6215_s20 = scalar_lea.vmem %s6795_s26, %s4389_s17 }
 0x194   : > { %vm1142_vm0 = vcmask 261120   ;;  %v4303_v41 = vld [vmem:[#allocation7] ss:$0 sm:$0xff]  ;;  %v4304_v43 = vld [vmem:[#allocation9] ss:$0 sm:$0xff] }
 0x195   : > { %v1136_v0 = vld [vmem:[%s6797_s12] sm:$0xff]  ;;  %v1138_v1 = vld [vmem:[%s6797_s12 + $0x10] sm:$0xff]  ;;  %v1137_v2 = vld [vmem:[%s6797_s12 + $0x8] sm:$0xff] }
 0x196   : > { %v1143_v3 = vsel %vm1142_vm0, %v1136_v0, 0.0  ;;  %v1149_v4 = vsel %vm1142_vm0, %v1138_v1, 0.0  ;;  %v1139_v5 = vld [vmem:[%s6797_s12 + $0x18] sm:$0xff]  ;;  %v1146_v6 = vsel %vm1142_vm0, %v1137_v2, 0.0 }
 0x197   : > { %1144 = vadd.xlane.f32.xlu0 %v1143_v3  ;;  %1150 = vadd.xlane.f32.xlu1 %v1149_v4  ;;  %v1152_v7 = vsel %vm1142_vm0, %v1139_v5, 0.0 }
 0x19b   : > { %1147 = vadd.xlane.f32.xlu0 %v1146_v6  ;;  %1153 = vadd.xlane.f32.xlu1 %v1152_v7 }
 0x220   : > { %v1145_v8 = vpop.xlane.xlu0 %1144  ;;  %v1151_v9 = vpop.xlane.xlu1 %1150 }
 0x221   : > { %v1156_v10 = vmul.f32 0.03125, %v1145_v8  ;;  %v1158_v11 = vmul.f32 0.03125, %v1151_v9 }
 0x223   : > { %v1160_v12 = vsub.f32 %v1136_v0, %v1156_v10  ;;  %v1162_v13 = vsub.f32 %v1138_v1, %v1158_v11 }
 0x224   : > { %v1148_v14 = vpop.xlane.xlu0 %1147  ;;  %v1154_v15 = vpop.xlane.xlu1 %1153 }
 0x225   : > { %v1157_v16 = vmul.f32 0.03125, %v1148_v14  ;;  %v1159_v17 = vmul.f32 0.03125, %v1154_v15  ;;  %v1164_v18 = vmul.f32 %v1160_v12, %v1160_v12  ;;  %v1166_v19 = vmul.f32 %v1162_v13, %v1162_v13 }
 0x227   : > { %v1161_v20 = vsub.f32 %v1137_v2, %v1157_v16  ;;  %v1163_v21 = vsub.f32 %v1139_v5, %v1159_v17  ;;  %v1168_v22 = vsel %vm1142_vm0, %v1164_v18, 0.0  ;;  %v1174_v23 = vsel %vm1142_vm0, %v1166_v19, 0.0 }
 0x228   : > { %1169 = vadd.xlane.f32.xlu0 %v1168_v22 }
 0x229   : > { %v1165_v24 = vmul.f32 %v1161_v20, %v1161_v20  ;;  %v1167_v25 = vmul.f32 %v1163_v21, %v1163_v21 }
 0x22b   : > { %v1171_v26 = vsel %vm1142_vm0, %v1165_v24, 0.0  ;;  %v1177_v27 = vsel %vm1142_vm0, %v1167_v25, 0.0 }
 0x22c   : > { %1175 = vadd.xlane.f32.xlu0 %v1174_v23  ;;  %1172 = vadd.xlane.f32.xlu1 %v1171_v26 }
 0x230   : > { %1178 = vadd.xlane.f32.xlu1 %v1177_v27 }
 0x2b1   : > { %v1170_v28 = vpop.xlane.xlu0 %1169 }
 0x2b2   : > { %v1180_v29 = vmul.f32 0.03125, %v1170_v28 }
 0x2b4   : > { %v1184_v30 = vadd.f32 1e-05, %v1180_v29 }
 0x2b5   : > { %v1173_v31 = vpop.xlane.xlu1 %1172  ;;  %v1176_v32 = vpop.xlane.xlu0 %1175 }
 0x2b6   : > { %4928 = vrsqrt.f32 %v1184_v30  ;;  %v1181_v33 = vmul.f32 0.03125, %v1173_v31  ;;  %v1182_v34 = vmul.f32 0.03125, %v1176_v32 }
 0x2b8   : > { %v1185_v35 = vadd.f32 1e-05, %v1181_v33  ;;  %v1186_v36 = vadd.f32 1e-05, %v1182_v34 }
 0x2b9   : > { %v1179_v37 = vpop.xlane.xlu1 %1178 }
 0x2ba   : > { %4930 = vrsqrt.f32 %v1185_v35  ;;  %v1183_v38 = vmul.f32 0.03125, %v1179_v37 }
 0x2bb   : > { %4932 = vrsqrt.f32 %v1186_v36 }
 0x2bc   : > { %v1187_v39 = vadd.f32 1e-05, %v1183_v38 }
 0x2be   : > { %4934 = vrsqrt.f32 %v1187_v39 }
 0x2c3   : > { %v4929_v40 = vpop.eup %4928 }
 0x2c4   : > { %v1192_v42 = vmul.f32 %v4929_v40, %v1160_v12 }
 0x2c6   : > { %v1202_v44 = vmul.f32 %v4303_v41, %v1192_v42 }
 0x2c7   : > { %v4931_v45 = vpop.eup %4930 }
 0x2c8   : > { %v4933_v46 = vpop.eup %4932  ;;  %v1212_v47 = vadd.f32 %v4304_v43, %v1202_v44  ;;  %v1193_v48 = vmul.f32 %v4931_v45, %v1161_v20 }
 0x2c9   : > { %v1194_v49 = vmul.f32 %v4933_v46, %v1162_v13 }
 0x2ca   : > { %1216 = vst.msk [vmem:[#allocation2] sm:$0xff] %vm1142_vm0, %v1212_v47  ;;  %v1203_v50 = vmul.f32 %v4303_v41, %v1193_v48 }
 0x2cb   : > { %v4935_v51 = vpop.eup %4934  ;;  %v1204_v52 = vmul.f32 %v4303_v41, %v1194_v49 }
 0x2cc   : > { %v1213_v53 = vadd.f32 %v4304_v43, %v1203_v50  ;;  %v1195_v54 = vmul.f32 %v4935_v51, %v1163_v21 }
 0x2cd   : > { %v1214_v55 = vadd.f32 %v4304_v43, %v1204_v52 }
 0x2ce   : > { %1217 = vst.msk [vmem:[#allocation2 + $0x8] sm:$0xff] %vm1142_vm0, %v1213_v53  ;;  %v1205_v56 = vmul.f32 %v4303_v41, %v1195_v54 }
 0x2cf   : > { %1218 = vst.msk [vmem:[#allocation2 + $0x10] sm:$0xff] %vm1142_vm0, %v1214_v55 }
 0x2d0   : > { %v1215_v57 = vadd.f32 %v4304_v43, %v1205_v56 }
 0x2d2   : > { %1219 = vst.msk [vmem:[#allocation2 + $0x18] sm:$0xff] %vm1142_vm0, %v1215_v57 }
 0x2d3 PF: > { %v4936_v58 = vld [vmem:[%s6205_s1 + $0x8] sm:$0xff]   ;;  %v4937_v59 = vld [vmem:[%s6205_s1] sm:$0xff]   ;;  %vm1249_vm1 = vcmask 261120   ;;  %v5602_v2 = vmov 0.0   ;;  %vm5603_vm2 = vmmov 0   ;;  %s5604_s23 = smov 96   ;;  %v1322_v26 = vlaneseq }
 0x2d4   : > { %4486 = vmatprep.subr.bf16.mxu0 %v4936_v58  ;;  %v1220_v60 = vld [vmem:[#allocation2] sm:$0xff]  ;;  %4494 = vmatprep.subr.bf16.mxu1 %v5602_v2  ;;  %vm1358_vm3 = vcmask 64512   ;;  %v5605_v24 = vmov 1966171168   ;;  %vm1613_vm4 = vcmask 1043456   ;;  %s5607_s29 = smov 88  }
 0x2d5   : > { %v1221_v61 = vld [vmem:[#allocation2 + $0x8] sm:$0xff]  ;;  %4487 = vmatpush3.bf16.msra.mxu0 %v4936_v58  ;;  %v4305_v3 = vld [vmem:[%s930_s25] ss:$0 sm:$0xff]  ;;  %4496 = vmatprep.mubr.msk.bf16.mxu1 %vm5603_vm2, %v5602_v2  ;;  %v1320_v25 = vunpack.c.l.s4 %v5605_v24  ;;  %v1323_v28 = vshrl.u32 %v1322_v26, 7  ;;  %s5606_s25 = smov 64   ;;  %s5608_s6 = smov 120  }
 0x2d6   : > { %v1222_v62 = vld [vmem:[#allocation2 + $0x10] sm:$0xff]  ;;  %v1224_v63 = vpack.c.bf16 %v1221_v61, %v1220_v60  ;;  %4488 = vmatprep.subr.bf16.mxu0 %v4937_v59  ;;  %v4310_v30 = vld.sshfl [vmem:[#allocation4] sm:$0x33 pattern:$0x75316420]  ;;  %s5609_s17 = smov 56  }
 0x2d7   : > { %v1321_v27 = vunpack.c.0.s8 %v1320_v25  ;;  %v1337_v32 = vsub.s32 0, %v1323_v28  ;;  %v1318_v33 = vcombine.high %v4310_v30, %v4310_v30  ;;  %s5610_s1 = smov 80   ;;  %s5611_s16 = smov 112   ;;  %vm2269_vm5 = vcmask 130112  }
 0x2d8   : > { %4490 = vmatprep.mubr.msk.bf16.mxu0 %vm1249_vm1, %v1224_v63  ;;  %s5612_s30 = smov 48   ;;  %s5613_s28 = smov 72   ;;  %vm2738_vm6 = vcmask 195712   ;;  %vm3207_vm7 = vcmask 261312   ;;  %vm3532_vm8 = vcmask 523264  }
 0x2d9   : > { %v1223_v0 = vld [vmem:[#allocation2 + $0x18] sm:$0xff]  ;;  %4489 = vmatpush3.bf16.msra.mxu0 %v4937_v59  ;;  %v1324_v29 = vsub.s32 %v1321_v27, %v1323_v28  ;;  %s5614_s7 = smov 104   ;;  %s5615_s3 = smov 40  }
 0x2da   : > { %v1225_v1 = vpack.c.bf16 %v1223_v0, %v1222_v62  ;;  %4500 = vmatprep.subr.bf16.mxu0 %v5602_v2  ;;  %s5616_s5 = smov 8   ;;  %s5617_s0 = smov 16  }
 0x2db   : > { %v1325_v31 = vrot.slane %v4310_v30, %v1324_v29  ;;  %v1332_v35 = vrot.slane %v1318_v33, %v1324_v29  ;;  %s5618_s21 = smov 24   ;;  %s6800_s26 = scalar_lea.vmem [#allocation15], %s6155_s24 }
 0x2dc   : > { %4491 = vmatmul.mubr.msk.bf16.vlgmr.msra.gmra.mxu0 %vm1249_vm1, %v1225_v1  ;;  %s6801_s2 = scalar_lea.vmem [#allocation18], %s6155_s24 }
 0x2dd   : > { %4502 = vmatprep.mubr.msk.bf16.mxu0 %vm5603_vm2, %v5602_v2  ;;  %v6291_v34 = vrot.slane %v1325_v31, %v1337_v32  ;;  %v6294_v40 = vrot.slane %v1332_v35, %v1337_v32  ;;  %v1333_v41 = vcombine.high %v1325_v31, %v1325_v31  ;;  %v1334_v50 = vcombine.high %v1332_v35, %v1332_v35 }
 0x2df   : > { %v6298_v49 = vrot.slane %v1333_v41, %v1337_v32  ;;  %v6302_v58 = vrot.slane %v1334_v50, %v1337_v32 }
 0x39c   : > { %v4492_v4 = vpop.f32.mrf.mxu0 }
 0x39d   : > { %v1299_v5 = vadd.f32 %v4492_v4, %v4305_v3 }
 0x39e   : > { %v1290_v6 = vpop.f32.mrf.mxu0 }
 0x39f   : > { %v6255_v7 = vpack.c.bf16 %v1299_v5, %v1299_v5  ;;  %v1291_v8 = vadd.f32 %v4305_v3, %v1290_v6 }
 0x3a0   : > { %v4493_v9 = vpop.f32.mrf.mxu0 }
 0x3a1   : > { %v6257_v10 = vpack.c.bf16 %v1291_v8, %v1291_v8  ;;  %v1302_v11 = vadd.f32 %v4493_v9, %v4305_v3  ;;  %1455 = vrot.lane.b32.xlu1 %v6255_v7, %s5604_s23 }
 0x3a2   : > { %v1293_v12 = vpop.f32.mrf.mxu0 }
 0x3a3   : > { %v6260_v13 = vpack.c.bf16 %v1302_v11, %v1302_v11  ;;  %v1294_v14 = vadd.f32 %v4305_v3, %v1293_v12  ;;  %1356 = vrot.lane.b32.xlu0 %v6257_v10, %s5604_s23 }
 0x3a5   : > { %v6263_v15 = vpack.c.bf16 %v1294_v14, %v1294_v14  ;;  %1504 = vrot.lane.b32.xlu1 %v6260_v13, %s5604_s23 }
 0x3a7   : > { %1406 = vrot.lane.b32.xlu0 %v6263_v15, %s5604_s23  ;;  %s6803_s23 = scalar_lea.vmem [#allocation21], %s6155_s24 }
 0x413   : > { %v1456_v18 = vpop.permute.xlu1 %1455 }
 0x414   : > { %v1461_v21 = vsel %vm1358_vm3, %v1456_v18, 0 }
 0x415   : > { %v1357_v16 = vpop.permute.xlu0 %1356 }
 0x416   : > { %v1363_v17 = vsel %vm1358_vm3, %v1357_v16, 0 }
 0x417   : > { %4495 = vmatpush3.bf16.xpose.msra.mxu1 %v1363_v17  ;;  %v1505_v22 = vpop.permute.xlu1 %1504 }
 0x418   : > { %4506 = vmatprep.subr.bf16.mxu1 %v5602_v2  ;;  %v1510_v23 = vsel %vm1358_vm3, %v1505_v22, 0 }
 0x419   : > { %v1407_v19 = vpop.permute.xlu0 %1406 }
 0x41a   : > { %v1412_v20 = vsel %vm1358_vm3, %v1407_v19, 0 }
 0x41b   : > { %4501 = vmatpush3.bf16.xpose.msra.mxu0 %v1412_v20 }
 0x41c   : > { %4512 = vmatprep.subr.bf16.mxu0 %v5602_v2 }
 0x41e   : > { %4497 = vmatmul.mubr.msk.bf16.vlgmr.msra.gmra.mxu1 %vm1358_vm3, %v6257_v10 }
 0x41f   : > { %4507 = vmatpush3.bf16.xpose.msra.mxu1 %v1461_v21  ;;  %4508 = vmatprep.mubr.msk.bf16.mxu1 %vm5603_vm2, %v5602_v2 }
 0x420   : > { %4518 = vmatprep.subr.bf16.mxu1 %v5602_v2 }
 0x422   : > { %4503 = vmatmul.mubr.msk.bf16.vlgmr.msra.gmra.mxu0 %vm1358_vm3, %v6263_v15 }
 0x423   : > { %4513 = vmatpush3.bf16.xpose.msra.mxu0 %v1510_v23  ;;  %4514 = vmatprep.mubr.msk.bf16.mxu0 %vm5603_vm2, %v5602_v2 }
 0x424   : > { %4524 = vmatprep.subr.bf16.mxu0 %v5602_v2 }
 0x426   : > { %4509 = vmatmul.mubr.msk.bf16.vlgmr.msra.gmra.mxu1 %vm1358_vm3, %v6255_v7 }
 0x427   : > { %4520 = vmatprep.mubr.msk.bf16.mxu1 %vm5603_vm2, %v5602_v2 }
 0x42a   : > { %4515 = vmatmul.mubr.msk.bf16.vlgmr.msra.gmra.mxu0 %vm1358_vm3, %v6260_v13 }
 0x42b   : > { %4526 = vmatprep.mubr.msk.bf16.mxu0 %vm5603_vm2, %v5602_v2 }
 0x4de   : > { %v1399_v36 = vpop.f32.mrf.mxu1 }
 0x4df   : > { %v1552_v37 = vmul.f32 0.35355338, %v1399_v36 }
 0x4e0   : > { %v4498_v38 = vpop.f32.mrf.mxu1 }
 0x4e1   : > { %v1556_v39 = vadd.f32 %v1552_v37, %v6291_v34 }
 0x4e2   : > { %v1402_v42 = vpop.f32.mrf.mxu1  ;;  %v1448_v43 = vpop.f32.mrf.mxu0 }
 0x4e3   : > { %v1553_v44 = vmul.f32 0.35355338, %v1448_v43  ;;  %v1560_v45 = vsel %vm1358_vm3, %v1556_v39, -inf }
 0x4e4   : > { %1561 = vmax.xlane.f32.xlu0 %v1560_v45  ;;  %v4499_v46 = vpop.f32.mrf.mxu1  ;;  %v4504_v47 = vpop.f32.mrf.mxu0 }
 0x4e5   : > { %v1557_v48 = vadd.f32 %v1553_v44, %v6294_v40 }
 0x4e6   : > { %v1451_v51 = vpop.f32.mrf.mxu0  ;;  %v1497_v52 = vpop.f32.mrf.mxu1 }
 0x4e7   : > { %v1554_v53 = vmul.f32 0.35355338, %v1497_v52  ;;  %v1563_v54 = vsel %vm1358_vm3, %v1557_v48, -inf }
 0x4e8   : > { %v4510_v55 = vpop.f32.mrf.mxu1  ;;  %1564 = vmax.xlane.f32.xlu1 %v1563_v54  ;;  %v4505_v56 = vpop.f32.mrf.mxu0 }
 0x4e9   : > { %v1558_v57 = vadd.f32 %v1554_v53, %v6298_v49 }
 0x4ea   : > { %v1500_v59 = vpop.f32.mrf.mxu1  ;;  %v1546_v60 = vpop.f32.mrf.mxu0 }
 0x4eb   : > { %v1555_v61 = vmul.f32 0.35355338, %v1546_v60  ;;  %v1566_v62 = vsel %vm1358_vm3, %v1558_v57, -inf }
 0x4ec   : > { %1567 = vmax.xlane.f32.xlu0 %v1566_v62  ;;  %v4511_v63 = vpop.f32.mrf.mxu1  ;;  %v4516_v0 = vpop.f32.mrf.mxu0 }
 0x4ed   : > { %v1559_v1 = vadd.f32 %v1555_v61, %v6302_v58 }
 0x4ee   : > { %v1549_v3 = vpop.f32.mrf.mxu0 }
 0x4ef   : > { %v1569_v4 = vsel %vm1358_vm3, %v1559_v1, -inf }
 0x4f0   : > { %1570 = vmax.xlane.f32.xlu0 %v1569_v4  ;;  %v4517_v5 = vpop.f32.mrf.mxu0 }
 0x4f9   : > { %1608 = vrot.lane.b32.xlu1 %v6257_v10, %s5606_s25 }
 0x56d   : > { %v1562_v6 = vpop.xlane.xlu0 %1561 }
 0x56e   : > { %v1572_v8 = vsub.f32 %v1556_v39, %v1562_v6 }
 0x570   : > { %v1576_v9 = vmul.f32 1.442695, %v1572_v8 }
 0x571   : > { %v1565_v11 = vpop.xlane.xlu1 %1564 }
 0x572   : > { %4946 = vpow2.f32 %v1576_v9  ;;  %v1573_v12 = vsub.f32 %v1557_v48, %v1565_v11 }
 0x574   : > { %v1578_v14 = vmul.f32 1.442695, %v1573_v12 }
 0x575   : > { %v1609_v16 = vpop.permute.xlu1 %1608  ;;  %v1568_v22 = vpop.xlane.xlu0 %1567 }
 0x576   : > { %4948 = vpow2.f32 %v1578_v14  ;;  %v1615_v17 = vsel %vm1613_vm4, %v1609_v16, 0  ;;  %v1574_v24 = vsub.f32 %v1558_v57, %v1568_v22 }
 0x577   : > { %4519 = vmatpush3.bf16.msra.mxu1 %v1615_v17 }
 0x578   : > { %4530 = vmatprep.subr.bf16.mxu1 %v5602_v2  ;;  %v1580_v26 = vmul.f32 1.442695, %v1574_v24 }
 0x579   : > { %v1571_v23 = vpop.xlane.xlu0 %1570 }
 0x57a   : > { %v1575_v25 = vsub.f32 %v1559_v1, %v1571_v23  ;;  %4950 = vpow2.f32 %v1580_v26 }
 0x57c   : > { %v1582_v27 = vmul.f32 1.442695, %v1575_v25 }
 0x57e   : > { %4952 = vpow2.f32 %v1582_v27 }
 0x57f   : > { %v4947_v18 = vpop.eup %4946 }
 0x580   : > { %v1584_v19 = vsel %vm1358_vm3, %v4947_v18, 0.0 }
 0x581   : > { %1585 = vadd.xlane.f32.xlu1 %v1584_v19 }
 0x583   : > { %v4949_v20 = vpop.eup %4948 }
 0x584   : > { %v1587_v21 = vsel %vm1358_vm3, %v4949_v20, 0.0 }
 0x585   : > { %1588 = vadd.xlane.f32.xlu0 %v1587_v21 }
 0x587   : > { %v4951_v28 = vpop.eup %4950 }
 0x588   : > { %v1590_v30 = vsel %vm1358_vm3, %v4951_v28, 0.0 }
 0x58b   : > { %v4953_v29 = vpop.eup %4952 }
 0x58c   : > { %v1593_v31 = vsel %vm1358_vm3, %v4953_v29, 0.0 }
 0x592   : > { %1705 = vrot.lane.b32.xlu1 %v6255_v7, %s5606_s25 }
 0x596   : > { %1753 = vrot.lane.b32.xlu1 %v6260_v13, %s5606_s25 }
 0x59b   : > { %1657 = vrot.lane.b32.xlu0 %v6263_v15, %s5606_s25  ;;  %s6804_s25 = scalar_lea.vmem [#allocation22], %s6155_s24 }
 0x5ba   : > { %1591 = vadd.xlane.f32.xlu1 %v1590_v30  ;;  %1594 = vadd.xlane.f32.xlu0 %v1593_v31 }
 0x5cb   : > { %1857 = vrot.lane.b32.xlu1 %v6263_v15, %s5607_s29 }
 0x5cf   : > { %1855 = vrot.lane.b32.xlu1 %v6263_v15, %s5608_s6 }
 0x5d0   : > { %1807 = vrot.lane.b32.xlu0 %v6257_v10, %s5607_s29 }
 0x5d3   : > { %1957 = vrot.lane.b32.xlu1 %v6260_v13, %s5607_s29 }
 0x5d4   : > { %1805 = vrot.lane.b32.xlu0 %v6257_v10, %s5608_s6 }
 0x5d7   : > { %1955 = vrot.lane.b32.xlu1 %v6260_v13, %s5608_s6 }
 0x5d8   : > { %1907 = vrot.lane.b32.xlu0 %v6255_v7, %s5607_s29 }
 0x5dc   : > { %1905 = vrot.lane.b32.xlu0 %v6255_v7, %s5608_s6 }
 0x60a   : > { %v1586_v32 = vpop.xlane.xlu1 %1585 }
 0x60b   : > { %4954 = vrcp.f32 %v1586_v32 }
 0x60e   : > { %v1589_v33 = vpop.xlane.xlu0 %1588  ;;  %v1706_v38 = vpop.permute.xlu1 %1705 }
 0x60f   : > { %4956 = vrcp.f32 %v1589_v33  ;;  %v1711_v43 = vsel %vm1613_vm4, %v1706_v38, 0 }
 0x612   : > { %v1658_v35 = vpop.permute.xlu0 %1657  ;;  %v1754_v45 = vpop.permute.xlu1 %1753 }
 0x613   : > { %v1663_v36 = vsel %vm1613_vm4, %v1658_v35, 0  ;;  %v1759_v47 = vsel %vm1613_vm4, %v1754_v45, 0 }
 0x614   : > { %4525 = vmatpush3.bf16.msra.mxu0 %v1663_v36 }
 0x615   : > { %4536 = vmatprep.subr.bf16.mxu0 %v5602_v2 }
 0x618   : > { %v4955_v37 = vpop.eup %4954 }
 0x619   : > { %v1600_v39 = vmul.f32 %v4955_v37, %v4947_v18 }
 0x61b   : > { %v1604_v41 = vpack.c.bf16 %v1600_v39, %v1600_v39 }
 0x61c   : > { %v4957_v42 = vpop.eup %4956 }
 0x61d   : > { %4521 = vmatmul.mubr.msk.bf16.vlgmr.msra.gmra.mxu1 %vm1358_vm3, %v1604_v41  ;;  %v1601_v44 = vmul.f32 %v4957_v42, %v4949_v20 }
 0x61e   : > { %4531 = vmatpush3.bf16.msra.mxu1 %v1711_v43  ;;  %4532 = vmatprep.mubr.msk.bf16.mxu1 %vm5603_vm2, %v5602_v2 }
 0x61f   : > { %v1605_v46 = vpack.c.bf16 %v1601_v44, %v1601_v44  ;;  %4542 = vmatprep.subr.bf16.mxu1 %v5602_v2 }
 0x621   : > { %4527 = vmatmul.mubr.msk.bf16.vlgmr.msra.gmra.mxu0 %vm1358_vm3, %v1605_v46 }
 0x622   : > { %4537 = vmatpush3.bf16.msra.mxu0 %v1759_v47  ;;  %4538 = vmatprep.mubr.msk.bf16.mxu0 %vm5603_vm2, %v5602_v2 }
 0x623   : > { %4548 = vmatprep.subr.bf16.mxu0 %v5602_v2 }
 0x643   : > { %v1592_v48 = vpop.xlane.xlu1 %1591  ;;  %v1595_v50 = vpop.xlane.xlu0 %1594 }
 0x644   : > { %4958 = vrcp.f32 %v1592_v48 }
 0x645   : > { %4960 = vrcp.f32 %v1595_v50 }
 0x647   : > { %v1808_v51 = vpop.permute.xlu0 %1807  ;;  %v1858_v52 = vpop.permute.xlu1 %1857 }
 0x648   : > { %v1813_v61 = vsel %vm1358_vm3, %v1808_v51, 0  ;;  %v1863_v63 = vsel %vm1358_vm3, %v1858_v52, 0 }
 0x64b   : > { %v1806_v59 = vpop.permute.xlu0 %1805  ;;  %v1856_v62 = vpop.permute.xlu1 %1855 }
 0x64f   : > { %v1908_v0 = vpop.permute.xlu0 %1907  ;;  %v1958_v1 = vpop.permute.xlu1 %1957 }
 0x650   : > { %v1913_v3 = vsel %vm1358_vm3, %v1908_v0, 0  ;;  %v1963_v4 = vsel %vm1358_vm3, %v1958_v1, 0 }
 0x651   : > { %v4959_v53 = vpop.eup %4958 }
 0x652   : > { %v4961_v54 = vpop.eup %4960  ;;  %v1602_v55 = vmul.f32 %v4959_v53, %v4951_v28 }
 0x653   : > { %v1603_v56 = vmul.f32 %v4961_v54, %v4953_v29  ;;  %v1906_v5 = vpop.permute.xlu0 %1905  ;;  %v1956_v6 = vpop.permute.xlu1 %1955 }
 0x654   : > { %v1606_v57 = vpack.c.bf16 %v1602_v55, %v1602_v55 }
 0x655   : > { %v1607_v60 = vpack.c.bf16 %v1603_v56, %v1603_v56 }
 0x656   : > { %4533 = vmatmul.mubr.msk.bf16.vlgmr.msra.gmra.mxu1 %vm1358_vm3, %v1606_v57 }
 0x657   : > { %4539 = vmatmul.mubr.msk.bf16.vlgmr.msra.gmra.mxu0 %vm1358_vm3, %v1607_v60  ;;  %4543 = vmatpush3.bf16.xpose.msra.mxu1 %v1813_v61 }
 0x658   : > { %4549 = vmatpush3.bf16.xpose.msra.mxu0 %v1863_v63  ;;  %4544 = vmatprep.mubr.msk.bf16.mxu1 %vm5603_vm2, %v5602_v2 }
 0x659   : > { %4550 = vmatprep.mubr.msk.bf16.mxu0 %vm5603_vm2, %v5602_v2  ;;  %4554 = vmatprep.subr.bf16.mxu1 %v5602_v2 }
 0x65a   : > { %4560 = vmatprep.subr.bf16.mxu0 %v5602_v2 }
 0x65e   : > { %4545 = vmatmul.mubr.msk.bf16.vlgmr.msra.gmra.mxu1 %vm1358_vm3, %v1806_v59 }
 0x65f   : > { %4551 = vmatmul.mubr.msk.bf16.vlgmr.msra.gmra.mxu0 %vm1358_vm3, %v1856_v62  ;;  %4555 = vmatpush3.bf16.xpose.msra.mxu1 %v1913_v3 }
 0x660   : > { %4561 = vmatpush3.bf16.xpose.msra.mxu0 %v1963_v4  ;;  %4556 = vmatprep.mubr.msk.bf16.mxu1 %vm5603_vm2, %v5602_v2 }
 0x661   : > { %4562 = vmatprep.mubr.msk.bf16.mxu0 %vm5603_vm2, %v5602_v2  ;;  %4566 = vmatprep.subr.bf16.mxu1 %v5602_v2 }
 0x662   : > { %4572 = vmatprep.subr.bf16.mxu0 %v5602_v2 }
 0x666   : > { %4557 = vmatmul.mubr.msk.bf16.vlgmr.msra.gmra.mxu1 %vm1358_vm3, %v1906_v5 }
 0x667   : > { %4563 = vmatmul.mubr.msk.bf16.vlgmr.msra.gmra.mxu0 %vm1358_vm3, %v1956_v6  ;;  %4568 = vmatprep.mubr.msk.bf16.mxu1 %vm5603_vm2, %v5602_v2 }
 0x668   : > { %4574 = vmatprep.mubr.msk.bf16.mxu0 %vm5603_vm2, %v5602_v2 }
 0x6dd   : > { %v1651_v8 = vpop.f32.mrf.mxu1 }
 0x6de   : > { %1801 = vst.msk [vmem:[#allocation3] sm:$0xff] %vm1358_vm3, %v1651_v8 }
 0x6df   : > { %v4522_v9 = vpop.f32.mrf.mxu1 }
 0x6e1   : > { %v1654_v11 = vpop.f32.mrf.mxu1  ;;  %v1699_v12 = vpop.f32.mrf.mxu0 }
 0x6e2   : > { %1802 = vst.msk [vmem:[#allocation3 + $0x8] sm:$0xff] %vm1358_vm3, %v1699_v12 }
 0x6e3   : > { %v4523_v14 = vpop.f32.mrf.mxu1  ;;  %v4528_v16 = vpop.f32.mrf.mxu0 }
 0x6e5   : > { %v1702_v17 = vpop.f32.mrf.mxu0 }
 0x6e7   : > { %v4529_v18 = vpop.f32.mrf.mxu0 }
 0x716   : > { %v1747_v19 = vpop.f32.mrf.mxu1 }
 0x717   : > { %1803 = vst.msk [vmem:[#allocation3 + $0x10] sm:$0xff] %vm1358_vm3, %v1747_v19  ;;  %v1795_v20 = vpop.f32.mrf.mxu0 }
 0x718   : > { %1804 = vst.msk [vmem:[#allocation3 + $0x18] sm:$0xff] %vm1358_vm3, %v1795_v20  ;;  %v4534_v21 = vpop.f32.mrf.mxu1 }
 0x719   : > { %v4540_v22 = vpop.f32.mrf.mxu0 }
 0x71a   : > { %v1750_v23 = vpop.f32.mrf.mxu1 }
 0x71b   : > { %v1798_v24 = vpop.f32.mrf.mxu0 }
 0x71c   : > { %v4535_v25 = vpop.f32.mrf.mxu1 }
 0x71d   : > { %v4541_v26 = vpop.f32.mrf.mxu0 }
 0x71e   : > { %v1849_v27 = vpop.f32.mrf.mxu1 }
 0x71f   : > { %v2005_v28 = vmul.f32 0.35355338, %v1849_v27  ;;  %v1899_v29 = vpop.f32.mrf.mxu0 }
 0x720   : > { %v2006_v30 = vmul.f32 0.35355338, %v1899_v29  ;;  %v4546_v31 = vpop.f32.mrf.mxu1 }
 0x721   : > { %v4552_v32 = vpop.f32.mrf.mxu0  ;;  %v2009_v33 = vadd.f32 %v2005_v28, %v6291_v34 }
 0x722   : > { %v1852_v35 = vpop.f32.mrf.mxu1  ;;  %v2010_v36 = vadd.f32 %v2006_v30, %v6294_v40 }
 0x723   : > { %v1902_v37 = vpop.f32.mrf.mxu0  ;;  %v2013_v38 = vsel %vm1358_vm3, %v2009_v33, -inf }
 0x724   : > { %v2016_v39 = vsel %vm1358_vm3, %v2010_v36, -inf  ;;  %2014 = vmax.xlane.f32.xlu0 %v2013_v38  ;;  %v4547_v41 = vpop.f32.mrf.mxu1 }
 0x725   : > { %2017 = vmax.xlane.f32.xlu1 %v2016_v39  ;;  %v4553_v42 = vpop.f32.mrf.mxu0 }
 0x726   : > { %v1949_v43 = vpop.f32.mrf.mxu1 }
 0x727   : > { %v2007_v44 = vmul.f32 0.35355338, %v1949_v43  ;;  %v1999_v45 = vpop.f32.mrf.mxu0 }
 0x728   : > { %v2008_v46 = vmul.f32 0.35355338, %v1999_v45  ;;  %v4558_v47 = vpop.f32.mrf.mxu1 }
 0x729   : > { %v4564_v48 = vpop.f32.mrf.mxu0  ;;  %v2011_v50 = vadd.f32 %v2007_v44, %v6298_v49 }
 0x72a   : > { %v1952_v51 = vpop.f32.mrf.mxu1  ;;  %v2012_v54 = vadd.f32 %v2008_v46, %v6302_v58 }
 0x72b   : > { %v2002_v52 = vpop.f32.mrf.mxu0  ;;  %v2019_v53 = vsel %vm1358_vm3, %v2011_v50, -inf }
 0x72c   : > { %2020 = vmax.xlane.f32.xlu0 %v2019_v53  ;;  %v4559_v55 = vpop.f32.mrf.mxu1  ;;  %v2022_v57 = vsel %vm1358_vm3, %v2012_v54, -inf }
 0x72d   : > { %v4565_v56 = vpop.f32.mrf.mxu0 }
 0x730   : > { %2023 = vmax.xlane.f32.xlu0 %v2022_v57 }
 0x736   : > { %2061 = vrot.lane.b32.xlu1 %v6257_v10, %s5609_s17 }
 0x7ad   : > { %v2015_v59 = vpop.xlane.xlu0 %2014 }
 0x7ae   : > { %v2018_v60 = vpop.xlane.xlu1 %2017  ;;  %v2025_v61 = vsub.f32 %v2009_v33, %v2015_v59 }
 0x7af   : > { %v2026_v62 = vsub.f32 %v2010_v36, %v2018_v60 }
 0x7b0   : > { %v2029_v63 = vmul.f32 1.442695, %v2025_v61 }
 0x7b1   : > { %v2031_v0 = vmul.f32 1.442695, %v2026_v62 }
 0x7b2   : > { %4962 = vpow2.f32 %v2029_v63  ;;  %v2062_v1 = vpop.permute.xlu1 %2061 }
 0x7b3   : > { %4964 = vpow2.f32 %v2031_v0  ;;  %v2067_v3 = vsel %vm1613_vm4, %v2062_v1, 0 }
 0x7b4   : > { %4567 = vmatpush3.bf16.msra.mxu1 %v2067_v3 }
 0x7b5   : > { %4578 = vmatprep.subr.bf16.mxu1 %v5602_v2  ;;  %v2021_v9 = vpop.xlane.xlu0 %2020 }
 0x7b6   : > { %v2027_v14 = vsub.f32 %v2011_v50, %v2021_v9 }
 0x7b8   : > { %v2033_v17 = vmul.f32 1.442695, %v2027_v14 }
 0x7b9   : > { %v2024_v11 = vpop.xlane.xlu0 %2023 }
 0x7ba   : > { %v2028_v12 = vsub.f32 %v2012_v54, %v2024_v11 }
 0x7bc   : > { %v2035_v16 = vmul.f32 1.442695, %v2028_v12 }
 0x7be   : > { %4966 = vpow2.f32 %v2035_v16 }
 0x7bf   : > { %v4963_v4 = vpop.eup %4962  ;;  %4968 = vpow2.f32 %v2033_v17 }
 0x7c0   : > { %v4965_v5 = vpop.eup %4964  ;;  %v2037_v6 = vsel %vm1358_vm3, %v4963_v4, 0.0 }
 0x7c1   : > { %v2040_v8 = vsel %vm1358_vm3, %v4965_v5, 0.0  ;;  %2038 = vadd.xlane.f32.xlu1 %v2037_v6 }
 0x7c2   : > { %2041 = vadd.xlane.f32.xlu0 %v2040_v8 }
 0x7cb   : > { %v4967_v18 = vpop.eup %4966 }
 0x7cc   : > { %v4969_v19 = vpop.eup %4968  ;;  %v2046_v20 = vsel %vm1358_vm3, %v4967_v18, 0.0 }
 0x7cd   : > { %v2043_v21 = vsel %vm1358_vm3, %v4969_v19, 0.0 }
 0x7d2   : > { %2157 = vrot.lane.b32.xlu1 %v6255_v7, %s5609_s17 }
 0x7d6   : > { %2205 = vrot.lane.b32.xlu1 %v6260_v13, %s5609_s17 }
 0x7d8   : > { %2109 = vrot.lane.b32.xlu0 %v6263_v15, %s5609_s17 }
 0x7f7   : > { %2047 = vadd.xlane.f32.xlu0 %v2046_v20 }
 0x7fa   : > { %2044 = vadd.xlane.f32.xlu1 %v2043_v21 }
 0x80b   : > { %2326 = vrot.lane.b32.xlu1 %v6263_v15, %s5610_s1 }
 0x80d   : > { %2276 = vrot.lane.b32.xlu0 %v6257_v10, %s5610_s1 }
 0x80f   : > { %2324 = vrot.lane.b32.xlu1 %v6263_v15, %s5611_s16 }
 0x811   : > { %2274 = vrot.lane.b32.xlu0 %v6257_v10, %s5611_s16 }
 0x813   : > { %2426 = vrot.lane.b32.xlu1 %v6260_v13, %s5610_s1 }
 0x815   : > { %2376 = vrot.lane.b32.xlu0 %v6255_v7, %s5610_s1 }
 0x817   : > { %2424 = vrot.lane.b32.xlu1 %v6260_v13, %s5611_s16 }
 0x819   : > { %2374 = vrot.lane.b32.xlu0 %v6255_v7, %s5611_s16 }
 0x84a   : > { %v2039_v22 = vpop.xlane.xlu1 %2038 }
 0x84b   : > { %4970 = vrcp.f32 %v2039_v22  ;;  %v2042_v23 = vpop.xlane.xlu0 %2041 }
 0x84c   : > { %4972 = vrcp.f32 %v2042_v23 }
 0x84e   : > { %v2158_v26 = vpop.permute.xlu1 %2157 }
 0x84f   : > { %v2110_v24 = vpop.permute.xlu0 %2109  ;;  %v2163_v35 = vsel %vm1613_vm4, %v2158_v26, 0 }
 0x850   : > { %v2115_v25 = vsel %vm1613_vm4, %v2110_v24, 0 }
 0x851   : > { %4573 = vmatpush3.bf16.msra.mxu0 %v2115_v25 }
 0x852   : > { %4584 = vmatprep.subr.bf16.mxu0 %v5602_v2  ;;  %v2206_v31 = vpop.permute.xlu1 %2205 }
 0x853   : > { %v2211_v36 = vsel %vm1613_vm4, %v2206_v31, 0 }
 0x858   : > { %v4971_v27 = vpop.eup %4970 }
 0x859   : > { %v4973_v28 = vpop.eup %4972  ;;  %v2053_v29 = vmul.f32 %v4971_v27, %v4963_v4 }
 0x85a   : > { %v2054_v30 = vmul.f32 %v4973_v28, %v4965_v5 }
 0x85b   : > { %v2057_v32 = vpack.c.bf16 %v2053_v29, %v2053_v29 }
 0x85c   : > { %v2058_v33 = vpack.c.bf16 %v2054_v30, %v2054_v30 }
 0x85d   : > { %4569 = vmatmul.mubr.msk.bf16.vlgmr.msra.gmra.mxu1 %vm1358_vm3, %v2057_v32 }
 0x85e   : > { %4575 = vmatmul.mubr.msk.bf16.vlgmr.msra.gmra.mxu0 %vm1358_vm3, %v2058_v33  ;;  %4579 = vmatpush3.bf16.msra.mxu1 %v2163_v35 }
 0x85f   : > { %4585 = vmatpush3.bf16.msra.mxu0 %v2211_v36  ;;  %4586 = vmatprep.mubr.msk.bf16.mxu0 %vm5603_vm2, %v5602_v2 }
 0x860   : > { %4596 = vmatprep.subr.bf16.mxu0 %v5602_v2  ;;  %4580 = vmatprep.mubr.msk.bf16.mxu1 %vm5603_vm2, %v5602_v2 }
 0x861   : > { %4590 = vmatprep.subr.bf16.mxu1 %v5602_v2 }
 0x880   : > { %v2048_v37 = vpop.xlane.xlu0 %2047 }
 0x881   : > { %4974 = vrcp.f32 %v2048_v37 }
 0x883   : > { %v2045_v38 = vpop.xlane.xlu1 %2044 }
 0x884   : > { %4976 = vrcp.f32 %v2045_v38  ;;  %v2277_v42 = vpop.permute.xlu0 %2276 }
 0x885   : > { %v2282_v52 = vsel %vm1358_vm3, %v2277_v42, 0 }
 0x887   : > { %v2327_v39 = vpop.permute.xlu1 %2326 }
 0x888   : > { %v2332_v48 = vsel %vm1358_vm3, %v2327_v39, 0  ;;  %v2275_v51 = vpop.permute.xlu0 %2274 }
 0x88b   : > { %v2325_v46 = vpop.permute.xlu1 %2324 }
 0x88c   : > { %v2377_v54 = vpop.permute.xlu0 %2376 }
 0x88d   : > { %v2382_v56 = vsel %vm1358_vm3, %v2377_v54, 0 }
 0x88e   : > { %v4975_v41 = vpop.eup %4974 }
 0x88f   : > { %v2056_v43 = vmul.f32 %v4975_v41, %v4967_v18  ;;  %v2427_v53 = vpop.permute.xlu1 %2426 }
 0x890   : > { %v2432_v55 = vsel %vm1358_vm3, %v2427_v53, 0  ;;  %v2375_v59 = vpop.permute.xlu0 %2374 }
 0x891   : > { %v4977_v44 = vpop.eup %4976  ;;  %v2060_v45 = vpack.c.bf16 %v2056_v43, %v2056_v43 }
 0x892   : > { %v2055_v47 = vmul.f32 %v4977_v44, %v4969_v19 }
 0x893   : > { %4587 = vmatmul.mubr.msk.bf16.vlgmr.msra.gmra.mxu0 %vm1358_vm3, %v2060_v45  ;;  %v2425_v57 = vpop.permute.xlu1 %2424 }
 0x894   : > { %4597 = vmatpush3.bf16.xpose.msra.mxu0 %v2332_v48  ;;  %v2059_v50 = vpack.c.bf16 %v2055_v47, %v2055_v47  ;;  %4598 = vmatprep.mubr.msk.bf16.mxu0 %vm5603_vm2, %v5602_v2 }
 0x895   : > { %4608 = vmatprep.subr.bf16.mxu0 %v5602_v2 }
 0x896   : > { %4581 = vmatmul.mubr.msk.bf16.vlgmr.msra.gmra.mxu1 %vm1358_vm3, %v2059_v50 }
 0x897   : > { %4591 = vmatpush3.bf16.xpose.msra.mxu1 %v2282_v52  ;;  %4592 = vmatprep.mubr.msk.bf16.mxu1 %vm5603_vm2, %v5602_v2 }
 0x898   : > { %4602 = vmatprep.subr.bf16.mxu1 %v5602_v2 }
 0x89b   : > { %4599 = vmatmul.mubr.msk.bf16.vlgmr.msra.gmra.mxu0 %vm1358_vm3, %v2325_v46 }
 0x89c   : > { %4609 = vmatpush3.bf16.xpose.msra.mxu0 %v2432_v55  ;;  %4610 = vmatprep.mubr.msk.bf16.mxu0 %vm5603_vm2, %v5602_v2 }
 0x89d   : > { %4620 = vmatprep.subr.bf16.mxu0 %v5602_v2 }
 0x89e   : > { %4593 = vmatmul.mubr.msk.bf16.vlgmr.msra.gmra.mxu1 %vm1358_vm3, %v2275_v51 }
 0x89f   : > { %4603 = vmatpush3.bf16.xpose.msra.mxu1 %v2382_v56  ;;  %4604 = vmatprep.mubr.msk.bf16.mxu1 %vm5603_vm2, %v5602_v2 }
 0x8a0   : > { %4614 = vmatprep.subr.bf16.mxu1 %v5602_v2 }
 0x8a3   : > { %4611 = vmatmul.mubr.msk.bf16.vlgmr.msra.gmra.mxu0 %vm1358_vm3, %v2425_v57 }
 0x8a4   : > { %4622 = vmatprep.mubr.msk.bf16.mxu0 %vm5603_vm2, %v5602_v2 }
 0x8a6   : > { %4605 = vmatmul.mubr.msk.bf16.vlgmr.msra.gmra.mxu1 %vm1358_vm3, %v2375_v59 }
 0x8a7   : > { %4616 = vmatprep.mubr.msk.bf16.mxu1 %vm5603_vm2, %v5602_v2 }
 0x91d   : > { %v6431_v60 = vpop.f32.mrf.mxu1 }
 0x91e   : > { %v6433_v61 = vpop.f32.mrf.mxu0 }
 0x91f   : > { %v4570_v62 = vpop.f32.mrf.mxu1 }
 0x920   : > { %v4576_v63 = vpop.f32.mrf.mxu0 }
 0x921   : > { %v2106_v0 = vpop.f32.mrf.mxu1 }
 0x922   : > { %v2154_v1 = vpop.f32.mrf.mxu0 }
 0x923   : > { %v4571_v3 = vpop.f32.mrf.mxu1 }
 0x924   : > { %v4577_v4 = vpop.f32.mrf.mxu0 }
 0x953   : > { %v6435_v5 = vpop.f32.mrf.mxu0 }
 0x955   : > { %v4588_v6 = vpop.f32.mrf.mxu0 }
 0x956   : > { %v6437_v8 = vpop.f32.mrf.mxu1 }
 0x957   : > { %v2250_v9 = vpop.f32.mrf.mxu0 }
 0x958   : > { %v4582_v11 = vpop.f32.mrf.mxu1 }
 0x959   : > { %v4589_v12 = vpop.f32.mrf.mxu0 }
 0x95a   : > { %v2202_v14 = vpop.f32.mrf.mxu1 }
 0x95b   : > { %v2368_v16 = vpop.f32.mrf.mxu0 }
 0x95c   : > { %v2475_v17 = vmul.f32 0.35355338, %v2368_v16  ;;  %v4583_v18 = vpop.f32.mrf.mxu1 }
 0x95d   : > { %v4600_v19 = vpop.f32.mrf.mxu0 }
 0x95e   : > { %v2318_v20 = vpop.f32.mrf.mxu1  ;;  %v2479_v21 = vadd.f32 %v2475_v17, %v6294_v40 }
 0x95f   : > { %v2474_v22 = vmul.f32 0.35355338, %v2318_v20  ;;  %v2371_v23 = vpop.f32.mrf.mxu0 }
 0x960   : > { %v2485_v24 = vsel %vm1358_vm3, %v2479_v21, -inf  ;;  %v4594_v25 = vpop.f32.mrf.mxu1 }
 0x961   : > { %2486 = vmax.xlane.f32.xlu1 %v2485_v24  ;;  %v4601_v26 = vpop.f32.mrf.mxu0  ;;  %v2478_v27 = vadd.f32 %v2474_v22, %v6291_v34 }
 0x962   : > { %v2321_v28 = vpop.f32.mrf.mxu1 }
 0x963   : > { %v2468_v29 = vpop.f32.mrf.mxu0  ;;  %v2482_v30 = vsel %vm1358_vm3, %v2478_v27, -inf }
 0x964   : > { %2483 = vmax.xlane.f32.xlu0 %v2482_v30  ;;  %v4595_v31 = vpop.f32.mrf.mxu1  ;;  %v2477_v35 = vmul.f32 0.35355338, %v2468_v29 }
 0x965   : > { %v4612_v32 = vpop.f32.mrf.mxu0 }
 0x966   : > { %v2418_v33 = vpop.f32.mrf.mxu1  ;;  %v2481_v44 = vadd.f32 %v2477_v35, %v6302_v58 }
 0x967   : > { %v2476_v36 = vmul.f32 0.35355338, %v2418_v33  ;;  %v2471_v37 = vpop.f32.mrf.mxu0 }
 0x968   : > { %v4606_v38 = vpop.f32.mrf.mxu1  ;;  %v2491_v46 = vsel %vm1358_vm3, %v2481_v44, -inf }
 0x969   : > { %v4613_v39 = vpop.f32.mrf.mxu0  ;;  %v2480_v41 = vadd.f32 %v2476_v36, %v6298_v49 }
 0x96a   : > { %v2421_v42 = vpop.f32.mrf.mxu1 }
 0x96b   : > { %v2488_v43 = vsel %vm1358_vm3, %v2480_v41, -inf }
 0x96c   : > { %2489 = vmax.xlane.f32.xlu0 %v2488_v43  ;;  %v4607_v45 = vpop.f32.mrf.mxu1 }
 0x970   : > { %2492 = vmax.xlane.f32.xlu0 %v2491_v46 }
 0x972   : > { %2530 = vrot.lane.b32.xlu1 %v6257_v10, %s5612_s30 }
 0x9ea   : > { %v2487_v47 = vpop.xlane.xlu1 %2486 }
 0x9eb   : > { %v2495_v48 = vsub.f32 %v2479_v21, %v2487_v47 }
 0x9ed   : > { %v2500_v50 = vmul.f32 1.442695, %v2495_v48  ;;  %v2484_v51 = vpop.xlane.xlu0 %2483 }
 0x9ee   : > { %v2531_v52 = vpop.permute.xlu1 %2530  ;;  %v2494_v53 = vsub.f32 %v2478_v27, %v2484_v51 }
 0x9ef   : > { %4978 = vpow2.f32 %v2500_v50  ;;  %v2536_v54 = vsel %vm1613_vm4, %v2531_v52, 0 }
 0x9f0   : > { %v2498_v55 = vmul.f32 1.442695, %v2494_v53  ;;  %4615 = vmatpush3.bf16.msra.mxu1 %v2536_v54 }
 0x9f1   : > { %4626 = vmatprep.subr.bf16.mxu1 %v5602_v2 }
 0x9f2   : > { %4980 = vpow2.f32 %v2498_v55 }
 0x9f5   : > { %v2490_v63 = vpop.xlane.xlu0 %2489 }
 0x9f6   : > { %v2496_v4 = vsub.f32 %v2480_v41, %v2490_v63 }
 0x9f8   : > { %v2502_v6 = vmul.f32 1.442695, %v2496_v4 }
 0x9f9   : > { %v2493_v0 = vpop.xlane.xlu0 %2492 }
 0x9fa   : > { %v2497_v1 = vsub.f32 %v2481_v44, %v2493_v0 }
 0x9fc   : > { %v4979_v56 = vpop.eup %4978  ;;  %v2504_v3 = vmul.f32 1.442695, %v2497_v1 }
 0x9fd   : > { %v2509_v57 = vsel %vm1358_vm3, %v4979_v56, 0.0 }
 0x9fe   : > { %2510 = vadd.xlane.f32.xlu0 %v2509_v57  ;;  %4982 = vpow2.f32 %v2504_v3 }
 0x9ff   : > { %v4981_v59 = vpop.eup %4980  ;;  %4984 = vpow2.f32 %v2502_v6 }
 0xa00   : > { %v2506_v62 = vsel %vm1358_vm3, %v4981_v59, 0.0 }
 0xa01   : > { %2507 = vadd.xlane.f32.xlu1 %v2506_v62 }
 0xa0b   : > { %v4983_v9 = vpop.eup %4982 }
 0xa0c   : > { %v2515_v11 = vsel %vm1358_vm3, %v4983_v9, 0.0  ;;  %v4985_v12 = vpop.eup %4984 }
 0xa0d   : > { %v2512_v14 = vsel %vm1358_vm3, %v4985_v12, 0.0 }
 0xa12   : > { %2626 = vrot.lane.b32.xlu1 %v6255_v7, %s5612_s30 }
 0xa14   : > { %2578 = vrot.lane.b32.xlu0 %v6263_v15, %s5612_s30 }
 0xa16   : > { %2674 = vrot.lane.b32.xlu1 %v6260_v13, %s5612_s30 }
 0xa33   : > { %2516 = vadd.xlane.f32.xlu0 %v2515_v11 }
 0xa3a   : > { %2513 = vadd.xlane.f32.xlu1 %v2512_v14 }
 0xa49   : > { %2745 = vrot.lane.b32.xlu0 %v6257_v10, %s5613_s28 }
 0xa4b   : > { %2795 = vrot.lane.b32.xlu1 %v6263_v15, %s5613_s28 }
 0xa4d   : > { %2743 = vrot.lane.b32.xlu0 %v6257_v10, %s5614_s7 }
 0xa4f   : > { %2793 = vrot.lane.b32.xlu1 %v6263_v15, %s5614_s7 }
 0xa51   : > { %2845 = vrot.lane.b32.xlu0 %v6255_v7, %s5613_s28 }
 0xa53   : > { %2895 = vrot.lane.b32.xlu1 %v6260_v13, %s5613_s28 }
 0xa55   : > { %2843 = vrot.lane.b32.xlu0 %v6255_v7, %s5614_s7 }
 0xa57   : > { %2893 = vrot.lane.b32.xlu1 %v6260_v13, %s5614_s7 }
 0xa87   : > { %v2511_v16 = vpop.xlane.xlu0 %2510 }
 0xa88   : > { %4986 = vrcp.f32 %v2511_v16 }
 0xa8a   : > { %v2508_v17 = vpop.xlane.xlu1 %2507 }
 0xa8b   : > { %4988 = vrcp.f32 %v2508_v17  ;;  %v2579_v18 = vpop.permute.xlu0 %2578 }
 0xa8c   : > { %v2584_v19 = vsel %vm1613_vm4, %v2579_v18, 0 }
 0xa8d   : > { %4621 = vmatpush3.bf16.msra.mxu0 %v2584_v19 }
 0xa8e   : > { %4632 = vmatprep.subr.bf16.mxu0 %v5602_v2  ;;  %v2627_v20 = vpop.permute.xlu1 %2626 }
 0xa8f   : > { %v2632_v29 = vsel %vm1613_vm4, %v2627_v20, 0 }
 0xa92   : > { %v2675_v23 = vpop.permute.xlu1 %2674 }
 0xa93   : > { %v2680_v27 = vsel %vm1613_vm4, %v2675_v23, 0 }
 0xa95   : > { %v4987_v21 = vpop.eup %4986 }
 0xa96   : > { %v2523_v22 = vmul.f32 %v4987_v21, %v4979_v56 }
 0xa98   : > { %v4989_v24 = vpop.eup %4988  ;;  %v2527_v25 = vpack.c.bf16 %v2523_v22, %v2523_v22 }
 0xa99   : > { %v2522_v26 = vmul.f32 %v4989_v24, %v4981_v59 }
 0xa9a   : > { %4623 = vmatmul.mubr.msk.bf16.vlgmr.msra.gmra.mxu0 %vm1358_vm3, %v2527_v25 }
 0xa9b   : > { %4633 = vmatpush3.bf16.msra.mxu0 %v2680_v27  ;;  %v2526_v28 = vpack.c.bf16 %v2522_v26, %v2522_v26  ;;  %4634 = vmatprep.mubr.msk.bf16.mxu0 %vm5603_vm2, %v5602_v2 }
 0xa9c   : > { %4644 = vmatprep.subr.bf16.mxu0 %v5602_v2 }
 0xa9d   : > { %4617 = vmatmul.mubr.msk.bf16.vlgmr.msra.gmra.mxu1 %vm1358_vm3, %v2526_v28 }
 0xa9e   : > { %4627 = vmatpush3.bf16.msra.mxu1 %v2632_v29  ;;  %4628 = vmatprep.mubr.msk.bf16.mxu1 %vm5603_vm2, %v5602_v2 }
 0xa9f   : > { %4638 = vmatprep.subr.bf16.mxu1 %v5602_v2 }
 0xabc   : > { %v2517_v30 = vpop.xlane.xlu0 %2516 }
 0xabd   : > { %4990 = vrcp.f32 %v2517_v30 }
 0xac0   : > { %v2746_v38 = vpop.permute.xlu0 %2745 }
 0xac1   : > { %v2751_v46 = vsel %vm1358_vm3, %v2746_v38, 0 }
 0xac3   : > { %v2514_v31 = vpop.xlane.xlu1 %2513 }
 0xac4   : > { %4992 = vrcp.f32 %v2514_v31  ;;  %v2744_v45 = vpop.permute.xlu0 %2743 }
 0xac7   : > { %v2796_v32 = vpop.permute.xlu1 %2795 }
 0xac8   : > { %v2801_v39 = vsel %vm1358_vm3, %v2796_v32, 0  ;;  %v2846_v48 = vpop.permute.xlu0 %2845 }
 0xac9   : > { %v2851_v50 = vsel %vm1358_vm3, %v2846_v48, 0 }
 0xaca   : > { %v4991_v33 = vpop.eup %4990 }
 0xacb   : > { %v2525_v35 = vmul.f32 %v4991_v33, %v4983_v9  ;;  %v2794_v37 = vpop.permute.xlu1 %2793 }
 0xacc   : > { %v2844_v52 = vpop.permute.xlu0 %2843 }
 0xacd   : > { %v2529_v36 = vpack.c.bf16 %v2525_v35, %v2525_v35 }
 0xacf   : > { %4635 = vmatmul.mubr.msk.bf16.vlgmr.msra.gmra.mxu0 %vm1358_vm3, %v2529_v36  ;;  %v2896_v43 = vpop.permute.xlu1 %2895 }
 0xad0   : > { %4645 = vmatpush3.bf16.xpose.msra.mxu0 %v2801_v39  ;;  %4646 = vmatprep.mubr.msk.bf16.mxu0 %vm5603_vm2, %v5602_v2  ;;  %v2901_v47 = vsel %vm1358_vm3, %v2896_v43, 0 }
 0xad1   : > { %v4993_v41 = vpop.eup %4992  ;;  %4656 = vmatprep.subr.bf16.mxu0 %v5602_v2 }
 0xad2   : > { %v2524_v42 = vmul.f32 %v4993_v41, %v4985_v12 }
 0xad3   : > { %v2894_v51 = vpop.permute.xlu1 %2893 }
 0xad4   : > { %v2528_v44 = vpack.c.bf16 %v2524_v42, %v2524_v42 }
 0xad6   : > { %4629 = vmatmul.mubr.msk.bf16.vlgmr.msra.gmra.mxu1 %vm1358_vm3, %v2528_v44 }
 0xad7   : > { %4639 = vmatpush3.bf16.xpose.msra.mxu1 %v2751_v46  ;;  %4647 = vmatmul.mubr.msk.bf16.vlgmr.msra.gmra.mxu0 %vm1358_vm3, %v2794_v37 }
 0xad8   : > { %4657 = vmatpush3.bf16.xpose.msra.mxu0 %v2901_v47  ;;  %4640 = vmatprep.mubr.msk.bf16.mxu1 %vm5603_vm2, %v5602_v2 }
 0xad9   : > { %4650 = vmatprep.subr.bf16.mxu1 %v5602_v2  ;;  %4658 = vmatprep.mubr.msk.bf16.mxu0 %vm5603_vm2, %v5602_v2 }
 0xada   : > { %4668 = vmatprep.subr.bf16.mxu0 %v5602_v2 }
 0xade   : > { %4641 = vmatmul.mubr.msk.bf16.vlgmr.msra.gmra.mxu1 %vm1358_vm3, %v2744_v45 }
 0xadf   : > { %4651 = vmatpush3.bf16.xpose.msra.mxu1 %v2851_v50  ;;  %4659 = vmatmul.mubr.msk.bf16.vlgmr.msra.gmra.mxu0 %vm1358_vm3, %v2894_v51 }
 0xae0   : > { %4652 = vmatprep.mubr.msk.bf16.mxu1 %vm5603_vm2, %v5602_v2  ;;  %4662 = vmatprep.subr.bf16.mxu1 %v5602_v2 }
 0xae1   : > { %4670 = vmatprep.mubr.msk.bf16.mxu0 %vm5603_vm2, %v5602_v2 }
 0xae6   : > { %4653 = vmatmul.mubr.msk.bf16.vlgmr.msra.gmra.mxu1 %vm1358_vm3, %v2844_v52 }
 0xae7   : > { %4664 = vmatprep.mubr.msk.bf16.mxu1 %vm5603_vm2, %v5602_v2 }
 0xb5a   : > { %v6503_v53 = vpop.f32.mrf.mxu0 }
 0xb5c   : > { %v4624_v54 = vpop.f32.mrf.mxu0 }
 0xb5d   : > { %v6505_v55 = vpop.f32.mrf.mxu1 }
 0xb5e   : > { %v2623_v56 = vpop.f32.mrf.mxu0 }
 0xb5f   : > { %v4618_v57 = vpop.f32.mrf.mxu1 }
 0xb60   : > { %v4625_v59 = vpop.f32.mrf.mxu0 }
 0xb61   : > { %v2575_v62 = vpop.f32.mrf.mxu1 }
 0xb63   : > { %v4619_v63 = vpop.f32.mrf.mxu1 }
 0xb8f   : > { %v6507_v0 = vpop.f32.mrf.mxu0 }
 0xb91   : > { %v4636_v1 = vpop.f32.mrf.mxu0 }
 0xb93   : > { %v2719_v3 = vpop.f32.mrf.mxu0 }
 0xb95   : > { %v4637_v4 = vpop.f32.mrf.mxu0 }
 0xb96   : > { %v6509_v6 = vpop.f32.mrf.mxu1 }
 0xb97   : > { %v2837_v9 = vpop.f32.mrf.mxu0 }
 0xb98   : > { %v2944_v11 = vmul.f32 0.35355338, %v2837_v9  ;;  %v4630_v12 = vpop.f32.mrf.mxu1 }
 0xb99   : > { %v4648_v14 = vpop.f32.mrf.mxu0 }
 0xb9a   : > { %v2671_v16 = vpop.f32.mrf.mxu1  ;;  %v2948_v17 = vadd.f32 %v2944_v11, %v6294_v40 }
 0xb9b   : > { %v2840_v18 = vpop.f32.mrf.mxu0 }
 0xb9c   : > { %v4631_v19 = vpop.f32.mrf.mxu1  ;;  %v2954_v20 = vsel %vm1358_vm3, %v2948_v17, -inf }
 0xb9d   : > { %2955 = vmax.xlane.f32.xlu1 %v2954_v20  ;;  %v4649_v21 = vpop.f32.mrf.mxu0 }
 0xb9e   : > { %v2787_v22 = vpop.f32.mrf.mxu1 }
 0xb9f   : > { %v2943_v23 = vmul.f32 0.35355338, %v2787_v22  ;;  %v2937_v24 = vpop.f32.mrf.mxu0 }
 0xba0   : > { %v4642_v25 = vpop.f32.mrf.mxu1  ;;  %v2946_v33 = vmul.f32 0.35355338, %v2937_v24 }
 0xba1   : > { %v4660_v26 = vpop.f32.mrf.mxu0  ;;  %v2947_v27 = vadd.f32 %v2943_v23, %v6291_v34 }
 0xba2   : > { %v2790_v28 = vpop.f32.mrf.mxu1  ;;  %v2950_v41 = vadd.f32 %v2946_v33, %v6302_v58 }
 0xba3   : > { %v2940_v29 = vpop.f32.mrf.mxu0  ;;  %v2951_v30 = vsel %vm1358_vm3, %v2947_v27, -inf }
 0xba4   : > { %2952 = vmax.xlane.f32.xlu0 %v2951_v30  ;;  %v4643_v31 = vpop.f32.mrf.mxu1  ;;  %v2960_v42 = vsel %vm1358_vm3, %v2950_v41, -inf }
 0xba5   : > { %v4661_v40 = vpop.f32.mrf.mxu0 }
 0xba6   : > { %v2887_v32 = vpop.f32.mrf.mxu1  ;;  %v4938_v40 = vld [vmem:[%s6210_s4 + $0x8] sm:$0xff]  }
 0xba7   : > { %v2945_v35 = vmul.f32 0.35355338, %v2887_v32  ;;  %v4939_v32 = vld [vmem:[%s6210_s4] sm:$0xff]   ;;  %s6798_s4 = scalar_lea.vmem [#allocation12], %s6155_s24 }
 0xba8   : > { %v4654_v36 = vpop.f32.mrf.mxu1 }
 0xba9   : > { %v2949_v37 = vadd.f32 %v2945_v35, %v6298_v49 }
 0xbaa   : > { %v2890_v38 = vpop.f32.mrf.mxu1 }
 0xbab   : > { %v2957_v39 = vsel %vm1358_vm3, %v2949_v37, -inf }
 0xbac   : > { %2958 = vmax.xlane.f32.xlu0 %v2957_v39  ;;  %v4655_v34 = vpop.f32.mrf.mxu1 }
 0xbae   : > { %2999 = vrot.lane.b32.xlu1 %v6257_v10, %s5615_s3 }
 0xbb0   : > { %2961 = vmax.xlane.f32.xlu0 %v2960_v42 }
 0xc26   : > { %v2956_v43 = vpop.xlane.xlu1 %2955 }
 0xc27   : > { %v2964_v44 = vsub.f32 %v2948_v17, %v2956_v43 }
 0xc29   : > { %v2969_v45 = vmul.f32 1.442695, %v2964_v44 }
 0xc2a   : > { %v3000_v46 = vpop.permute.xlu1 %2999 }
 0xc2b   : > { %4994 = vpow2.f32 %v2969_v45  ;;  %v3005_v49 = vsel %vm1613_vm4, %v3000_v46, 0 }
 0xc2c   : > { %4663 = vmatpush3.bf16.msra.mxu1 %v3005_v49 }
 0xc2d   : > { %v2953_v47 = vpop.xlane.xlu0 %2952  ;;  %4674 = vmatprep.subr.bf16.mxu1 %v5602_v2 }
 0xc2e   : > { %v2963_v58 = vsub.f32 %v2947_v27, %v2953_v47 }
 0xc30   : > { %v2967_v48 = vmul.f32 1.442695, %v2963_v58 }
 0xc32   : > { %4996 = vpow2.f32 %v2967_v48 }
 0xc35   : > { %v2959_v50 = vpop.xlane.xlu0 %2958 }
 0xc36   : > { %v2965_v51 = vsub.f32 %v2949_v37, %v2959_v50 }
 0xc38   : > { %v4995_v10 = vpop.eup %4994  ;;  %v2971_v52 = vmul.f32 1.442695, %v2965_v51 }
 0xc39   : > { %v2978_v54 = vsel %vm1358_vm3, %v4995_v10, 0.0  ;;  %v2962_v56 = vpop.xlane.xlu0 %2961 }
 0xc3a   : > { %4998 = vpow2.f32 %v2971_v52  ;;  %2979 = vadd.xlane.f32.xlu0 %v2978_v54  ;;  %v2966_v57 = vsub.f32 %v2950_v41, %v2962_v56 }
 0xc3c   : > { %v2973_v59 = vmul.f32 1.442695, %v2966_v57 }
 0xc3e   : > { %5000 = vpow2.f32 %v2973_v59 }
 0xc3f   : > { %v4997_v62 = vpop.eup %4996 }
 0xc40   : > { %v2975_v63 = vsel %vm1358_vm3, %v4997_v62, 0.0 }
 0xc41   : > { %2976 = vadd.xlane.f32.xlu1 %v2975_v63  ;;  %v4343_v63 = vld [vmem:[%s6798_s4] ss:$0 sm:$0xff] }
 0xc47   : > { %v4999_v1 = vpop.eup %4998 }
 0xc48   : > { %v2981_v3 = vsel %vm1358_vm3, %v4999_v1, 0.0 }
 0xc49   : > { %2982 = vadd.xlane.f32.xlu1 %v2981_v3 }
 0xc4b   : > { %v5001_v4 = vpop.eup %5000 }
 0xc4c   : > { %v2984_v9 = vsel %vm1358_vm3, %v5001_v4, 0.0 }
 0xc4d   : > { %2985 = vadd.xlane.f32.xlu0 %v2984_v9 }
 0xc5a   : > { %3095 = vrot.lane.b32.xlu1 %v6255_v7, %s5615_s3 }
 0xc5e   : > { %3143 = vrot.lane.b32.xlu1 %v6260_v13, %s5615_s3 }
 0xc62   : > { %2259 = vrot.lane.b32.xlu1 %v6433_v61, %s5616_s5 }
 0xc63   : > { %3047 = vrot.lane.b32.xlu0 %v6263_v15, %s5615_s3 }
 0xc66   : > { %2263 = vrot.lane.b32.xlu1 %v6435_v5, %s5616_s5 }
 0xc67   : > { %2257 = vrot.lane.b32.xlu0 %v6431_v60, %s5616_s5 }
 0xc6a   : > { %2728 = vrot.lane.b32.xlu1 %v6503_v53, %s5617_s0 }
 0xc6b   : > { %2261 = vrot.lane.b32.xlu0 %v6437_v8, %s5616_s5 }
 0xc6e   : > { %2732 = vrot.lane.b32.xlu1 %v6507_v0, %s5617_s0 }
 0xc6f   : > { %2726 = vrot.lane.b32.xlu0 %v6505_v55, %s5617_s0 }
 0xc73   : > { %2730 = vrot.lane.b32.xlu0 %v6509_v6, %s5617_s0 }
 0xcc3   : > { %v2980_v7 = vpop.xlane.xlu0 %2979 }
 0xcc4   : > { %5002 = vrcp.f32 %v2980_v7  ;;  %v5034_v7 = vld [vmem:[#allocation2] sm:$0xff] }
 0xcca   : > { %v2977_v13 = vpop.xlane.xlu1 %2976 }
 0xccb   : > { %5004 = vrcp.f32 %v2977_v13 }
 0xcd1   : > { %v5003_v61 = vpop.eup %5002 }
 0xcd2   : > { %v2983_v15 = vpop.xlane.xlu1 %2982  ;;  %v2992_v12 = vmul.f32 %v5003_v61, %v4995_v10 }
 0xcd3   : > { %5006 = vrcp.f32 %v2983_v15 }
 0xcd4   : > { %v2996_v16 = vpack.c.bf16 %v2992_v12, %v2992_v12  ;;  %v5036_v12 = vld [vmem:[#allocation2 + $0x8] sm:$0xff] }
 0xcd6   : > { %v3096_v5 = vpop.permute.xlu1 %3095  ;;  %v2986_v60 = vpop.xlane.xlu0 %2985 }
 0xcd7   : > { %5008 = vrcp.f32 %v2986_v60  ;;  %v3101_v6 = vsel %vm1613_vm4, %v3096_v5, 0 }
 0xcd8   : > { %v5005_v11 = vpop.eup %5004 }
 0xcd9   : > { %v2991_v53 = vmul.f32 %v5005_v11, %v4997_v62  ;;  %v5035_v11 = vld [vmem:[#allocation2 + $0x10] sm:$0xff] }
 0xcda   : > { %v3144_v8 = vpop.permute.xlu1 %3143  ;;  %v3048_v14 = vpop.permute.xlu0 %3047 }
 0xcdb   : > { %v3053_v0 = vsel %vm1613_vm4, %v3048_v14, 0  ;;  %v2995_v55 = vpack.c.bf16 %v2991_v53, %v2991_v53  ;;  %v3149_v19 = vsel %vm1613_vm4, %v3144_v8, 0 }
 0xcdc   : > { %4669 = vmatpush3.bf16.msra.mxu0 %v3053_v0 }
 0xcdd   : > { %4665 = vmatmul.mubr.msk.bf16.vlgmr.msra.gmra.mxu1 %vm1358_vm3, %v2995_v55  ;;  %4680 = vmatprep.subr.bf16.mxu0 %v5602_v2  ;;  %v5037_v55 = vld [vmem:[#allocation2 + $0x18] sm:$0xff] }
 0xcde   : > { %4675 = vmatpush3.bf16.msra.mxu1 %v3101_v6  ;;  %v2260_v17 = vpop.permute.xlu1 %2259  ;;  %v2258_v18 = vpop.permute.xlu0 %2257  ;;  %4676 = vmatprep.mubr.msk.bf16.mxu1 %vm5603_vm2, %v5602_v2 }
 0xcdf   : > { %2271 = vst.msk [vmem:[#allocation3 + $0x8] sm:$0xff] %vm2269_vm5, %v2260_v17  ;;  %2270 = vst.msk [vmem:[#allocation3] sm:$0xff] %vm2269_vm5, %v2258_v18  ;;  %4671 = vmatmul.mubr.msk.bf16.vlgmr.msra.gmra.mxu0 %vm1358_vm3, %v2996_v16  ;;  %4686 = vmatprep.subr.bf16.mxu1 %v4938_v40 }
 0xce0   : > { %v5007_v20 = vpop.eup %5006  ;;  %4681 = vmatpush3.bf16.msra.mxu0 %v3149_v19  ;;  %4682 = vmatprep.mubr.msk.bf16.mxu0 %vm5603_vm2, %v5602_v2 }
 0xce1   : > { %v2993_v21 = vmul.f32 %v5007_v20, %v4999_v1 }
 0xce2   : > { %v2264_v22 = vpop.permute.xlu1 %2263  ;;  %v2262_v23 = vpop.permute.xlu0 %2261 }
 0xce3   : > { %2273 = vst.msk [vmem:[#allocation3 + $0x18] sm:$0xff] %vm2269_vm5, %v2264_v22  ;;  %2272 = vst.msk [vmem:[#allocation3 + $0x10] sm:$0xff] %vm2269_vm5, %v2262_v23  ;;  %v2997_v24 = vpack.c.bf16 %v2993_v21, %v2993_v21 }
 0xce4   : > { %v5009_v25 = vpop.eup %5008 }
 0xce5   : > { %4677 = vmatmul.mubr.msk.bf16.vlgmr.msra.gmra.mxu1 %vm1358_vm3, %v2997_v24  ;;  %v2994_v26 = vmul.f32 %v5009_v25, %v5001_v4 }
 0xce6   : > { %v2729_v27 = vpop.permute.xlu1 %2728  ;;  %v2727_v28 = vpop.permute.xlu0 %2726  ;;  %4687 = vmatpush3.bf16.msra.mxu1 %v4938_v40 }
 0xce7   : > { %2740 = vst.msk [vmem:[#allocation3 + $0x8] sm:$0xff] %vm2738_vm6, %v2729_v27  ;;  %2739 = vst.msk [vmem:[#allocation3] sm:$0xff] %vm2738_vm6, %v2727_v28  ;;  %v2998_v2 = vpack.c.bf16 %v2994_v26, %v2994_v26  ;;  %4688 = vmatprep.subr.bf16.mxu1 %v4939_v32 }
 0xce9   : > { %4683 = vmatmul.mubr.msk.bf16.vlgmr.msra.gmra.mxu0 %vm1358_vm3, %v2998_v2 }
 0xcea   : > { %v2733_v29 = vpop.permute.xlu1 %2732  ;;  %v2731_v30 = vpop.permute.xlu0 %2730  ;;  %4689 = vmatpush3.bf16.msra.mxu1 %v4939_v32 }
 0xceb   : > { %2742 = vst.msk [vmem:[#allocation3 + $0x18] sm:$0xff] %vm2738_vm6, %v2733_v29  ;;  %2741 = vst.msk [vmem:[#allocation3 + $0x10] sm:$0xff] %vm2738_vm6, %v2731_v30 }
 0xd9d   : > { %v3041_v31 = vpop.f32.mrf.mxu1 }
 0xd9e   : > { %3195 = vrot.lane.b32.xlu0 %v3041_v31, %s5618_s21 }
 0xd9f   : > { %v4666_v33 = vpop.f32.mrf.mxu1  ;;  %v3089_v35 = vpop.f32.mrf.mxu0 }
 0xda0   : > { %3197 = vrot.lane.b32.xlu1 %v3089_v35, %s5618_s21 }
 0xda1   : > { %v3044_v36 = vpop.f32.mrf.mxu1  ;;  %v4672_v37 = vpop.f32.mrf.mxu0 }
 0xda2   : > { %v4940_v36 = vld [vmem:[%s6170_s27 + $0x8] sm:$0xff]   ;;  %v4941_v37 = vld [vmem:[%s6170_s27] sm:$0xff]   ;;  %s6799_s27 = scalar_lea.vmem [#allocation13], %s6155_s24 }
 0xda3   : > { %v4667_v38 = vpop.f32.mrf.mxu1  ;;  %v3092_v39 = vpop.f32.mrf.mxu0  ;;  %4694 = vmatprep.subr.bf16.mxu0 %v4940_v36 }
 0xda4   : > { %4695 = vmatpush3.bf16.msra.mxu0 %v4940_v36 }
 0xda5   : > { %v4673_v41 = vpop.f32.mrf.mxu0  ;;  %v3137_v34 = vpop.f32.mrf.mxu1  ;;  %4696 = vmatprep.subr.bf16.mxu0 %v4941_v37 }
 0xda6   : > { %3199 = vrot.lane.b32.xlu0 %v3137_v34, %s5618_s21 }
 0xda7   : > { %v4678_v42 = vpop.f32.mrf.mxu1 }
 0xda8   : > { %4697 = vmatpush3.bf16.msra.mxu0 %v4941_v37 }
 0xda9   : > { %v3140_v43 = vpop.f32.mrf.mxu1  ;;  %v3185_v44 = vpop.f32.mrf.mxu0 }
 0xdaa   : > { %3201 = vrot.lane.b32.xlu1 %v3185_v44, %s5618_s21 }
 0xdab   : > { %v4679_v45 = vpop.f32.mrf.mxu1  ;;  %v4684_v46 = vpop.f32.mrf.mxu0 }
 0xdad   : > { %v3188_v49 = vpop.f32.mrf.mxu0 }
 0xdaf   : > { %v4685_v47 = vpop.f32.mrf.mxu0 }
 0xe10   : > { %v3196_v58 = vpop.permute.xlu0 %3195 }
 0xe11   : > { %3208 = vst.msk [vmem:[#allocation3] sm:$0xff] %vm3207_vm7, %v3196_v58 }
 0xe12   : > { %v3198_v48 = vpop.permute.xlu1 %3197 }
 0xe13   : > { %3209 = vst.msk [vmem:[#allocation3 + $0x8] sm:$0xff] %vm3207_vm7, %v3198_v48 }
 0xe18   : > { %v3200_v50 = vpop.permute.xlu0 %3199  ;;  %v3212_v51 = vld [vmem:[#allocation3] sm:$0xff] }
 0xe19   : > { %3210 = vst.msk [vmem:[#allocation3 + $0x10] sm:$0xff] %vm3207_vm7, %v3200_v50 }
 0xe1a   : > { %v3213_v10 = vld [vmem:[#allocation3 + $0x8] sm:$0xff] }
 0xe1b   : > { %v3216_v52 = vpack.c.bf16 %v3213_v10, %v3212_v51  ;;  %v4348_v51 = vld [vmem:[%s6799_s27] ss:$0 sm:$0xff] }
 0xe1c   : > { %v3202_v54 = vpop.permute.xlu1 %3201 }
 0xe1d   : > { %3211 = vst.msk [vmem:[#allocation3 + $0x18] sm:$0xff] %vm3207_vm7, %v3202_v54  ;;  %4690 = vmatprep.mubr.msk.bf16.mxu1 %vm1249_vm1, %v3216_v52 }
 0xe20   : > { %v3214_v56 = vld [vmem:[#allocation3 + $0x10] sm:$0xff] }
 0xe24   : > { %v3215_v57 = vld [vmem:[#allocation3 + $0x18] sm:$0xff] }
 0xe25   : > { %v3217_v59 = vpack.c.bf16 %v3215_v57, %v3214_v56 }
 0xe27   : > { %4691 = vmatmul.mubr.msk.bf16.vlgmr.msra.gmra.mxu1 %vm1249_vm1, %v3217_v59  ;;  %v4349_v59 = vld [vmem:[%s6800_s26] ss:$0 sm:$0xff] }
 0xee7   : > { %v4692_v62 = vpop.f32.mrf.mxu1 }
 0xee8   : > { %v3290_v3 = vadd.f32 %v4692_v62, %v4343_v63 }
 0xee9   : > { %v3281_v1 = vpop.f32.mrf.mxu1 }
 0xeea   : > { %v3282_v4 = vadd.f32 %v4343_v63, %v3281_v1  ;;  %v3298_v53 = vadd.f32 %v5035_v11, %v3290_v3  ;;  %v4943_v11 = vld [vmem:[%s6215_s20 + $0x10] sm:$0xff]  }
 0xeeb   : > { %v4693_v9 = vpop.f32.mrf.mxu1 }
 0xeec   : > { %v3296_v13 = vadd.f32 %v5034_v7, %v3282_v4  ;;  %v3293_v61 = vadd.f32 %v4693_v9, %v4343_v63  ;;  %v3308_v0 = vsel %vm1249_vm1, %v3298_v53, 0.0 }
 0xeed   : > { %v3284_v15 = vpop.f32.mrf.mxu1 }
 0xeee   : > { %v3285_v5 = vadd.f32 %v4343_v63, %v3284_v15  ;;  %v3302_v60 = vsel %vm1249_vm1, %v3296_v13, 0.0  ;;  %v3299_v6 = vadd.f32 %v5037_v55, %v3293_v61 }
 0xeef   : > { %3303 = vadd.xlane.f32.xlu0 %v3302_v60  ;;  %v4942_v60 = vld [vmem:[%s6215_s20 + $0x18] sm:$0xff]  }
 0xef0   : > { %v3297_v8 = vadd.f32 %v5036_v12, %v3285_v5  ;;  %v3311_v16 = vsel %vm1249_vm1, %v3299_v6, 0.0  ;;  %4702 = vmatprep.subr.bf16.mxu1 %v4942_v60  ;;  %v4945_v12 = vld [vmem:[%s6215_s20] sm:$0xff]  }
 0xef1   : > { %4703 = vmatpush3.bf16.msra.mxu1 %v4942_v60 }
 0xef2   : > { %v3305_v14 = vsel %vm1249_vm1, %v3297_v8, 0.0  ;;  %4704 = vmatprep.subr.bf16.mxu1 %v4943_v11 }
 0xef3   : > { %3306 = vadd.xlane.f32.xlu1 %v3305_v14  ;;  %3309 = vadd.xlane.f32.xlu0 %v3308_v0 }
 0xef5   : > { %4705 = vmatpush3.bf16.msra.mxu1 %v4943_v11 }
 0xef7   : > { %3312 = vadd.xlane.f32.xlu0 %v3311_v16 }
 0xf78   : > { %v3304_v17 = vpop.xlane.xlu0 %3303 }
 0xf79   : > { %v3315_v18 = vmul.f32 0.03125, %v3304_v17 }
 0xf7b   : > { %v3319_v19 = vsub.f32 %v3296_v13, %v3315_v18 }
 0xf7c   : > { %v3307_v20 = vpop.xlane.xlu1 %3306  ;;  %v3310_v21 = vpop.xlane.xlu0 %3309 }
 0xf7d   : > { %v3316_v22 = vmul.f32 0.03125, %v3307_v20  ;;  %v3317_v23 = vmul.f32 0.03125, %v3310_v21  ;;  %v3323_v24 = vmul.f32 %v3319_v19, %v3319_v19 }
 0xf7f   : > { %v3320_v25 = vsub.f32 %v3297_v8, %v3316_v22  ;;  %v3321_v26 = vsub.f32 %v3298_v53, %v3317_v23  ;;  %v3327_v27 = vsel %vm1249_vm1, %v3323_v24, 0.0  ;;  %v4944_v53 = vld [vmem:[%s6215_s20 + $0x8] sm:$0xff]   ;;  %v4350_v8 = vld [vmem:[%s6801_s2] ss:$0 sm:$0xff]  ;;  %s6802_s20 = scalar_lea.vmem [#allocation19], %s6155_s24  ;;  %s6805_s24 = sld [smem:[#allocation44_spill]] }
 0xf80   : > { %3328 = vadd.xlane.f32.xlu1 %v3327_v27  ;;  %v3313_v28 = vpop.xlane.xlu0 %3312  ;;  %4706 = vmatprep.subr.bf16.mxu1 %v4944_v53 }
 0xf81   : > { %v3318_v2 = vmul.f32 0.03125, %v3313_v28  ;;  %v3324_v29 = vmul.f32 %v3320_v25, %v3320_v25  ;;  %v3325_v30 = vmul.f32 %v3321_v26, %v3321_v26  ;;  %4707 = vmatpush3.bf16.msra.mxu1 %v4944_v53 }
 0xf82   : > { %4708 = vmatprep.subr.bf16.mxu1 %v4945_v12 }
 0xf83   : > { %v3322_v31 = vsub.f32 %v3299_v6, %v3318_v2  ;;  %v3330_v40 = vsel %vm1249_vm1, %v3324_v29, 0.0  ;;  %v3333_v32 = vsel %vm1249_vm1, %v3325_v30, 0.0 }
 0xf84   : > { %3331 = vadd.xlane.f32.xlu0 %v3330_v40  ;;  %3334 = vadd.xlane.f32.xlu1 %v3333_v32 }
 0xf85   : > { %v3326_v33 = vmul.f32 %v3322_v31, %v3322_v31  ;;  %4709 = vmatpush3.bf16.msra.mxu1 %v4945_v12  ;;  %p4364_p13 = scmp.ne.s32.totalorder %s6805_s24, 1 }
 0xf86   : > { %s6806_s17 = sld [smem:[#allocation61_spill]] (!%p4364_p13) }
 0xf87   : > { %v3336_v35 = vsel %vm1249_vm1, %v3326_v33, 0.0  ;;  %s6807_s21 = sld [smem:[#allocation60_spill]] (!%p4364_p13) }
 0xf88   : > { %3337 = vadd.xlane.f32.xlu0 %v3336_v35  ;;  %s6808_s26 = sld [smem:[#allocation62_spill]] (!%p4364_p13) }
0x1009   : > { %v3329_v38 = vpop.xlane.xlu1 %3328 }
0x100a   : > { %v3339_v39 = vmul.f32 0.03125, %v3329_v38 }
0x100c   : > { %v3343_v41 = vadd.f32 1e-05, %v3339_v39 }
0x100d   : > { %v3335_v34 = vpop.xlane.xlu1 %3334  ;;  %v3332_v42 = vpop.xlane.xlu0 %3331 }
0x100e   : > { %5010 = vrsqrt.f32 %v3343_v41  ;;  %v3341_v43 = vmul.f32 0.03125, %v3335_v34  ;;  %v3340_v44 = vmul.f32 0.03125, %v3332_v42 }
0x1010   : > { %v3345_v45 = vadd.f32 1e-05, %v3341_v43  ;;  %v3344_v46 = vadd.f32 1e-05, %v3340_v44 }
0x1011   : > { %v3338_v49 = vpop.xlane.xlu0 %3337 }
0x1012   : > { %5012 = vrsqrt.f32 %v3345_v45  ;;  %v3342_v47 = vmul.f32 0.03125, %v3338_v49 }
0x1013   : > { %5014 = vrsqrt.f32 %v3344_v46 }
0x1014   : > { %v3346_v58 = vadd.f32 1e-05, %v3342_v47 }
0x1016   : > { %5016 = vrsqrt.f32 %v3346_v58 }
0x101b   : > { %v5011_v48 = vpop.eup %5010 }
0x101c   : > { %v3351_v50 = vmul.f32 %v5011_v48, %v3319_v19 }
0x101e   : > { %v3361_v57 = vmul.f32 %v4348_v51, %v3351_v50 }
0x101f   : > { %v5013_v10 = vpop.eup %5012 }
0x1020   : > { %v5015_v52 = vpop.eup %5014  ;;  %v3353_v54 = vmul.f32 %v5013_v10, %v3321_v26  ;;  %v6577_v4 = vadd.f32 %v4349_v59, %v3361_v57 }
0x1021   : > { %v3352_v56 = vmul.f32 %v5015_v52, %v3320_v25 }
0x1022   : > { %v3363_v3 = vmul.f32 %v4348_v51, %v3353_v54 }
0x1023   : > { %v5017_v62 = vpop.eup %5016  ;;  %v3362_v63 = vmul.f32 %v4348_v51, %v3352_v56 }
0x1024   : > { %v3354_v1 = vmul.f32 %v5017_v62, %v3322_v31  ;;  %v6583_v15 = vadd.f32 %v4349_v59, %v3363_v3 }
0x1025   : > { %v6579_v9 = vadd.f32 %v4349_v59, %v3362_v63 }
0x1026   : > { %v3364_v7 = vmul.f32 %v4348_v51, %v3354_v1 }
0x1027   : > { %v3375_v13 = vpack.c.bf16 %v6579_v9, %v6577_v4 }
0x1028   : > { %v6585_v61 = vadd.f32 %v4349_v59, %v3364_v7  ;;  %v4355_v59 = vld [vmem:[%s6802_s20] ss:$0 sm:$0xff] }
0x1029   : > { %4698 = vmatprep.mubr.msk.bf16.mxu0 %vm1249_vm1, %v3375_v13 }
0x102a   : > { %v3376_v5 = vpack.c.bf16 %v6585_v61, %v6583_v15 }
0x102c   : > { %4699 = vmatmul.mubr.msk.bf16.vlgmr.msra.gmra.mxu0 %vm1249_vm1, %v3376_v5 }
0x10ec   : > { %v4700_v14 = vpop.f32.mrf.mxu0 }
0x10ed   : > { %v3449_v0 = vadd.f32 %v4700_v14, %v4350_v8 }
0x10ee   : > { %v3440_v55 = vpop.f32.mrf.mxu0 }
0x10ef   : > { %v3457_v6 = vmul.f32 %v3449_v0, %v3449_v0  ;;  %v3441_v16 = vadd.f32 %v4350_v8, %v3440_v55 }
0x10f0   : > { %v4701_v17 = vpop.f32.mrf.mxu0 }
0x10f1   : > { %v3461_v18 = vmul.f32 %v3457_v6, %v3449_v0  ;;  %v3455_v19 = vmul.f32 %v3441_v16, %v3441_v16  ;;  %v3452_v20 = vadd.f32 %v4701_v17, %v4350_v8 }
0x10f2   : > { %v3443_v21 = vpop.f32.mrf.mxu0 }
0x10f3   : > { %v3465_v22 = vmul.f32 0.044715, %v3461_v18  ;;  %v3459_v23 = vmul.f32 %v3455_v19, %v3441_v16  ;;  %v3458_v24 = vmul.f32 %v3452_v20, %v3452_v20  ;;  %v3444_v25 = vadd.f32 %v4350_v8, %v3443_v21 }
0x10f5   : > { %v3469_v26 = vadd.f32 %v3465_v22, %v3449_v0  ;;  %v3463_v27 = vmul.f32 0.044715, %v3459_v23  ;;  %v3462_v28 = vmul.f32 %v3458_v24, %v3452_v20  ;;  %v3456_v2 = vmul.f32 %v3444_v25, %v3444_v25 }
0x10f7   : > { %v3473_v29 = vmul.f32 0.7978846, %v3469_v26  ;;  %v3467_v30 = vadd.f32 %v3463_v27, %v3441_v16  ;;  %v3466_v31 = vmul.f32 0.044715, %v3462_v28  ;;  %v3460_v40 = vmul.f32 %v3456_v2, %v3444_v25 }
0x10f9   : > { %v3471_v32 = vmul.f32 0.7978846, %v3467_v30  ;;  %v3470_v33 = vadd.f32 %v3466_v31, %v3452_v20  ;;  %v3464_v35 = vmul.f32 0.044715, %v3460_v40  ;;  %5018 = vtanh.f32 %v3473_v29 }
0x10fb   : > { %5020 = vtanh.f32 %v3471_v32  ;;  %v3474_v36 = vmul.f32 0.7978846, %v3470_v33  ;;  %v3468_v37 = vadd.f32 %v3464_v35, %v3444_v25 }
0x10fd   : > { %5022 = vtanh.f32 %v3474_v36  ;;  %v3472_v38 = vmul.f32 0.7978846, %v3468_v37 }
0x10ff   : > { %5024 = vtanh.f32 %v3472_v38 }
0x1106   : > { %v5019_v39 = vpop.eup %5018 }
0x1107   : > { %v3481_v43 = vadd.f32 1.0, %v5019_v39 }
0x1108   : > { %v5021_v41 = vpop.eup %5020 }
0x1109   : > { %v3479_v34 = vadd.f32 1.0, %v5021_v41  ;;  %v3485_v58 = vmul.f32 0.5, %v3481_v43  ;;  %v4362_v43 = vld [vmem:[%s6803_s23] ss:$0 sm:$0xff] }
0x110a   : > { %v5023_v42 = vpop.eup %5022 }
0x110b   : > { %v3482_v44 = vadd.f32 1.0, %v5023_v42  ;;  %v3483_v46 = vmul.f32 0.5, %v3479_v34  ;;  %v3489_v52 = vmul.f32 %v3485_v58, %v3449_v0 }
0x110c   : > { %v5025_v45 = vpop.eup %5024 }
0x110d   : > { %v3486_v49 = vmul.f32 0.5, %v3482_v44  ;;  %v3480_v47 = vadd.f32 1.0, %v5025_v45  ;;  %v3487_v51 = vmul.f32 %v3483_v46, %v3441_v16  ;;  %v4363_v45 = vld [vmem:[%s6804_s25] ss:$0 sm:$0xff] }
0x110f   : > { %v3484_v48 = vmul.f32 0.5, %v3480_v47  ;;  %v3490_v50 = vmul.f32 %v3486_v49, %v3452_v20 }
0x1111   : > { %v3488_v10 = vmul.f32 %v3484_v48, %v3444_v25  ;;  %v3492_v56 = vpack.c.bf16 %v3490_v50, %v3489_v52 }
0x1113   : > { %v3491_v54 = vpack.c.bf16 %v3488_v10, %v3487_v51 }
0x1115   : > { %4710 = vmatprep.mubr.msk.bf16.mxu1 %vm3532_vm8, %v3491_v54 }
0x1116   : > { %4711 = vmatmul.mubr.msk.bf16.vlgmr.msra.gmra.mxu1 %vm3532_vm8, %v3492_v56 }
0x11d6   : > { %v4712_v57 = vpop.f32.mrf.mxu1 }
0x11d7   : > { %v3582_v63 = vadd.f32 %v4712_v57, %v4355_v59 }
0x11d8   : > { %v3573_v62 = vpop.f32.mrf.mxu1 }
0x11d9   : > { %v3574_v1 = vadd.f32 %v4355_v59, %v3573_v62  ;;  %v3590_v53 = vadd.f32 %v3582_v63, %v6583_v15 }
0x11da   : > { %v4713_v3 = vpop.f32.mrf.mxu1 }
0x11db   : > { %v3588_v7 = vadd.f32 %v3574_v1, %v6577_v4  ;;  %v3585_v5 = vadd.f32 %v4713_v3, %v4355_v59  ;;  %v3600_v0 = vsel %vm1249_vm1, %v3590_v53, 0.0 }
0x11dc   : > { %v3576_v13 = vpop.f32.mrf.mxu1 }
0x11dd   : > { %v3577_v60 = vadd.f32 %v4355_v59, %v3576_v13  ;;  %v3594_v11 = vsel %vm1249_vm1, %v3588_v7, 0.0  ;;  %v3591_v8 = vadd.f32 %v3585_v5, %v6585_v61 }
0x11de   : > { %3595 = vadd.xlane.f32.xlu1 %v3594_v11 }
0x11df   : > { %v3589_v12 = vadd.f32 %v3577_v60, %v6579_v9  ;;  %v3603_v4 = vsel %vm1249_vm1, %v3591_v8, 0.0 }
0x11e1   : > { %v3597_v14 = vsel %vm1249_vm1, %v3589_v12, 0.0 }
0x11e2   : > { %3598 = vadd.xlane.f32.xlu0 %v3597_v14  ;;  %3601 = vadd.xlane.f32.xlu1 %v3600_v0 }
0x11e6   : > { %3604 = vadd.xlane.f32.xlu0 %v3603_v4 }
0x1267   : > { %v3596_v55 = vpop.xlane.xlu1 %3595 }
0x1268   : > { %v3606_v6 = vmul.f32 0.03125, %v3596_v55 }
0x126a   : > { %v3610_v16 = vsub.f32 %v3588_v7, %v3606_v6 }
0x126b   : > { %v3599_v17 = vpop.xlane.xlu0 %3598  ;;  %v3602_v18 = vpop.xlane.xlu1 %3601 }
0x126c   : > { %v3607_v15 = vmul.f32 0.03125, %v3599_v17  ;;  %v3608_v19 = vmul.f32 0.03125, %v3602_v18  ;;  %v3614_v20 = vmul.f32 %v3610_v16, %v3610_v16 }
0x126e   : > { %v3611_v9 = vsub.f32 %v3589_v12, %v3607_v15  ;;  %v3612_v21 = vsub.f32 %v3590_v53, %v3608_v19  ;;  %v3618_v61 = vsel %vm1249_vm1, %v3614_v20, 0.0 }
0x126f   : > { %v3605_v22 = vpop.xlane.xlu0 %3604  ;;  %3619 = vadd.xlane.f32.xlu1 %v3618_v61 }
0x1270   : > { %v3609_v23 = vmul.f32 0.03125, %v3605_v22  ;;  %v3615_v24 = vmul.f32 %v3611_v9, %v3611_v9  ;;  %v3616_v25 = vmul.f32 %v3612_v21, %v3612_v21 }
0x1272   : > { %v3613_v26 = vsub.f32 %v3591_v8, %v3609_v23  ;;  %v3621_v27 = vsel %vm1249_vm1, %v3615_v24, 0.0  ;;  %v3624_v28 = vsel %vm1249_vm1, %v3616_v25, 0.0 }
0x1273   : > { %3622 = vadd.xlane.f32.xlu0 %v3621_v27  ;;  %3625 = vadd.xlane.f32.xlu1 %v3624_v28 }
0x1274   : > { %v3617_v2 = vmul.f32 %v3613_v26, %v3613_v26 }
0x1276   : > { %v3627_v29 = vsel %vm1249_vm1, %v3617_v2, 0.0 }
0x1277   : > { %3628 = vadd.xlane.f32.xlu0 %v3627_v29 }
0x12f8   : > { %v3620_v30 = vpop.xlane.xlu1 %3619 }
0x12f9   : > { %v3630_v31 = vmul.f32 0.03125, %v3620_v30 }
0x12fb   : > { %v3634_v40 = vadd.f32 1e-05, %v3630_v31 }
0x12fc   : > { %v3623_v32 = vpop.xlane.xlu0 %3622  ;;  %v3626_v33 = vpop.xlane.xlu1 %3625 }
0x12fd   : > { %5026 = vrsqrt.f32 %v3634_v40  ;;  %v3631_v35 = vmul.f32 0.03125, %v3623_v32  ;;  %v3632_v36 = vmul.f32 0.03125, %v3626_v33 }
0x12ff   : > { %v3635_v37 = vadd.f32 1e-05, %v3631_v35  ;;  %v3636_v38 = vadd.f32 1e-05, %v3632_v36 }
0x1300   : > { %v3629_v39 = vpop.xlane.xlu0 %3628 }
0x1301   : > { %5028 = vrsqrt.f32 %v3635_v37  ;;  %v3633_v41 = vmul.f32 0.03125, %v3629_v39 }
0x1302   : > { %5030 = vrsqrt.f32 %v3636_v38 }
0x1303   : > { %v3637_v34 = vadd.f32 1e-05, %v3633_v41 }
0x1305   : > { %5032 = vrsqrt.f32 %v3637_v34 }
0x130a   : > { %v5027_v42 = vpop.eup %5026 }
0x130b   : > { %v3642_v44 = vmul.f32 %v5027_v42, %v3610_v16 }
0x130d   : > { %v3652_v46 = vmul.f32 %v4362_v43, %v3642_v44 }
0x130e   : > { %v5029_v49 = vpop.eup %5028 }
0x130f   : > { %v5031_v47 = vpop.eup %5030  ;;  %v3662_v58 = vadd.f32 %v4363_v45, %v3652_v46  ;;  %v3643_v48 = vmul.f32 %v5029_v49, %v3611_v9 }
0x1310   : > { %v3644_v50 = vmul.f32 %v5031_v47, %v3612_v21 }
0x1311   : > { %3666 = vst.msk [vmem:[#allocation2] sm:$0xff] %vm1249_vm1, %v3662_v58  ;;  %v3653_v51 = vmul.f32 %v4362_v43, %v3643_v48 }
0x1312   : > { %v5033_v10 = vpop.eup %5032  ;;  %v3654_v52 = vmul.f32 %v4362_v43, %v3644_v50 }
0x1313   : > { %v3663_v54 = vadd.f32 %v4363_v45, %v3653_v51  ;;  %v3645_v56 = vmul.f32 %v5033_v10, %v3613_v26 }
0x1314   : > { %v3664_v57 = vadd.f32 %v4363_v45, %v3654_v52 }
0x1315   : > { %3667 = vst.msk [vmem:[#allocation2 + $0x8] sm:$0xff] %vm1249_vm1, %v3663_v54  ;;  %v3655_v59 = vmul.f32 %v4362_v43, %v3645_v56  ;;  %3673 = sbr.rel (%p4364_p13) target bundleno = 5510 (0x1586), region = 184 }
0x1316   : > { %3668 = vst.msk [vmem:[#allocation2 + $0x10] sm:$0xff] %vm1249_vm1, %v3664_v57 }
0x1317   : > { %v3665_v62 = vadd.f32 %v4363_v45, %v3655_v59 }
0x1319   : > { %3669 = vst.msk [vmem:[#allocation2 + $0x18] sm:$0xff] %vm1249_vm1, %v3665_v62 }
0x131a   : > { %v5038_v63 = vld [vmem:[#allocation24 + $0x8] sm:$0xff]   ;;  %v5619_v1 = vmov 0.0   ;;  %v5039_v3 = vld [vmem:[#allocation24] sm:$0xff]   ;;  %vm5620_vm9 = vmmov 0   ;;  %v5042_v11 = vld [vmem:[#allocation27] sm:$0xff]  }
0x131b   : > { %4714 = vmatprep.subr.bf16.mxu0 %v5619_v1  ;;  %4722 = vmatprep.subr.bf16.mxu1 %v5619_v1  ;;  %v5040_v5 = vld [vmem:[#allocation27 + $0x8] sm:$0xff]   ;;  %v5041_v60 = vld [vmem:[#allocation28 + $0x8] sm:$0xff]   ;;  %v5043_v53 = vld [vmem:[#allocation28] sm:$0xff]  }
0x131c   : > { %4715 = vmatpush3.bf16.msra.mxu0 %v5038_v63  ;;  %4718 = vmatprep.mubr.msk.bf16.mxu0 %vm5620_vm9, %v5619_v1  ;;  %v4365_v12 = vld [vmem:[#allocation25] ss:$0 sm:$0xff]  ;;  %v5044_v17 = vld [vmem:[%s6806_s17 + $0x18] sm:$0xff]   ;;  %v5045_v15 = vld [vmem:[%s6806_s17 + $0x10] sm:$0xff]  }
0x131d   : > { %4716 = vmatprep.subr.bf16.mxu0 %v5619_v1  ;;  %4726 = vmatprep.mubr.msk.bf16.mxu1 %vm5620_vm9, %v5619_v1  ;;  %v5046_v19 = vld [vmem:[%s6806_s17 + $0x8] sm:$0xff]   ;;  %v5047_v20 = vld [vmem:[%s6806_s17] sm:$0xff]  }
0x131e   : > { %4723 = vmatpush3.bf16.msra.mxu1 %v5041_v60  ;;  %v4375_v61 = vld [vmem:[%s6807_s21] ss:$0 sm:$0xff] }
0x131f   : > { %4724 = vmatprep.subr.bf16.mxu1 %v5619_v1  ;;  %v4376_v30 = vld [vmem:[%s6808_s26] ss:$0 sm:$0xff] }
0x1320   : > { %v3674_v7 = vld [vmem:[#allocation2] ss:$8 sm:$0xf]  ;;  %4717 = vmatpush3.bf16.msra.mxu0 %v5039_v3 }
0x1321   : > { %v3675_v13 = vpack.c.bf16 %v3674_v7, %v3674_v7  ;;  %4730 = vmatprep.subr.bf16.mxu0 %v5619_v1 }
0x1322   : > { %4725 = vmatpush3.bf16.msra.mxu1 %v5043_v53 }
0x1323   : > { %4719 = vmatmul.mubr.msk.bf16.vlgmr.msra.gmra.mxu0 %vm1249_vm1, %v3675_v13  ;;  %4738 = vmatprep.subr.bf16.mxu1 %v5619_v1 }
0x1324   : > { %4734 = vmatprep.mubr.msk.bf16.mxu0 %vm5620_vm9, %v5619_v1  ;;  %4731 = vmatpush3.bf16.msra.mxu0 %v5040_v5 }
0x1325   : > { %4732 = vmatprep.subr.bf16.mxu0 %v5619_v1 }
0x1328   : > { %4733 = vmatpush3.bf16.msra.mxu0 %v5042_v11 }
0x13e3   : > { %v3736_v8 = vpop.f32.mrf.mxu0 }
0x13e4   : > { %v3737_v14 = vadd.f32 %v4365_v12, %v3736_v8 }
0x13e5   : > { %v4720_v0 = vpop.f32.mrf.mxu0 }
0x13e6   : > { %5048 = vtanh.f32 %v3737_v14 }
0x13e7   : > { %v3739_v4 = vpop.f32.mrf.mxu0 }
0x13e9   : > { %v4721_v55 = vpop.f32.mrf.mxu0 }
0x13f3   : > { %v5049_v6 = vpop.eup %5048 }
0x13f4   : > { %v3743_v16 = vpack.c.bf16 %v5049_v6, %v5049_v6 }
0x13f6   : > { %4735 = vmatmul.mubr.msk.bf16.vlgmr.msra.gmra.mxu0 %vm1249_vm1, %v3743_v16  ;;  %v3753_v18 = vrot.slane %v3743_v16, 1 }
0x13f8   : > { %4727 = vmatmul.mubr.msk.bf16.vlgmr.msra.gmra.mxu1 %vm1249_vm1, %v3753_v18 }
0x13f9   : > { %4739 = vmatpush3.bf16.msra.mxu1 %v5044_v17  ;;  %4746 = vmatprep.mubr.msk.bf16.mxu1 %vm5620_vm9, %v5619_v1 }
0x13fa   : > { %4740 = vmatprep.subr.bf16.mxu1 %v5619_v1 }
0x13fd   : > { %4741 = vmatpush3.bf16.msra.mxu1 %v5045_v15 }
0x13fe   : > { %4742 = vmatprep.subr.bf16.mxu1 %v5619_v1 }
0x1401   : > { %4743 = vmatpush3.bf16.msra.mxu1 %v5046_v19 }
0x1402   : > { %4744 = vmatprep.subr.bf16.mxu1 %v5619_v1 }
0x1405   : > { %4745 = vmatpush3.bf16.msra.mxu1 %v5047_v20 }
0x14b6   : > { %v3858_v9 = vpop.f32.mrf.mxu0 }
0x14b8   : > { %v3803_v21 = vpop.f32.mrf.mxu1  ;;  %v4736_v22 = vpop.f32.mrf.mxu0 }
0x14b9   : > { %v3859_v23 = vadd.f32 %v3858_v9, %v3803_v21 }
0x14ba   : > { %v4728_v24 = vpop.f32.mrf.mxu1  ;;  %v3861_v25 = vpop.f32.mrf.mxu0 }
0x14bb   : > { %v3871_v26 = vadd.f32 %v4375_v61, %v3859_v23 }
0x14bc   : > { %v3806_v27 = vpop.f32.mrf.mxu1  ;;  %v4737_v28 = vpop.f32.mrf.mxu0 }
0x14bd   : > { %v3872_v2 = vpack.c.bf16 %v3871_v26, %v3871_v26 }
0x14be   : > { %v4729_v29 = vpop.f32.mrf.mxu1 }
0x14bf   : > { %4747 = vmatmul.mubr.msk.bf16.vlgmr.msra.gmra.mxu1 %vm3532_vm8, %v3872_v2 }
0x157f   : > { %v3949_v31 = vpop.f32.mrf.mxu1 }
0x1580   : > { %v3950_v40 = vadd.f32 %v4376_v30, %v3949_v31 }
0x1581   : > { %v4748_v32 = vpop.f32.mrf.mxu1 }
0x1582   : > { %3955 = vst [vmem:[#allocation30] sm:$0x3] %v3950_v40 }
0x1583   : > { %v3952_v33 = vpop.f32.mrf.mxu1 }
0x1585   : > { %v4749_v35 = vpop.f32.mrf.mxu1 }
0x1586 PF: > { %s6809_s2 = sld [smem:[#allocation44_spill]]  ;;  %s5621_s20 = smov [#allocation30]  }
0x1587   : > { %s3963_s23 = sshll.u32 %s5621_s20, 4  ;;  %s3964_s23 = int_to_ptr.vmem [resolvable:$true] %s3963_s23 }
0x1588   : > { %s5484_s25 = scalar_lea.vmem %s3964_s23, 32  ;;  %p5491_p12 = scmp.lt.s32.totalorder %s3964_s23, %s3964_s23 }
0x1589   : > { %p5485_p11 = scmp.ne.s32.totalorder %s3964_s23, %s5484_s25  ;;  %p5492_p1 = scmp.lt.s32.totalorder %s5484_s25, %s5484_s25 }
0x158b   : > { %p5493_p3 = por %p5492_p1, %p5491_p12 }
0x158c   : > { %p4865_p2 = scmp.eq.s32.totalorder %s6809_s2, 1 }
0x158e   : > { %p5486_p8 = pnand %p5485_p11, %p4865_p2 }
0x1590   : > { %p5487_p0 = pneg %p5486_p8 }
0x1592   : > { %p5494_p4 = pnand %p5493_p3, %p5487_p0 }
0x1594   : > { %5497 = shalt.err (!%p5494_p4)
}
0x1595   : > { %s6810_s6 = sld [smem:[#allocation63_spill]] }
0x159b   : > { %4797 = dma.vmem_to_hbm [thread:$0]  (%p4865_p2), %s3964_s23, 32, %s6810_s6, [#allocation6]  }
0x159c   : > { %5565 = dma.done.wait (%p4865_p2), [#allocation6], 32  }
0x159d   : > { %5567 = vsyncadd (%p4865_p2), [#allocation6], 4294967264 }
0x159e PF: > { %s6811_s25 = sld [smem:[#allocation46_spill]] }
0x159f   : > { %s6812_s4 = sld [smem:[#allocation42_spill]] }
0x15a0   : > { %s6813_s30 = sld [smem:[#allocation43_spill]] }
0x15a1   : > { %s6814_s24 = sld [smem:[#allocation47_spill]] }
0x15a4   : > { %p50_p6 = scmp.ge.s32.totalorder %s6811_s25, 4  }
0x15a6   :  { %52 = sbr.rel (!%p50_p6) target bundleno = 32 (0x20), region = 291 }
0x15ab   :  { %3976 = vsyncpa [#allocation5], 1 }
0x15ac   :  { %3978 = vsyncpa [#allocation5 + $0x1], 1 }
0x15ad   :  { %3979 = vsyncpa [#allocation8], 1 }
0x15ae   :  { %3980 = vsyncpa [#allocation11], 1 }
0x15af   :  { %3982 = vsyncpa [#allocation11 + $0x1], 1 }
0x15b0   :  { %3983 = vsyncpa [#allocation14], 1 }
0x15b1   :  { %3985 = vsyncpa [#allocation14 + $0x1], 1 }
0x15b2   :  { %3986 = vsyncpa [#allocation17], 1 }
0x15b3   :  { %3988 = vsyncpa [#allocation17 + $0x1], 1 }
0x15b4   :  { %3989 = vsyncpa [#allocation20], 1 }
0x15b5   :  { %3991 = vsyncpa [#allocation20 + $0x1], 1 }
0x15b6   :  { %3992 = vsyncpa [#allocation23], 1 }
0x15b7   :  { %3994 = vsyncpa [#allocation23 + $0x1], 1 }
0x15b8   :  { %3995 = vsyncpa [#allocation26], 1 }
0x15b9   :  { %3996 = vsyncpa [#allocation29], 1 }
0x15ba   :  { %3997 = vsyncpa [#allocation6], 1 }
0x15bb   :  { %3999 = vsyncpa [#allocation6 + $0x1], 1 }

</bundles_post_ra>
